<compile_context>
chip_gen: v7x
topology: tpu7x:2x2x1
jax: 0.10.0
libtpu: 0.0.40
codegen_flags: <defaults>
</compile_context>

<pallas_src>
import functools

import jax
import jax.numpy as jnp
from jax.experimental import pallas as pl
from jax.experimental.pallas import tpu as pltpu

# Channel schedule from the module's __init__ (input_frames=6 -> first dim 5).
# NOTE: the kernel hard-requires t == input_frames - 1 == 5; other values of
# input_frames would need this schedule rebuilt.
ENC_CHANNELS = [5, 32, 64, 128, 256, 512]
DEC_CHANNELS = [512, 256, 128, 64, 32, 1]
LAYER_DIMS = list(zip(ENC_CHANNELS[:-1], ENC_CHANNELS[1:])) + \
             list(zip(DEC_CHANNELS[:-1], DEC_CHANNELS[1:]))
N_LAYERS = len(LAYER_DIMS)   # 10 layers; ReLU on all but the last.

# bf16 MXU operands only when actually lowering for a TPU; any other backend
# (e.g. CPU interpret sandbox) runs pure f32.
_ON_TPU = jax.default_backend() == "tpu"


def _layer_dtype(cin, cout):
    """Matmul-operand dtype for a layer.

    The tiny first/last layers stay f32 for accuracy (negligible FLOPs);
    the dominant 64..512 layers run bf16 on the MXU with f32 accumulation.
    """
    if _ON_TPU and min(cin, cout) >= 64:
        return jnp.bfloat16
    return jnp.float32


def pointwise_mlp_kernel(x_ref, *refs):
    """Fused per-position MLP in (features, rows) layout.

    x_ref : (c0, tm)  input block (channels on sublanes, rows lane-dense)
    refs  : w0, b0, ..., w9, b9, out_ref
            w_i (i < 9): (c_{i+1}, c_i)  matmul weight (bf16 or f32)
            b_i (i < 9): (c_{i+1}, 1)    f32 bias
            w_9: (32, 1) f32, b_9: (1, 1) f32  (final layer, VPU/XLU path)
    out_ref: (1, tm)  lane-dense per-row scalar output
    """
    out_ref = refs[-1]
    wb = refs[:-1]
    n_mxu = len(wb) // 2 - 1          # 9 MXU layers; layer 10 is a VPU reduce.

    h = x_ref[...]                     # (c0, tm), dtype matches w0
    for i in range(n_mxu):
        w = wb[2 * i][...]
        b = wb[2 * i + 1][...]
        acc = jnp.dot(w, h, preferred_element_type=jnp.float32)   # f32 accum
        act = jnp.maximum(acc + b, 0.0)                           # bias+ReLU f32
        # Producer-side cast to what the next consumer wants (next layer's
        # weight dtype, or f32 for the final VPU layer): the f32 activation
        # never round-trips VMEM as a second slab.
        nxt = wb[2 * (i + 1)].dtype if i + 1 < n_mxu else jnp.float32
        h = act.astype(nxt)

    # Final 32 -> 1 layer on the VPU/XLU (broadcast-mul + sublane reduce):
    # avoids an almost-empty padded MXU tile and keeps the store lane-dense.
    w_last = wb[2 * n_mxu][...]        # (32, 1) f32
    b_last = wb[2 * n_mxu + 1][...]    # (1, 1)  f32
    out = jnp.sum(h * w_last, axis=0, keepdims=True) + b_last     # (1, tm)
    out_ref[...] = out.astype(out_ref.dtype)


def init_params(key):
    """Deterministic PyTorch-style init: U(-1/sqrt(fan_in), +1/sqrt(fan_in))."""
    params = []
    for (cin, cout) in LAYER_DIMS:
        key, kw, kb = jax.random.split(key, 3)
        bound = 1.0 / jnp.sqrt(float(cin))
        w = jax.random.uniform(kw, (cin, cout), jnp.float32, -bound, bound)
        b = jax.random.uniform(kb, (cout,), jnp.float32, -bound, bound)
        params.append((w, b))
    return params


def _round_up(x, m):
    return ((x + m - 1) // m) * m


@functools.partial(jax.jit, static_argnames=("tm_max",))
def gtae_high_pred1_forward(x, params, tm_max=2048):
    """x: (n, c, p, t, v=1) float32 -> (n, c, p, 1, 1) float32.

    tm_max: row-tile upper bound.  2048 keeps per-step VMEM ~15 MiB (well under
    the 48 MiB limit on all generations) while amortizing per-step pipeline and
    MXU weight-staging overhead; sweep 1024-4096 per generation.  On dual-TC
    v7x, large m naturally yields >=2 grid steps for dimension_semantics
    ("parallel",); no artificial tile-halving on single-TC v5e/v6e.
    """
    n, c, p, t, v = x.shape
    assert v == 1 and t == LAYER_DIMS[0][0]
    assert tm_max % 128 == 0

    # Rows = (n, c, p) positions; the MLP is row-permutation invariant, so no
    # wrapper transposes of the tensor layout are needed.  Feature-major
    # (t, m): input tile is lane-dense, the DMA is t long contiguous rows, and
    # layer 0 is a native MXU shape.  Input stays f32 (layer 0 is f32 anyway
    # and the (t, tm) tile is tiny).
    m = n * c * p
    rows = jnp.transpose(x[..., 0].reshape(m, t)).astype(jnp.float32)  # (t, m)

    m128 = _round_up(m, 128)
    tm = min(tm_max, m128)
    m_pad = _round_up(m, tm)
    if m_pad != m:
        rows = jnp.pad(rows, ((0, 0), (0, m_pad - m)))
    grid = m_pad // tm

    # Weights transposed to (cout, cin) in their per-layer operand dtype;
    # biases kept (cout, 1) f32.  The final 32->1 layer stays f32/untransposed
    # for the VPU path.  Constant operands are single-buffered (their
    # index_map never changes), saving useless double-buffer VMEM.
    const_mode = pl.Buffered(1) if _ON_TPU else None
    in_specs = [pl.BlockSpec((t, tm), lambda i: (0, i))]
    flat_params = []
    for li, (w, b) in enumerate(params):
        cin, cout = w.shape
        if li < N_LAYERS - 1:
            wk = w.T.astype(_layer_dtype(cin, cout))        # (cout, cin)
            bk = b.reshape(cout, 1).astype(jnp.float32)     # (cout, 1)
        else:
            wk = w.astype(jnp.float32)                      # (32, 1)
            bk = b.reshape(1, 1).astype(jnp.float32)        # (1, 1)
        in_specs.append(
            pl.BlockSpec(wk.shape, lambda i: (0, 0), pipeline_mode=const_mode))
        in_specs.append(
            pl.BlockSpec(bk.shape, lambda i: (0, 0), pipeline_mode=const_mode))
        flat_params.append(wk)
        flat_params.append(bk)

    out = pl.pallas_call(
        pointwise_mlp_kernel,
        out_shape=jax.ShapeDtypeStruct((1, m_pad), x.dtype),
        grid_spec=pltpu.PrefetchScalarGridSpec(
            num_scalar_prefetch=0,
            grid=(grid,),
            in_specs=in_specs,
            out_specs=pl.BlockSpec((1, tm), lambda i: (0, i)),
        ),
        compiler_params=pltpu.CompilerParams(
            dimension_semantics=("parallel",),
            vmem_limit_bytes=48 * 1024 * 1024,
        ),
    )(rows, *flat_params)

    # (1, m_pad) lane-dense slab -> flat rows -> (n, c, p, 1, 1).
    # NOTE: the padded tail rows contain bias/ReLU garbage by design; they are
    # sliced off here and must never be consumed.
    return out.reshape(-1)[:m].reshape(n, c, p, 1, 1)


def ref_forward(x, params):
    """Pure-JAX f32 reference reproducing the PyTorch forward."""
    n, c, p, t, v = x.shape
    h = x[..., 0].reshape(n * c * p, t)
    for i, (w, b) in enumerate(params):
        h = h @ w + b
        if i < len(params) - 1:
            h = jnp.maximum(h, 0.0)
    return h.reshape(n, c, p, 1, 1)


if __name__ == "__main__":
    key = jax.random.PRNGKey(0)
    k_param, k_x = jax.random.split(key)
    params = init_params(k_param)

    # x: (n=2, c=4, p=16, t=input_frames-1=5, v=1)
    n, c, p, t, v = 2, 4, 16, 5, 1
    x = jax.random.normal(k_x, (n, c, p, t, v), dtype=jnp.float32)

    out = gtae_high_pred1_forward(x, params)
    out = jax.block_until_ready(out)
    assert out.shape == (n, c, p, 1, 1), out.shape

    expected = ref_forward(x, params)
    max_err = float(jnp.max(jnp.abs(out - expected)))
    # On real TPUs the 64..512 layers run bf16 (f32 accumulation, f32
    # first/last layers) -> loosened tolerance vs the pure-f32 reference.
    assert jnp.allclose(out, expected, atol=2e-2, rtol=2e-2), max_err

    # TODO(synk): the latent z (AdaptiveMaxPool2d over x_ref), fc_final,
    # sigmoid/tanh and avg_pool are unused by the default forward
    # (ret_z=False) and are therefore not computed here.
    print("KERNEL_OK")
</pallas_src>

<mosaic_0001>
module attributes {stable_mosaic.version = 11 : i64} {
  func.func @pointwise_mlp_kernel(%arg0: i32, %arg1: memref<5x128xf32, #tpu.memory_space<vmem>>, %arg2: memref<32x5xf32, #tpu.memory_space<vmem>>, %arg3: memref<32x1xf32, #tpu.memory_space<vmem>>, %arg4: memref<64x32xf32, #tpu.memory_space<vmem>>, %arg5: memref<64x1xf32, #tpu.memory_space<vmem>>, %arg6: memref<128x64xf32, #tpu.memory_space<vmem>>, %arg7: memref<128x1xf32, #tpu.memory_space<vmem>>, %arg8: memref<256x128xf32, #tpu.memory_space<vmem>>, %arg9: memref<256x1xf32, #tpu.memory_space<vmem>>, %arg10: memref<512x256xf32, #tpu.memory_space<vmem>>, %arg11: memref<512x1xf32, #tpu.memory_space<vmem>>, %arg12: memref<256x512xf32, #tpu.memory_space<vmem>>, %arg13: memref<256x1xf32, #tpu.memory_space<vmem>>, %arg14: memref<128x256xf32, #tpu.memory_space<vmem>>, %arg15: memref<128x1xf32, #tpu.memory_space<vmem>>, %arg16: memref<64x128xf32, #tpu.memory_space<vmem>>, %arg17: memref<64x1xf32, #tpu.memory_space<vmem>>, %arg18: memref<32x64xf32, #tpu.memory_space<vmem>>, %arg19: memref<32x1xf32, #tpu.memory_space<vmem>>, %arg20: memref<32x1xf32, #tpu.memory_space<vmem>>, %arg21: memref<1x1xf32, #tpu.memory_space<vmem>>, %arg22: memref<1x128xf32, #tpu.memory_space<vmem>>) attributes {dimension_semantics = [#tpu.dimension_semantics<parallel>], iteration_bounds = array<i64: 1>, scalar_prefetch = 0 : i64, scratch_operands = 0 : i64, tpu.core_type = #tpu.core_type<tc>, window_params = [{transform_indices = @transform_0, window_bounds = array<i64: 5, 128>}, {pipeline_mode = #tpu.pipeline_mode<synchronous>, transform_indices = @transform_1, window_bounds = array<i64: 32, 5>}, {pipeline_mode = #tpu.pipeline_mode<synchronous>, transform_indices = @transform_2, window_bounds = array<i64: 32, 1>}, {pipeline_mode = #tpu.pipeline_mode<synchronous>, transform_indices = @transform_3, window_bounds = array<i64: 64, 32>}, {pipeline_mode = #tpu.pipeline_mode<synchronous>, transform_indices = @transform_4, window_bounds = array<i64: 64, 1>}, {pipeline_mode = #tpu.pipeline_mode<synchronous>, transform_indices = @transform_5, window_bounds = array<i64: 128, 64>}, {pipeline_mode = #tpu.pipeline_mode<synchronous>, transform_indices = @transform_6, window_bounds = array<i64: 128, 1>}, {pipeline_mode = #tpu.pipeline_mode<synchronous>, transform_indices = @transform_7, window_bounds = array<i64: 256, 128>}, {pipeline_mode = #tpu.pipeline_mode<synchronous>, transform_indices = @transform_8, window_bounds = array<i64: 256, 1>}, {pipeline_mode = #tpu.pipeline_mode<synchronous>, transform_indices = @transform_9, window_bounds = array<i64: 512, 256>}, {pipeline_mode = #tpu.pipeline_mode<synchronous>, transform_indices = @transform_10, window_bounds = array<i64: 512, 1>}, {pipeline_mode = #tpu.pipeline_mode<synchronous>, transform_indices = @transform_11, window_bounds = array<i64: 256, 512>}, {pipeline_mode = #tpu.pipeline_mode<synchronous>, transform_indices = @transform_12, window_bounds = array<i64: 256, 1>}, {pipeline_mode = #tpu.pipeline_mode<synchronous>, transform_indices = @transform_13, window_bounds = array<i64: 128, 256>}, {pipeline_mode = #tpu.pipeline_mode<synchronous>, transform_indices = @transform_14, window_bounds = array<i64: 128, 1>}, {pipeline_mode = #tpu.pipeline_mode<synchronous>, transform_indices = @transform_15, window_bounds = array<i64: 64, 128>}, {pipeline_mode = #tpu.pipeline_mode<synchronous>, transform_indices = @transform_16, window_bounds = array<i64: 64, 1>}, {pipeline_mode = #tpu.pipeline_mode<synchronous>, transform_indices = @transform_17, window_bounds = array<i64: 32, 64>}, {pipeline_mode = #tpu.pipeline_mode<synchronous>, transform_indices = @transform_18, window_bounds = array<i64: 32, 1>}, {pipeline_mode = #tpu.pipeline_mode<synchronous>, transform_indices = @transform_19, window_bounds = array<i64: 32, 1>}, {pipeline_mode = #tpu.pipeline_mode<synchronous>, transform_indices = @transform_20, window_bounds = array<i64: 1, 1>}, {transform_indices = @transform_21, window_bounds = array<i64: 1, 128>}]} {
    %c0 = arith.constant 0 : index
    %c0_0 = arith.constant 0 : index
    %0 = vector.load %arg1[%c0, %c0_0] : memref<5x128xf32, #tpu.memory_space<vmem>>, vector<5x128xf32>
    %c0_1 = arith.constant 0 : index
    %c0_2 = arith.constant 0 : index
    %1 = vector.load %arg2[%c0_1, %c0_2] : memref<32x5xf32, #tpu.memory_space<vmem>>, vector<32x5xf32>
    %c0_3 = arith.constant 0 : index
    %c0_4 = arith.constant 0 : index
    %2 = vector.load %arg3[%c0_3, %c0_4] : memref<32x1xf32, #tpu.memory_space<vmem>>, vector<32x1xf32>
    %cst = arith.constant dense<0.000000e+00> : vector<32x128xf32>
    %3 = tpu.matmul %1, %0, %cst {dimension_numbers = #tpu.dot_dimension_numbers<[1], [0], [0], [1], [0, 0, 1, 1], [], []>} : vector<32x5xf32>, vector<5x128xf32>, vector<32x128xf32> -> vector<32x128xf32>
    %4 = vector.broadcast %2 : vector<32x1xf32> to vector<32x128xf32>
    %5 = arith.addf %3, %4 : vector<32x128xf32>
    %cst_5 = arith.constant 0.000000e+00 : f32
    %6 = vector.broadcast %cst_5 : f32 to vector<32x128xf32>
    %7 = arith.maximumf %5, %6 : vector<32x128xf32>
    %c0_6 = arith.constant 0 : index
    %c0_7 = arith.constant 0 : index
    %8 = vector.load %arg4[%c0_6, %c0_7] : memref<64x32xf32, #tpu.memory_space<vmem>>, vector<64x32xf32>
    %c0_8 = arith.constant 0 : index
    %c0_9 = arith.constant 0 : index
    %9 = vector.load %arg5[%c0_8, %c0_9] : memref<64x1xf32, #tpu.memory_space<vmem>>, vector<64x1xf32>
    %cst_10 = arith.constant dense<0.000000e+00> : vector<64x128xf32>
    %10 = tpu.matmul %8, %7, %cst_10 {dimension_numbers = #tpu.dot_dimension_numbers<[1], [0], [0], [1], [0, 0, 1, 1], [], []>} : vector<64x32xf32>, vector<32x128xf32>, vector<64x128xf32> -> vector<64x128xf32>
    %11 = vector.broadcast %9 : vector<64x1xf32> to vector<64x128xf32>
    %12 = arith.addf %10, %11 : vector<64x128xf32>
    %cst_11 = arith.constant 0.000000e+00 : f32
    %13 = vector.broadcast %cst_11 : f32 to vector<64x128xf32>
    %14 = arith.maximumf %12, %13 : vector<64x128xf32>
    %c0_12 = arith.constant 0 : index
    %c0_13 = arith.constant 0 : index
    %15 = vector.load %arg6[%c0_12, %c0_13] : memref<128x64xf32, #tpu.memory_space<vmem>>, vector<128x64xf32>
    %c0_14 = arith.constant 0 : index
    %c0_15 = arith.constant 0 : index
    %16 = vector.load %arg7[%c0_14, %c0_15] : memref<128x1xf32, #tpu.memory_space<vmem>>, vector<128x1xf32>
    %cst_16 = arith.constant dense<0.000000e+00> : vector<128x128xf32>
    %17 = tpu.matmul %15, %14, %cst_16 {dimension_numbers = #tpu.dot_dimension_numbers<[1], [0], [0], [1], [0, 0, 1, 1], [], []>} : vector<128x64xf32>, vector<64x128xf32>, vector<128x128xf32> -> vector<128x128xf32>
    %18 = vector.broadcast %16 : vector<128x1xf32> to vector<128x128xf32>
    %19 = arith.addf %17, %18 : vector<128x128xf32>
    %cst_17 = arith.constant 0.000000e+00 : f32
    %20 = vector.broadcast %cst_17 : f32 to vector<128x128xf32>
    %21 = arith.maximumf %19, %20 : vector<128x128xf32>
    %c0_18 = arith.constant 0 : index
    %c0_19 = arith.constant 0 : index
    %22 = vector.load %arg8[%c0_18, %c0_19] : memref<256x128xf32, #tpu.memory_space<vmem>>, vector<256x128xf32>
    %c0_20 = arith.constant 0 : index
    %c0_21 = arith.constant 0 : index
    %23 = vector.load %arg9[%c0_20, %c0_21] : memref<256x1xf32, #tpu.memory_space<vmem>>, vector<256x1xf32>
    %cst_22 = arith.constant dense<0.000000e+00> : vector<256x128xf32>
    %24 = tpu.matmul %22, %21, %cst_22 {dimension_numbers = #tpu.dot_dimension_numbers<[1], [0], [0], [1], [0, 0, 1, 1], [], []>} : vector<256x128xf32>, vector<128x128xf32>, vector<256x128xf32> -> vector<256x128xf32>
    %25 = vector.broadcast %23 : vector<256x1xf32> to vector<256x128xf32>
    %26 = arith.addf %24, %25 : vector<256x128xf32>
    %cst_23 = arith.constant 0.000000e+00 : f32
    %27 = vector.broadcast %cst_23 : f32 to vector<256x128xf32>
    %28 = arith.maximumf %26, %27 : vector<256x128xf32>
    %c0_24 = arith.constant 0 : index
    %c0_25 = arith.constant 0 : index
    %29 = vector.load %arg10[%c0_24, %c0_25] : memref<512x256xf32, #tpu.memory_space<vmem>>, vector<512x256xf32>
    %c0_26 = arith.constant 0 : index
    %c0_27 = arith.constant 0 : index
    %30 = vector.load %arg11[%c0_26, %c0_27] : memref<512x1xf32, #tpu.memory_space<vmem>>, vector<512x1xf32>
    %cst_28 = arith.constant dense<0.000000e+00> : vector<512x128xf32>
    %31 = tpu.matmul %29, %28, %cst_28 {dimension_numbers = #tpu.dot_dimension_numbers<[1], [0], [0], [1], [0, 0, 1, 1], [], []>} : vector<512x256xf32>, vector<256x128xf32>, vector<512x128xf32> -> vector<512x128xf32>
    %32 = vector.broadcast %30 : vector<512x1xf32> to vector<512x128xf32>
    %33 = arith.addf %31, %32 : vector<512x128xf32>
    %cst_29 = arith.constant 0.000000e+00 : f32
    %34 = vector.broadcast %cst_29 : f32 to vector<512x128xf32>
    %35 = arith.maximumf %33, %34 : vector<512x128xf32>
    %c0_30 = arith.constant 0 : index
    %c0_31 = arith.constant 0 : index
    %36 = vector.load %arg12[%c0_30, %c0_31] : memref<256x512xf32, #tpu.memory_space<vmem>>, vector<256x512xf32>
    %c0_32 = arith.constant 0 : index
    %c0_33 = arith.constant 0 : index
    %37 = vector.load %arg13[%c0_32, %c0_33] : memref<256x1xf32, #tpu.memory_space<vmem>>, vector<256x1xf32>
    %cst_34 = arith.constant dense<0.000000e+00> : vector<256x128xf32>
    %38 = tpu.matmul %36, %35, %cst_34 {dimension_numbers = #tpu.dot_dimension_numbers<[1], [0], [0], [1], [0, 0, 1, 1], [], []>} : vector<256x512xf32>, vector<512x128xf32>, vector<256x128xf32> -> vector<256x128xf32>
    %39 = vector.broadcast %37 : vector<256x1xf32> to vector<256x128xf32>
    %40 = arith.addf %38, %39 : vector<256x128xf32>
    %cst_35 = arith.constant 0.000000e+00 : f32
    %41 = vector.broadcast %cst_35 : f32 to vector<256x128xf32>
    %42 = arith.maximumf %40, %41 : vector<256x128xf32>
    %c0_36 = arith.constant 0 : index
    %c0_37 = arith.constant 0 : index
    %43 = vector.load %arg14[%c0_36, %c0_37] : memref<128x256xf32, #tpu.memory_space<vmem>>, vector<128x256xf32>
    %c0_38 = arith.constant 0 : index
    %c0_39 = arith.constant 0 : index
    %44 = vector.load %arg15[%c0_38, %c0_39] : memref<128x1xf32, #tpu.memory_space<vmem>>, vector<128x1xf32>
    %cst_40 = arith.constant dense<0.000000e+00> : vector<128x128xf32>
    %45 = tpu.matmul %43, %42, %cst_40 {dimension_numbers = #tpu.dot_dimension_numbers<[1], [0], [0], [1], [0, 0, 1, 1], [], []>} : vector<128x256xf32>, vector<256x128xf32>, vector<128x128xf32> -> vector<128x128xf32>
    %46 = vector.broadcast %44 : vector<128x1xf32> to vector<128x128xf32>
    %47 = arith.addf %45, %46 : vector<128x128xf32>
    %cst_41 = arith.constant 0.000000e+00 : f32
    %48 = vector.broadcast %cst_41 : f32 to vector<128x128xf32>
    %49 = arith.maximumf %47, %48 : vector<128x128xf32>
    %c0_42 = arith.constant 0 : index
    %c0_43 = arith.constant 0 : index
    %50 = vector.load %arg16[%c0_42, %c0_43] : memref<64x128xf32, #tpu.memory_space<vmem>>, vector<64x128xf32>
    %c0_44 = arith.constant 0 : index
    %c0_45 = arith.constant 0 : index
    %51 = vector.load %arg17[%c0_44, %c0_45] : memref<64x1xf32, #tpu.memory_space<vmem>>, vector<64x1xf32>
    %cst_46 = arith.constant dense<0.000000e+00> : vector<64x128xf32>
    %52 = tpu.matmul %50, %49, %cst_46 {dimension_numbers = #tpu.dot_dimension_numbers<[1], [0], [0], [1], [0, 0, 1, 1], [], []>} : vector<64x128xf32>, vector<128x128xf32>, vector<64x128xf32> -> vector<64x128xf32>
    %53 = vector.broadcast %51 : vector<64x1xf32> to vector<64x128xf32>
    %54 = arith.addf %52, %53 : vector<64x128xf32>
    %cst_47 = arith.constant 0.000000e+00 : f32
    %55 = vector.broadcast %cst_47 : f32 to vector<64x128xf32>
    %56 = arith.maximumf %54, %55 : vector<64x128xf32>
    %c0_48 = arith.constant 0 : index
    %c0_49 = arith.constant 0 : index
    %57 = vector.load %arg18[%c0_48, %c0_49] : memref<32x64xf32, #tpu.memory_space<vmem>>, vector<32x64xf32>
    %c0_50 = arith.constant 0 : index
    %c0_51 = arith.constant 0 : index
    %58 = vector.load %arg19[%c0_50, %c0_51] : memref<32x1xf32, #tpu.memory_space<vmem>>, vector<32x1xf32>
    %cst_52 = arith.constant dense<0.000000e+00> : vector<32x128xf32>
    %59 = tpu.matmul %57, %56, %cst_52 {dimension_numbers = #tpu.dot_dimension_numbers<[1], [0], [0], [1], [0, 0, 1, 1], [], []>} : vector<32x64xf32>, vector<64x128xf32>, vector<32x128xf32> -> vector<32x128xf32>
    %60 = vector.broadcast %58 : vector<32x1xf32> to vector<32x128xf32>
    %61 = arith.addf %59, %60 : vector<32x128xf32>
    %cst_53 = arith.constant 0.000000e+00 : f32
    %62 = vector.broadcast %cst_53 : f32 to vector<32x128xf32>
    %63 = arith.maximumf %61, %62 : vector<32x128xf32>
    %c0_54 = arith.constant 0 : index
    %c0_55 = arith.constant 0 : index
    %64 = vector.load %arg20[%c0_54, %c0_55] : memref<32x1xf32, #tpu.memory_space<vmem>>, vector<32x1xf32>
    %c0_56 = arith.constant 0 : index
    %c0_57 = arith.constant 0 : index
    %65 = vector.load %arg21[%c0_56, %c0_57] : memref<1x1xf32, #tpu.memory_space<vmem>>, vector<1x1xf32>
    %66 = vector.broadcast %64 : vector<32x1xf32> to vector<32x128xf32>
    %67 = arith.mulf %63, %66 : vector<32x128xf32>
    %cst_58 = arith.constant dense<0.000000e+00> : vector<128xf32>
    %68 = vector.multi_reduction <add>, %67, %cst_58 [0] : vector<32x128xf32> to vector<128xf32>
    %69 = vector.shape_cast %68 : vector<128xf32> to vector<1x128xf32>
    %70 = vector.broadcast %65 : vector<1x1xf32> to vector<1x128xf32>
    %71 = arith.addf %69, %70 : vector<1x128xf32>
    %c0_59 = arith.constant 0 : index
    %c0_60 = arith.constant 0 : index
    %72 = vector.load %arg22[%c0_59, %c0_60] : memref<1x128xf32, #tpu.memory_space<vmem>>, vector<1x128xf32>
    tpu.vector_store %arg22[%c0_59, %c0_60], %71 {strides = array<i32>} : memref<1x128xf32, #tpu.memory_space<vmem>>, vector<1x128xf32>,
    return
  }
  func.func @transform_0(%arg0: i32) -> (i32, i32) {
    %c0_i32 = arith.constant 0 : i32
    %c0_i32_0 = arith.constant 0 : i32
    return %c0_i32, %arg0 : i32, i32
  }
  func.func @transform_1(%arg0: i32) -> (i32, i32) {
    %c0_i32 = arith.constant 0 : i32
    %c0_i32_0 = arith.constant 0 : i32
    %c0_i32_1 = arith.constant 0 : i32
    return %c0_i32, %c0_i32_0 : i32, i32
  }
  func.func @transform_2(%arg0: i32) -> (i32, i32) {
    %c0_i32 = arith.constant 0 : i32
    %c0_i32_0 = arith.constant 0 : i32
    %c0_i32_1 = arith.constant 0 : i32
    return %c0_i32, %c0_i32_0 : i32, i32
  }
  func.func @transform_3(%arg0: i32) -> (i32, i32) {
    %c0_i32 = arith.constant 0 : i32
    %c0_i32_0 = arith.constant 0 : i32
    %c0_i32_1 = arith.constant 0 : i32
    return %c0_i32, %c0_i32_0 : i32, i32
  }
  func.func @transform_4(%arg0: i32) -> (i32, i32) {
    %c0_i32 = arith.constant 0 : i32
    %c0_i32_0 = arith.constant 0 : i32
    %c0_i32_1 = arith.constant 0 : i32
    return %c0_i32, %c0_i32_0 : i32, i32
  }
  func.func @transform_5(%arg0: i32) -> (i32, i32) {
    %c0_i32 = arith.constant 0 : i32
    %c0_i32_0 = arith.constant 0 : i32
    %c0_i32_1 = arith.constant 0 : i32
    return %c0_i32, %c0_i32_0 : i32, i32
  }
  func.func @transform_6(%arg0: i32) -> (i32, i32) {
    %c0_i32 = arith.constant 0 : i32
    %c0_i32_0 = arith.constant 0 : i32
    %c0_i32_1 = arith.constant 0 : i32
    return %c0_i32, %c0_i32_0 : i32, i32
  }
  func.func @transform_7(%arg0: i32) -> (i32, i32) {
    %c0_i32 = arith.constant 0 : i32
    %c0_i32_0 = arith.constant 0 : i32
    %c0_i32_1 = arith.constant 0 : i32
    return %c0_i32, %c0_i32_0 : i32, i32
  }
  func.func @transform_8(%arg0: i32) -> (i32, i32) {
    %c0_i32 = arith.constant 0 : i32
    %c0_i32_0 = arith.constant 0 : i32
    %c0_i32_1 = arith.constant 0 : i32
    return %c0_i32, %c0_i32_0 : i32, i32
  }
  func.func @transform_9(%arg0: i32) -> (i32, i32) {
    %c0_i32 = arith.constant 0 : i32
    %c0_i32_0 = arith.constant 0 : i32
    %c0_i32_1 = arith.constant 0 : i32
    return %c0_i32, %c0_i32_0 : i32, i32
  }
  func.func @transform_10(%arg0: i32) -> (i32, i32) {
    %c0_i32 = arith.constant 0 : i32
    %c0_i32_0 = arith.constant 0 : i32
    %c0_i32_1 = arith.constant 0 : i32
    return %c0_i32, %c0_i32_0 : i32, i32
  }
  func.func @transform_11(%arg0: i32) -> (i32, i32) {
    %c0_i32 = arith.constant 0 : i32
    %c0_i32_0 = arith.constant 0 : i32
    %c0_i32_1 = arith.constant 0 : i32
    return %c0_i32, %c0_i32_0 : i32, i32
  }
  func.func @transform_12(%arg0: i32) -> (i32, i32) {
    %c0_i32 = arith.constant 0 : i32
    %c0_i32_0 = arith.constant 0 : i32
    %c0_i32_1 = arith.constant 0 : i32
    return %c0_i32, %c0_i32_0 : i32, i32
  }
  func.func @transform_13(%arg0: i32) -> (i32, i32) {
    %c0_i32 = arith.constant 0 : i32
    %c0_i32_0 = arith.constant 0 : i32
    %c0_i32_1 = arith.constant 0 : i32
    return %c0_i32, %c0_i32_0 : i32, i32
  }
  func.func @transform_14(%arg0: i32) -> (i32, i32) {
    %c0_i32 = arith.constant 0 : i32
    %c0_i32_0 = arith.constant 0 : i32
    %c0_i32_1 = arith.constant 0 : i32
    return %c0_i32, %c0_i32_0 : i32, i32
  }
  func.func @transform_15(%arg0: i32) -> (i32, i32) {
    %c0_i32 = arith.constant 0 : i32
    %c0_i32_0 = arith.constant 0 : i32
    %c0_i32_1 = arith.constant 0 : i32
    return %c0_i32, %c0_i32_0 : i32, i32
  }
  func.func @transform_16(%arg0: i32) -> (i32, i32) {
    %c0_i32 = arith.constant 0 : i32
    %c0_i32_0 = arith.constant 0 : i32
    %c0_i32_1 = arith.constant 0 : i32
    return %c0_i32, %c0_i32_0 : i32, i32
  }
  func.func @transform_17(%arg0: i32) -> (i32, i32) {
    %c0_i32 = arith.constant 0 : i32
    %c0_i32_0 = arith.constant 0 : i32
    %c0_i32_1 = arith.constant 0 : i32
    return %c0_i32, %c0_i32_0 : i32, i32
  }
  func.func @transform_18(%arg0: i32) -> (i32, i32) {
    %c0_i32 = arith.constant 0 : i32
    %c0_i32_0 = arith.constant 0 : i32
    %c0_i32_1 = arith.constant 0 : i32
    return %c0_i32, %c0_i32_0 : i32, i32
  }
  func.func @transform_19(%arg0: i32) -> (i32, i32) {
    %c0_i32 = arith.constant 0 : i32
    %c0_i32_0 = arith.constant 0 : i32
    %c0_i32_1 = arith.constant 0 : i32
    return %c0_i32, %c0_i32_0 : i32, i32
  }
  func.func @transform_20(%arg0: i32) -> (i32, i32) {
    %c0_i32 = arith.constant 0 : i32
    %c0_i32_0 = arith.constant 0 : i32
    %c0_i32_1 = arith.constant 0 : i32
    return %c0_i32, %c0_i32_0 : i32, i32
  }
  func.func @transform_21(%arg0: i32) -> (i32, i32) {
    %c0_i32 = arith.constant 0 : i32
    %c0_i32_0 = arith.constant 0 : i32
    return %c0_i32, %arg0 : i32, i32
  }
}

</mosaic_0001>

<bundles_post_ra>
// kernel: squeeze.1
= control target key start
LH: loop header
LB: loop body
LE: loop exit
PB: predicated region body
PF: predicated region fallthrough
CT: control target
= control target key end

     0   :  { %s63_s20 = smov 3  ;;  %s66_s21 = smov 12  ;;  %vm54_vm0 = vcmask 1043458   ;;  %vm58_vm1 = vcmask 1044484   ;;  %vm60_vm2 = vcmask 130048   ;;  %vm76_vm3 = vcmask 1048448   ;;  %s285_s0 = inlined_call_operand.vmem [shape: f32[2,4,16,5,1], index: 0, kind: input, shape index: {}]   ;;  %s286_s1 = inlined_call_operand.vmem [shape: f32[128,5], index: 1, kind: output, shape index: {}]  }
   0x1   :  { %v182_v0 = vld [vmem:[%s285_s0 + $0x24] sm:$0xf]  ;;  %v184_v1 = vld [vmem:[%s285_s0 + $0x1c] sm:$0xf]  ;;  %v186_v2 = vld [vmem:[%s285_s0 + $0x14] sm:$0xf] }
   0x2   :  { %8 = vst [vmem:[#allocation0 + $0x48] sm:$0xf] %v182_v0  ;;  %18 = vst [vmem:[#allocation0 + $0x38] sm:$0xf] %v184_v1  ;;  %v188_v3 = vld [vmem:[%s285_s0 + $0xc] sm:$0xf] }
   0x3   :  { %28 = vst [vmem:[#allocation0 + $0x28] sm:$0xf] %v186_v2  ;;  %v190_v4 = vld [vmem:[%s285_s0 + $0x4] sm:$0xf]  ;;  %38 = vst [vmem:[#allocation0 + $0x18] sm:$0xf] %v188_v3 }
   0x4   :  { %47 = vst [vmem:[#allocation0 + $0x8] sm:$0xf] %v190_v4  ;;  %v183_v5 = vld [vmem:[%s285_s0 + $0x20] sm:$0xf]  ;;  %v185_v6 = vld [vmem:[%s285_s0 + $0x18] sm:$0xf] }
   0x5   :  { %13 = vst [vmem:[#allocation0 + $0x40] sm:$0xf] %v183_v5  ;;  %23 = vst [vmem:[#allocation0 + $0x30] sm:$0xf] %v185_v6  ;;  %v187_v7 = vld [vmem:[%s285_s0 + $0x10] sm:$0xf] }
   0x6   :  { %v189_v8 = vld [vmem:[%s285_s0 + $0x8] sm:$0xf]  ;;  %s95_s26 = smov 3  ;;  %33 = vst [vmem:[#allocation0 + $0x20] sm:$0xf] %v187_v7  ;;  %s79_s29 = smov 3 }
   0x7   :  { %43 = vst [vmem:[#allocation0 + $0x10] sm:$0xf] %v189_v8  ;;  %v48_v9 = vld [vmem:[%s285_s0] sm:$0xf]  ;;  %s98_s0 = smov 12  ;;  %s82_s30 = smov 12 }
   0x8   :  { %49 = vst [vmem:[#allocation0] sm:$0xf] %v48_v9  ;;  %s111_s2 = smov 3  ;;  %s114_s3 = smov 12  ;;  %vm92_vm4 = vcmask 917248   ;;  %vm108_vm5 = vcmask 786048  }
   0x9   :  { %v71_v10 = vld [vmem:[#allocation0 + $0x47] sm:$0x10]   ;;  %v103_v11 = vld [vmem:[#allocation0 + $0x45] sm:$0x10]   ;;  %v87_v12 = vld [vmem:[#allocation0 + $0x46] sm:$0x10]  }
   0xa   :  { %v119_v25 = vld [vmem:[#allocation0 + $0x44] sm:$0x10]   ;;  %s198_s4 = smov 112   ;;  %s127_s5 = smov 3  ;;  %vm124_vm6 = vcmask 654848   ;;  %vm140_vm7 = vcmask 523648  }
   0xb   :  { %v64_v13 = vld [vmem:[#allocation0 + $0xb] ss:$16 sm:%s63_s20]   ;;  %v96_v15 = vld [vmem:[#allocation0 + $0x9] ss:$16 sm:%s95_s26]   ;;  %v80_v18 = vld [vmem:[#allocation0 + $0xa] ss:$16 sm:%s79_s29]  }
   0xc   :  { %v67_v14 = vld [vmem:[#allocation0 + $0xb] ss:$16 sm:%s66_s21]   ;;  %v99_v17 = vld [vmem:[#allocation0 + $0x9] ss:$16 sm:%s98_s0]   ;;  %v83_v19 = vld [vmem:[#allocation0 + $0xa] ss:$16 sm:%s82_s30]  }
   0xd   :  { %v69_v16 = vsel %vm54_vm0, %v67_v14, %v64_v13  ;;  %v101_v21 = vsel %vm54_vm0, %v99_v17, %v96_v15  ;;  %v85_v22 = vsel %vm54_vm0, %v83_v19, %v80_v18  ;;  %v112_v23 = vld [vmem:[#allocation0 + $0x8] ss:$16 sm:%s111_s2]   ;;  %s130_s6 = smov 12  ;;  %s199_s7 = smov 80   ;;  %v135_v33 = vld [vmem:[#allocation0 + $0x3f] sm:$0x10]  }
   0xe   :  { %v73_v20 = vsel %vm58_vm1, %v71_v10, %v69_v16  ;;  %v115_v24 = vld [vmem:[#allocation0 + $0x8] ss:$16 sm:%s114_s3]   ;;  %v105_v26 = vsel %vm58_vm1, %v103_v11, %v101_v21  ;;  %v89_v28 = vsel %vm58_vm1, %v87_v12, %v85_v22  ;;  %s143_s8 = smov 3  ;;  %s146_s9 = smov 12  ;;  %v151_v36 = vld [vmem:[#allocation0 + $0x3e] sm:$0x10]  }
   0xf   :  { %74 = vrot.lane.b32.xlu0 %v73_v20, %s198_s4  ;;  %v117_v27 = vsel %vm54_vm0, %v115_v24, %v112_v23  ;;  %106 = vrot.lane.b32.xlu1 %v105_v26, %s199_s7  ;;  %v128_v29 = vld [vmem:[#allocation0 + $0x3] ss:$16 sm:%s127_s5]   ;;  %v144_v34 = vld [vmem:[#allocation0 + $0x2] ss:$16 sm:%s143_s8]   ;;  %s159_s10 = smov 3  ;;  %s162_s11 = smov 12 }
  0x10   :  { %v131_v30 = vld [vmem:[#allocation0 + $0x3] ss:$16 sm:%s130_s6]   ;;  %v121_v31 = vsel %vm58_vm1, %v119_v25, %v117_v27  ;;  %v147_v35 = vld [vmem:[#allocation0 + $0x2] ss:$16 sm:%s146_s9]   ;;  %s200_s12 = smov 96   ;;  %s50_s13 = smov 3 }
  0x11   :  { %v133_v32 = vsel %vm54_vm0, %v131_v30, %v128_v29  ;;  %v149_v37 = vsel %vm54_vm0, %v147_v35, %v144_v34  ;;  %v160_v38 = vld [vmem:[#allocation0 + $0x1] ss:$16 sm:%s159_s10]   ;;  %s201_s14 = smov 64   ;;  %v51_v41 = vld [vmem:[#allocation0] ss:$16 sm:%s50_s13]   ;;  %s52_s15 = smov 12 }
  0x12   :  { %v163_v39 = vld [vmem:[#allocation0 + $0x1] ss:$16 sm:%s162_s11]   ;;  %v137_v40 = vsel %vm58_vm1, %v135_v33, %v133_v32  ;;  %v57_v42 = vld [vmem:[#allocation0 + $0x3c] sm:$0x10]   ;;  %v153_v43 = vsel %vm58_vm1, %v151_v36, %v149_v37  ;;  %s202_s16 = smov 48   ;;  %s203_s17 = smov 32  }
  0x13   :  { %90 = vrot.lane.b32.xlu0 %v89_v28, %s200_s12  ;;  %122 = vrot.lane.b32.xlu1 %v121_v31, %s201_s14  ;;  %v165_v44 = vsel %vm54_vm0, %v163_v39, %v160_v38  ;;  %v167_v45 = vld [vmem:[#allocation0 + $0x3d] sm:$0x10]   ;;  %v53_v46 = vld [vmem:[#allocation0] ss:$16 sm:%s52_s15]   ;;  %s204_s20 = smov 16   ;;  %vm156_vm8 = vcmask 392448  }
  0x14   :  { %v55_v47 = vsel %vm54_vm0, %v53_v46, %v51_v41  ;;  %v169_v49 = vsel %vm58_vm1, %v167_v45, %v165_v44  ;;  %vm172_vm9 = vcmask 261248  }
  0x15   :  { %v59_v48 = vsel %vm58_vm1, %v57_v42, %v55_v47 }
  0x16   :  { %61 = vst.msk [vmem:[%s286_s1] sm:$0x1f] %vm60_vm2, %v59_v48  }
  0x17   :  { %138 = vrot.lane.b32.xlu0 %v137_v40, %s202_s16  ;;  %154 = vrot.lane.b32.xlu1 %v153_v43, %s203_s17 }
  0x1b   :  { %170 = vrot.lane.b32.xlu0 %v169_v49, %s204_s20 }
  0x81   :  { %v75_v50 = vpop.permute.xlu0 %74   ;;  %v107_v51 = vpop.permute.xlu1 %106  }
  0x82   :  { %77 = vst.msk [vmem:[%s286_s1] sm:$0x1f] %vm76_vm3, %v75_v50  }
  0x85   :  { %v91_v52 = vpop.permute.xlu0 %90   ;;  %v123_v53 = vpop.permute.xlu1 %122  }
  0x86   :  { %93 = vst.msk [vmem:[%s286_s1] sm:$0x1f] %vm92_vm4, %v91_v52  }
  0x87   :  { %109 = vst.msk [vmem:[%s286_s1] sm:$0x1f] %vm108_vm5, %v107_v51  }
  0x88   :  { %125 = vst.msk [vmem:[%s286_s1] sm:$0x1f] %vm124_vm6, %v123_v53  }
  0x89   :  { %v139_v54 = vpop.permute.xlu0 %138   ;;  %v155_v55 = vpop.permute.xlu1 %154  }
  0x8a   :  { %141 = vst.msk [vmem:[%s286_s1] sm:$0x1f] %vm140_vm7, %v139_v54  }
  0x8b   :  { %157 = vst.msk [vmem:[%s286_s1] sm:$0x1f] %vm156_vm8, %v155_v55  }
  0x8d   :  { %v171_v56 = vpop.permute.xlu0 %170  }
  0x8e   :  { %173 = vst.msk [vmem:[%s286_s1] sm:$0x1f] %vm172_vm9, %v171_v56  }

// kernel: gtae_high_pred1_forward.1
= control target key start
LH: loop header
LB: loop body
LE: loop exit
PB: predicated region body
PF: predicated region fallthrough
CT: control target
= control target key end

     0   :  { %vm112_vm0 = vcmask 1044480   ;;  %vm99_vm1 = vcmask 39936   ;;  %v4437_v0 = vmov 0   ;;  %vm261_vm2 = vcmask 261120   ;;  %s6629_s2 = inlined_call_operand.vmem [shape: f32[32,1], index: 2, kind: input, shape index: {}]   ;;  %s6630_s0 = inlined_call_operand.vmem [shape: f32[5,128], index: 0, kind: input, shape index: {}]   ;;  %s6631_s1 = inlined_call_operand.vmem [shape: f32[32,5], index: 1, kind: input, shape index: {}]   ;;  %s6632_s4 = inlined_call_operand.vmem [shape: f32[64,1], index: 4, kind: input, shape index: {}]   ;;  %s6633_s6 = inlined_call_operand.vmem [shape: f32[128,1], index: 6, kind: input, shape index: {}]   ;;  %s6634_s8 = inlined_call_operand.vmem [shape: f32[256,1], index: 8, kind: input, shape index: {}]   ;;  %s6635_s3 = inlined_call_operand.vmem [shape: f32[64,32], index: 3, kind: input, shape index: {}]   ;;  %s6636_s10 = inlined_call_operand.vmem [shape: f32[512,1], index: 10, kind: input, shape index: {}]   ;;  %s6637_s20 = inlined_call_operand.<no memory space> [shape: f32[1,1], index: 20, kind: input, shape index: {}]   ;;  %s6638_s12 = inlined_call_operand.vmem [shape: f32[256,1], index: 12, kind: input, shape index: {}]   ;;  %s6639_s14 = inlined_call_operand.vmem [shape: f32[128,1], index: 14, kind: input, shape index: {}]   ;;  %s6640_s5 = inlined_call_operand.vmem [shape: f32[128,64], index: 5, kind: input, shape index: {}]   ;;  %s6641_s16 = inlined_call_operand.vmem [shape: f32[64,1], index: 16, kind: input, shape index: {}]   ;;  %s6642_s18 = inlined_call_operand.vmem [shape: f32[32,1], index: 18, kind: input, shape index: {}]   ;;  %s6643_s19 = inlined_call_operand.vmem [shape: f32[32,1], index: 19, kind: input, shape index: {}]   ;;  %s6644_s7 = inlined_call_operand.vmem [shape: f32[256,128], index: 7, kind: input, shape index: {}]   ;;  %s6645_s9 = inlined_call_operand.vmem [shape: f32[512,256], index: 9, kind: input, shape index: {}]   ;;  %s6646_s11 = inlined_call_operand.vmem [shape: f32[256,512], index: 11, kind: input, shape index: {}]   ;;  %s6647_s13 = inlined_call_operand.vmem [shape: f32[128,256], index: 13, kind: input, shape index: {}]   ;;  %s6648_s15 = inlined_call_operand.vmem [shape: f32[64,128], index: 15, kind: input, shape index: {}]   ;;  %s6649_s17 = inlined_call_operand.vmem [shape: f32[32,64], index: 17, kind: input, shape index: {}]   ;;  %s6650_s21 = inlined_call_operand.vmem [shape: f32[1,128], index: 21, kind: output, shape index: {}]  }
   0x1   :  { %6656 = sst [smem:[#allocation42_spill]] %s6629_s2  ;;  %4436 = vset.pattern.permute.xlu1 %v4437_v0  ;;  %4435 = vset.pattern.permute.xlu0 %v4437_v0  ;;  %v205_v58 = vld [vmem:[%s6635_s3] sm:$0xff]  ;;  %vm511_vm3 = vcmask 523264  }
   0x2   :  { %6657 = sst [smem:[#allocation43_spill]] %s6630_s0  ;;  %s6662_s26 = sld [smem:[#allocation42_spill]] }
   0x3   :  { %6658 = sst [smem:[#allocation44_spill]] %s6631_s1  ;;  %s6663_s2 = sld [smem:[#allocation43_spill]] }
   0x4   :  { %6659 = sst [smem:[#allocation45_spill]] %s6632_s4 }
   0x5   :  { %6660 = sst [smem:[#allocation46_spill]] %s6633_s6  ;;  %s6665_s30 = sld [smem:[#allocation45_spill]] }
   0x6   :  { %6661 = sst [smem:[#allocation47_spill]] %s6634_s8  ;;  %s6664_s8 = sld [smem:[#allocation44_spill]] }
   0x7   :  { %s6666_s23 = sld [smem:[#allocation46_spill]]  ;;  %s6667_s25 = sld [smem:[#allocation47_spill]] }
   0x8   :  { %v77_v1 = vld [vmem:[%s6662_s26 + $0x10] sm:$0xff]  ;;  %v75_v2 = vld [vmem:[%s6662_s26] sm:$0xff]  ;;  %v78_v6 = vld [vmem:[%s6662_s26 + $0x18] sm:$0xff] }
   0x9   :  { %v70_v3 = vld [vmem:[%s6663_s2] sm:$0x1f]  ;;  %91 = vperm.xlu1 %4436, %v77_v1   ;;  %81 = vperm.xlu0 %4435, %v75_v2   ;;  %v76_v7 = vld [vmem:[%s6662_s26 + $0x8] sm:$0xff] }
   0xa   :  { %3843 = vmatprep.subr.msk.mxu1 %vm112_vm0, %v70_v3 }
   0xb   :  { %3844 = vmatpush3.msk.msra.mxu1 %vm112_vm0, %v70_v3  ;;  %v214_v10 = vld [vmem:[%s6665_s30 + $0x8] sm:$0xff]  ;;  %v213_v11 = vld [vmem:[%s6665_s30] sm:$0xff]  ;;  %v216_v12 = vld [vmem:[%s6665_s30 + $0x18] sm:$0xff] }
   0xc   :  { %v71_v4 = vld [vmem:[%s6664_s8] sm:$0xff]  ;;  %v72_v5 = vld [vmem:[%s6664_s8 + $0x8] sm:$0xff]  ;;  %v73_v8 = vld [vmem:[%s6664_s8 + $0x10] sm:$0xff] }
   0xd   :  { %3845 = vmatprep.mubr.msk.f32.mxu1 %vm99_vm1, %v71_v4  ;;  %96 = vperm.xlu1 %4436, %v78_v6   ;;  %v74_v9 = vld [vmem:[%s6664_s8 + $0x18] sm:$0xff]  ;;  %v215_v13 = vld [vmem:[%s6665_s30 + $0x10] sm:$0xff]  ;;  %v218_v14 = vld [vmem:[%s6665_s30 + $0x28] sm:$0xff] }
   0xe   :  { %3846 = vmatmul.mubr.msk.f32.vlgmr.msra.gmra.mrb[0].mxu1 %vm99_vm1, %v72_v5  ;;  %86 = vperm.xlu0 %4435, %v76_v7   ;;  %v217_v15 = vld [vmem:[%s6665_s30 + $0x20] sm:$0xff]  ;;  %v220_v16 = vld [vmem:[%s6665_s30 + $0x38] sm:$0xff]  ;;  %v219_v17 = vld [vmem:[%s6665_s30 + $0x30] sm:$0xff] }
   0xf   :  { %3848 = vmatprep.mubr.msk.f32.mxu1 %vm99_vm1, %v73_v8  ;;  %v416_v18 = vld [vmem:[%s6666_s23 + $0x8] sm:$0xff]  ;;  %v415_v19 = vld [vmem:[%s6666_s23] sm:$0xff]  ;;  %v418_v20 = vld [vmem:[%s6666_s23 + $0x18] sm:$0xff] }
  0x10   :  { %v417_v21 = vld [vmem:[%s6666_s23 + $0x10] sm:$0xff]  ;;  %v420_v22 = vld [vmem:[%s6666_s23 + $0x28] sm:$0xff]  ;;  %v419_v23 = vld [vmem:[%s6666_s23 + $0x20] sm:$0xff] }
  0x11   :  { %228 = vperm.xlu1 %4436, %v214_v10   ;;  %v422_v24 = vld [vmem:[%s6666_s23 + $0x38] sm:$0xff]  ;;  %v421_v25 = vld [vmem:[%s6666_s23 + $0x30] sm:$0xff]  ;;  %v424_v26 = vld [vmem:[%s6666_s23 + $0x48] sm:$0xff] }
  0x12   :  { %3849 = vmatmul.mubr.msk.f32.gmra.mrb[2].mxu1 %vm99_vm1, %v74_v9  ;;  %223 = vperm.xlu0 %4435, %v213_v11   ;;  %v423_v27 = vld [vmem:[%s6666_s23 + $0x40] sm:$0xff]  ;;  %v426_v28 = vld [vmem:[%s6666_s23 + $0x58] sm:$0xff]  ;;  %v425_v29 = vld [vmem:[%s6666_s23 + $0x50] sm:$0xff] }
  0x13   :  { %v428_v30 = vld [vmem:[%s6666_s23 + $0x68] sm:$0xff]  ;;  %v427_v31 = vld [vmem:[%s6666_s23 + $0x60] sm:$0xff]  ;;  %v430_v32 = vld [vmem:[%s6666_s23 + $0x78] sm:$0xff]  ;;  %3859 = vmatprep.mubr.msk.f32.mxu1 %vm261_vm2, %v205_v58 }
  0x14   :  { %v429_v33 = vld [vmem:[%s6666_s23 + $0x70] sm:$0xff]  ;;  %v754_v34 = vld [vmem:[%s6667_s25 + $0x8] sm:$0xff]  ;;  %v753_v35 = vld [vmem:[%s6667_s25] sm:$0xff] }
  0x15   :  { %238 = vperm.xlu1 %4436, %v216_v12   ;;  %v756_v36 = vld [vmem:[%s6667_s25 + $0x18] sm:$0xff]  ;;  %v755_v37 = vld [vmem:[%s6667_s25 + $0x10] sm:$0xff]  ;;  %v758_v38 = vld [vmem:[%s6667_s25 + $0x28] sm:$0xff] }
  0x16   :  { %233 = vperm.xlu0 %4435, %v215_v13   ;;  %v757_v39 = vld [vmem:[%s6667_s25 + $0x20] sm:$0xff]  ;;  %v760_v40 = vld [vmem:[%s6667_s25 + $0x38] sm:$0xff]  ;;  %v759_v41 = vld [vmem:[%s6667_s25 + $0x30] sm:$0xff] }
  0x17   :  { %v762_v42 = vld [vmem:[%s6667_s25 + $0x48] sm:$0xff]  ;;  %v761_v43 = vld [vmem:[%s6667_s25 + $0x40] sm:$0xff]  ;;  %v764_v44 = vld [vmem:[%s6667_s25 + $0x58] sm:$0xff] }
  0x18   :  { %v763_v45 = vld [vmem:[%s6667_s25 + $0x50] sm:$0xff]  ;;  %v766_v46 = vld [vmem:[%s6667_s25 + $0x68] sm:$0xff]  ;;  %v765_v47 = vld [vmem:[%s6667_s25 + $0x60] sm:$0xff] }
  0x19   :  { %248 = vperm.xlu1 %4436, %v218_v14   ;;  %v768_v48 = vld [vmem:[%s6667_s25 + $0x78] sm:$0xff]  ;;  %v767_v49 = vld [vmem:[%s6667_s25 + $0x70] sm:$0xff]  ;;  %v770_v50 = vld [vmem:[%s6667_s25 + $0x88] sm:$0xff] }
  0x1a   :  { %243 = vperm.xlu0 %4435, %v217_v15   ;;  %v769_v51 = vld [vmem:[%s6667_s25 + $0x80] sm:$0xff]  ;;  %v772_v52 = vld [vmem:[%s6667_s25 + $0x98] sm:$0xff]  ;;  %v771_v53 = vld [vmem:[%s6667_s25 + $0x90] sm:$0xff] }
  0x1b   :  { %v774_v54 = vld [vmem:[%s6667_s25 + $0xa8] sm:$0xff]  ;;  %v773_v55 = vld [vmem:[%s6667_s25 + $0xa0] sm:$0xff]  ;;  %v776_v56 = vld [vmem:[%s6667_s25 + $0xb8] sm:$0xff] }
  0x1c   :  { %v775_v57 = vld [vmem:[%s6667_s25 + $0xb0] sm:$0xff]  ;;  %v778_v59 = vld [vmem:[%s6667_s25 + $0xc8] sm:$0xff]  ;;  %v777_v60 = vld [vmem:[%s6667_s25 + $0xc0] sm:$0xff] }
  0x1d   :  { %258 = vperm.xlu1 %4436, %v220_v16   ;;  %v780_v61 = vld [vmem:[%s6667_s25 + $0xd8] sm:$0xff]  ;;  %v779_v62 = vld [vmem:[%s6667_s25 + $0xd0] sm:$0xff]  ;;  %v782_v63 = vld [vmem:[%s6667_s25 + $0xe8] sm:$0xff] }
  0x1e   :  { %253 = vperm.xlu0 %4435, %v219_v17   ;;  %v781_v0 = vld [vmem:[%s6667_s25 + $0xe0] sm:$0xff]  ;;  %v784_v1 = vld [vmem:[%s6667_s25 + $0xf8] sm:$0xff]  ;;  %v783_v2 = vld [vmem:[%s6667_s25 + $0xf0] sm:$0xff] }
  0x1f   :  { %v1331_v3 = vld [vmem:[%s6636_s10 + $0x8] sm:$0xff]  ;;  %v1330_v4 = vld [vmem:[%s6636_s10] sm:$0xff]  ;;  %v1333_v5 = vld [vmem:[%s6636_s10 + $0x18] sm:$0xff] }
  0x20   :  { %v1332_v6 = vld [vmem:[%s6636_s10 + $0x10] sm:$0xff]  ;;  %v1335_v7 = vld [vmem:[%s6636_s10 + $0x28] sm:$0xff]  ;;  %v1334_v8 = vld [vmem:[%s6636_s10 + $0x20] sm:$0xff] }
  0x21   :  { %438 = vperm.xlu1 %4436, %v416_v18   ;;  %v1337_v11 = vld [vmem:[%s6636_s10 + $0x38] sm:$0xff]  ;;  %v1336_v12 = vld [vmem:[%s6636_s10 + $0x30] sm:$0xff]  ;;  %v1339_v15 = vld [vmem:[%s6636_s10 + $0x48] sm:$0xff] }
  0x22   :  { %433 = vperm.xlu0 %4435, %v415_v19   ;;  %v1338_v16 = vld [vmem:[%s6636_s10 + $0x40] sm:$0xff]  ;;  %v1341_v19 = vld [vmem:[%s6636_s10 + $0x58] sm:$0xff]  ;;  %v1360_v58 = vld [vmem:[%s6636_s10 + $0xf0] sm:$0xff] }
  0x25   :  { %448 = vperm.xlu1 %4436, %v418_v20   ;;  %v1340_v20 = vld [vmem:[%s6636_s10 + $0x50] sm:$0xff] }
  0x26   :  { %443 = vperm.xlu0 %4435, %v417_v21  }
  0x29   :  { %458 = vperm.xlu1 %4436, %v420_v22  }
  0x2a   :  { %453 = vperm.xlu0 %4435, %v419_v23   ;;  %v1343_v23 = vld [vmem:[%s6636_s10 + $0x68] sm:$0xff] }
  0x2d   :  { %468 = vperm.xlu1 %4436, %v422_v24   ;;  %v1342_v24 = vld [vmem:[%s6636_s10 + $0x60] sm:$0xff] }
  0x2e   :  { %463 = vperm.xlu0 %4435, %v421_v25  }
  0x31   :  { %478 = vperm.xlu1 %4436, %v424_v26  }
  0x32   :  { %473 = vperm.xlu0 %4435, %v423_v27   ;;  %v1345_v27 = vld [vmem:[%s6636_s10 + $0x78] sm:$0xff] }
  0x35   :  { %488 = vperm.xlu1 %4436, %v426_v28   ;;  %v1344_v28 = vld [vmem:[%s6636_s10 + $0x70] sm:$0xff] }
  0x36   :  { %483 = vperm.xlu0 %4435, %v425_v29  }
  0x39   :  { %498 = vperm.xlu1 %4436, %v428_v30  }
  0x3a   :  { %493 = vperm.xlu0 %4435, %v427_v31   ;;  %v1347_v31 = vld [vmem:[%s6636_s10 + $0x88] sm:$0xff] }
  0x3d   :  { %508 = vperm.xlu1 %4436, %v430_v32   ;;  %v1346_v32 = vld [vmem:[%s6636_s10 + $0x80] sm:$0xff] }
  0x3e   :  { %503 = vperm.xlu0 %4435, %v429_v33  }
  0x41   :  { %792 = vperm.xlu1 %4436, %v754_v34  }
  0x42   :  { %787 = vperm.xlu0 %4435, %v753_v35   ;;  %v1349_v35 = vld [vmem:[%s6636_s10 + $0x98] sm:$0xff] }
  0x45   :  { %802 = vperm.xlu1 %4436, %v756_v36   ;;  %v1348_v36 = vld [vmem:[%s6636_s10 + $0x90] sm:$0xff] }
  0x46   :  { %797 = vperm.xlu0 %4435, %v755_v37  }
  0x49   :  { %812 = vperm.xlu1 %4436, %v758_v38  }
  0x4a   :  { %807 = vperm.xlu0 %4435, %v757_v39   ;;  %v1351_v39 = vld [vmem:[%s6636_s10 + $0xa8] sm:$0xff] }
  0x4d   :  { %822 = vperm.xlu1 %4436, %v760_v40   ;;  %v1350_v40 = vld [vmem:[%s6636_s10 + $0xa0] sm:$0xff] }
  0x4e   :  { %817 = vperm.xlu0 %4435, %v759_v41  }
  0x51   :  { %832 = vperm.xlu1 %4436, %v762_v42  }
  0x52   :  { %827 = vperm.xlu0 %4435, %v761_v43   ;;  %v1353_v43 = vld [vmem:[%s6636_s10 + $0xb8] sm:$0xff] }
  0x55   :  { %842 = vperm.xlu1 %4436, %v764_v44   ;;  %v1352_v44 = vld [vmem:[%s6636_s10 + $0xb0] sm:$0xff] }
  0x56   :  { %837 = vperm.xlu0 %4435, %v763_v45  }
  0x59   :  { %852 = vperm.xlu1 %4436, %v766_v46  }
  0x5a   :  { %847 = vperm.xlu0 %4435, %v765_v47   ;;  %v1355_v47 = vld [vmem:[%s6636_s10 + $0xc8] sm:$0xff] }
  0x5d   :  { %862 = vperm.xlu1 %4436, %v768_v48   ;;  %v1354_v48 = vld [vmem:[%s6636_s10 + $0xc0] sm:$0xff] }
  0x5e   :  { %857 = vperm.xlu0 %4435, %v767_v49  }
  0x61   :  { %872 = vperm.xlu1 %4436, %v770_v50  }
  0x62   :  { %867 = vperm.xlu0 %4435, %v769_v51   ;;  %v1357_v51 = vld [vmem:[%s6636_s10 + $0xd8] sm:$0xff] }
  0x65   :  { %882 = vperm.xlu1 %4436, %v772_v52   ;;  %v1356_v52 = vld [vmem:[%s6636_s10 + $0xd0] sm:$0xff] }
  0x66   :  { %877 = vperm.xlu0 %4435, %v771_v53  }
  0x69   :  { %892 = vperm.xlu1 %4436, %v774_v54   ;;  %v1359_v54 = vld [vmem:[%s6636_s10 + $0xe8] sm:$0xff] }
  0x6a   :  { %887 = vperm.xlu0 %4435, %v773_v55   ;;  %v1358_v55 = vld [vmem:[%s6636_s10 + $0xe0] sm:$0xff] }
  0x6d   :  { %902 = vperm.xlu1 %4436, %v776_v56  }
  0x6e   :  { %897 = vperm.xlu0 %4435, %v775_v57   ;;  %v1361_v57 = vld [vmem:[%s6636_s10 + $0xf8] sm:$0xff] }
  0x71   :  { %912 = vperm.xlu1 %4436, %v778_v59  }
  0x72   :  { %907 = vperm.xlu0 %4435, %v777_v60  }
  0x75   :  { %922 = vperm.xlu1 %4436, %v780_v61   ;;  %v1363_v61 = vld [vmem:[%s6636_s10 + $0x108] sm:$0xff] }
  0x76   :  { %917 = vperm.xlu0 %4435, %v779_v62   ;;  %v1362_v62 = vld [vmem:[%s6636_s10 + $0x100] sm:$0xff] }
  0x79   :  { %932 = vperm.xlu1 %4436, %v782_v63  }
  0x7a   :  { %927 = vperm.xlu0 %4435, %v781_v0   ;;  %v1365_v0 = vld [vmem:[%s6636_s10 + $0x118] sm:$0xff] }
  0x7d   :  { %942 = vperm.xlu1 %4436, %v784_v1   ;;  %v1364_v1 = vld [vmem:[%s6636_s10 + $0x110] sm:$0xff] }
  0x7e   :  { %937 = vperm.xlu0 %4435, %v783_v2  }
  0x81   :  { %1401 = vperm.xlu1 %4436, %v1331_v3   ;;  %v1367_v3 = vld [vmem:[%s6636_s10 + $0x128] sm:$0xff] }
  0x82   :  { %1396 = vperm.xlu0 %4435, %v1330_v4   ;;  %v1366_v4 = vld [vmem:[%s6636_s10 + $0x120] sm:$0xff] }
  0x85   :  { %1411 = vperm.xlu1 %4436, %v1333_v5  }
  0x86   :  { %1406 = vperm.xlu0 %4435, %v1332_v6  }
  0x88   :  { %v4772_v9 = vpop.permute.xlu1 %91  ;;  %v4774_v10 = vpop.permute.xlu0 %81 }
  0x89   :  { %1421 = vperm.xlu1 %4436, %v1335_v7   ;;  %v1369_v7 = vld [vmem:[%s6636_s10 + $0x138] sm:$0xff] }
  0x8a   :  { %1416 = vperm.xlu0 %4435, %v1334_v8   ;;  %v1368_v8 = vld [vmem:[%s6636_s10 + $0x130] sm:$0xff] }
  0x8c   :  { %v4782_v13 = vpop.permute.xlu1 %96 }
  0x8d   :  { %v4784_v14 = vpop.permute.xlu0 %86  ;;  %1431 = vperm.xlu1 %4436, %v1337_v11  }
  0x8e   :  { %1426 = vperm.xlu0 %4435, %v1336_v12   ;;  %v1371_v12 = vld [vmem:[%s6636_s10 + $0x148] sm:$0xff] }
  0x90   :  { %v4792_v17 = vpop.permute.xlu1 %228 }
  0x91   :  { %v4794_v18 = vpop.permute.xlu0 %223  ;;  %1441 = vperm.xlu1 %4436, %v1339_v15   ;;  %v1370_v15 = vld [vmem:[%s6636_s10 + $0x140] sm:$0xff] }
  0x92   :  { %1436 = vperm.xlu0 %4435, %v1338_v16  }
  0x94   :  { %v4802_v21 = vpop.permute.xlu1 %238 }
  0x95   :  { %v4804_v22 = vpop.permute.xlu0 %233  ;;  %1451 = vperm.xlu1 %4436, %v1341_v19   ;;  %v1373_v19 = vld [vmem:[%s6636_s10 + $0x158] sm:$0xff] }
  0x96   :  { %1446 = vperm.xlu0 %4435, %v1340_v20   ;;  %v1372_v20 = vld [vmem:[%s6636_s10 + $0x150] sm:$0xff] }
  0x98   :  { %v4812_v25 = vpop.permute.xlu1 %248 }
  0x99   :  { %v4814_v26 = vpop.permute.xlu0 %243  ;;  %1461 = vperm.xlu1 %4436, %v1343_v23  }
  0x9a   :  { %1456 = vperm.xlu0 %4435, %v1342_v24  }
  0x9c   :  { %v4822_v29 = vpop.permute.xlu1 %258 }
  0x9d   :  { %v4824_v30 = vpop.permute.xlu0 %253  ;;  %1471 = vperm.xlu1 %4436, %v1345_v27   ;;  %v1375_v27 = vld [vmem:[%s6636_s10 + $0x168] sm:$0xff] }
  0x9e   :  { %1466 = vperm.xlu0 %4435, %v1344_v28   ;;  %v1374_v28 = vld [vmem:[%s6636_s10 + $0x160] sm:$0xff] }
  0xa0   :  { %v4832_v33 = vpop.permute.xlu1 %438 }
  0xa1   :  { %v4834_v34 = vpop.permute.xlu0 %433  ;;  %1481 = vperm.xlu1 %4436, %v1347_v31  }
  0xa2   :  { %1476 = vperm.xlu0 %4435, %v1346_v32   ;;  %v1377_v32 = vld [vmem:[%s6636_s10 + $0x178] sm:$0xff] }
  0xa4   :  { %v4842_v37 = vpop.permute.xlu1 %448 }
  0xa5   :  { %v4844_v38 = vpop.permute.xlu0 %443  ;;  %1491 = vperm.xlu1 %4436, %v1349_v35   ;;  %v1376_v35 = vld [vmem:[%s6636_s10 + $0x170] sm:$0xff] }
  0xa6   :  { %1486 = vperm.xlu0 %4435, %v1348_v36  }
  0xa8   :  { %v4852_v41 = vpop.permute.xlu1 %458 }
  0xa9   :  { %v4854_v42 = vpop.permute.xlu0 %453  ;;  %1501 = vperm.xlu1 %4436, %v1351_v39   ;;  %v1379_v39 = vld [vmem:[%s6636_s10 + $0x188] sm:$0xff] }
  0xaa   :  { %1496 = vperm.xlu0 %4435, %v1350_v40   ;;  %v1378_v40 = vld [vmem:[%s6636_s10 + $0x180] sm:$0xff] }
  0xac   :  { %v4862_v45 = vpop.permute.xlu1 %468 }
  0xad   :  { %v4864_v46 = vpop.permute.xlu0 %463  ;;  %1511 = vperm.xlu1 %4436, %v1353_v43  }
  0xae   :  { %1506 = vperm.xlu0 %4435, %v1352_v44  }
  0xb0   :  { %v4874_v50 = vpop.permute.xlu1 %478 }
  0xb1   :  { %v4872_v49 = vpop.permute.xlu0 %473  ;;  %1521 = vperm.xlu1 %4436, %v1355_v47  }
  0xb2   :  { %1516 = vperm.xlu0 %4435, %v1354_v48  }
  0xb4   :  { %v4890_v56 = vpop.permute.xlu1 %488 }
  0xb5   :  { %v4882_v53 = vpop.permute.xlu0 %483  ;;  %1531 = vperm.xlu1 %4436, %v1357_v51  }
  0xb6   :  { %1526 = vperm.xlu0 %4435, %v1356_v52  }
  0xb8   :  { %v4900_v60 = vpop.permute.xlu1 %498 }
  0xb9   :  { %1541 = vperm.xlu1 %4436, %v1359_v54   ;;  %v4898_v59 = vpop.permute.xlu0 %493 }
  0xba   :  { %1536 = vperm.xlu0 %4435, %v1358_v55   ;;  %v1381_v55 = vld [vmem:[%s6636_s10 + $0x198] sm:$0xff] }
  0xbc   :  { %v4916_v2 = vpop.permute.xlu1 %508 }
  0xbd   :  { %1551 = vperm.xlu1 %4436, %v1361_v57   ;;  %v4908_v63 = vpop.permute.xlu0 %503  ;;  %v1380_v57 = vld [vmem:[%s6636_s10 + $0x190] sm:$0xff] }
  0xbe   :  { %1546 = vperm.xlu0 %4435, %v1360_v58  }
  0xc0   :  { %v4926_v6 = vpop.permute.xlu1 %792 }
  0xc1   :  { %1561 = vperm.xlu1 %4436, %v1363_v61   ;;  %v4924_v5 = vpop.permute.xlu0 %787 }
  0xc2   :  { %1556 = vperm.xlu0 %4435, %v1362_v62  }
  0xc4   :  { %v4942_v16 = vpop.permute.xlu1 %802 }
  0xc5   :  { %1571 = vperm.xlu1 %4436, %v1365_v0   ;;  %v4934_v11 = vpop.permute.xlu0 %797 }
  0xc6   :  { %1566 = vperm.xlu0 %4435, %v1364_v1  }
  0xc8   :  { %v4952_v24 = vpop.permute.xlu1 %812 }
  0xc9   :  { %1581 = vperm.xlu1 %4436, %v1367_v3   ;;  %v4950_v23 = vpop.permute.xlu0 %807 }
  0xca   :  { %1576 = vperm.xlu0 %4435, %v1366_v4   ;;  %v1383_v4 = vld [vmem:[%s6636_s10 + $0x1a8] sm:$0xff] }
  0xcc   :  { %v4968_v36 = vpop.permute.xlu1 %822 }
  0xcd   :  { %1591 = vperm.xlu1 %4436, %v1369_v7   ;;  %v4960_v31 = vpop.permute.xlu0 %817  ;;  %v1382_v7 = vld [vmem:[%s6636_s10 + $0x1a0] sm:$0xff] }
  0xce   :  { %1586 = vperm.xlu0 %4435, %v1368_v8  }
  0xd0   :  { %v4979_v51 = vpop.permute.xlu1 %832 }
  0xd1   :  { %1601 = vperm.xlu1 %4436, %v1371_v12   ;;  %v4976_v43 = vpop.permute.xlu0 %827 }
  0xd2   :  { %1596 = vperm.xlu0 %4435, %v1370_v15   ;;  %v1384_v15 = vld [vmem:[%s6636_s10 + $0x1b0] sm:$0xff] }
  0xd4   :  { %v4998_v8 = vpop.permute.xlu1 %842 }
  0xd5   :  { %1611 = vperm.xlu1 %4436, %v1373_v19   ;;  %v4989_v0 = vpop.permute.xlu0 %837 }
  0xd6   :  { %1606 = vperm.xlu0 %4435, %v1372_v20   ;;  %v206_v20 = vld [vmem:[%s6635_s3 + $0x8] sm:$0xff] }
  0xd9   :  { %1621 = vperm.xlu1 %4436, %v1375_v27   ;;  %v5006_v19 = vpop.permute.xlu0 %847  ;;  %v5011_v27 = vpop.permute.xlu1 %852 }
  0xda   :  { %1616 = vperm.xlu0 %4435, %v1374_v28   ;;  %v207_v28 = vld [vmem:[%s6635_s3 + $0x10] sm:$0xff] }
  0xdd   :  { %1631 = vperm.xlu1 %4436, %v1377_v32   ;;  %v1387_v32 = vld [vmem:[%s6636_s10 + $0x1c8] sm:$0xff] }
  0xde   :  { %1626 = vperm.xlu0 %4435, %v1376_v35   ;;  %v1386_v35 = vld [vmem:[%s6636_s10 + $0x1c0] sm:$0xff] }
  0xe1   :  { %v3847_v44 = vpop.f32.mrb[0].mxu1  ;;  %1641 = vperm.xlu1 %4436, %v1379_v39   ;;  %v208_v39 = vld [vmem:[%s6635_s3 + $0x18] sm:$0xff] }
  0xe2   :  { %v188_v47 = vadd.f32 %v3847_v44, %v4784_v14  ;;  %v182_v48 = vpop.f32.mrb[1].mxu1  ;;  %1636 = vperm.xlu0 %4435, %v1378_v40   ;;  %v5027_v40 = vpop.permute.xlu0 %857  ;;  %v209_v44 = vld [vmem:[%s6635_s3 + $0x20] sm:$0xff] }
  0xe3   :  { %v183_v52 = vadd.f32 %v182_v48, %v4774_v10  ;;  %v1388_v48 = vld [vmem:[%s6636_s10 + $0x1d0] sm:$0xff] }
  0xe4   :  { %v202_v54 = vmax.f32 %v188_v47, 0.0  ;;  %v1389_v47 = vld [vmem:[%s6636_s10 + $0x1d8] sm:$0xff] }
  0xe5   :  { %v201_v58 = vmax.f32 %v183_v52, 0.0  ;;  %v3850_v61 = vpop.f32.mrb[2].mxu1  ;;  %1651 = vperm.xlu1 %4436, %v1381_v55   ;;  %v5038_v52 = vpop.permute.xlu1 %862  ;;  %v211_v55 = vld [vmem:[%s6635_s3 + $0x30] sm:$0xff] }
  0xe6   :  { %v198_v14 = vadd.f32 %v3850_v61, %v4782_v13  ;;  %v192_v62 = vpop.f32.mrb[3].mxu1  ;;  %1646 = vperm.xlu0 %4435, %v1380_v57   ;;  %v1391_v57 = vld [vmem:[%s6636_s10 + $0x1e8] sm:$0xff]  ;;  %v5054_v61 = vpop.permute.xlu0 %867 }
  0xe7   :  { %v4057_v1 = vpack.c.bf16 %v202_v54, %v201_v58  ;;  %v193_v10 = vadd.f32 %v192_v62, %v4772_v9  ;;  %v1385_v9 = vld [vmem:[%s6636_s10 + $0x1b8] sm:$0xff]  ;;  %v210_v54 = vld [vmem:[%s6635_s3 + $0x28] sm:$0xff]  ;;  %v1390_v58 = vld [vmem:[%s6636_s10 + $0x1e0] sm:$0xff] }
  0xe8   :  { %v204_v3 = vmax.f32 %v198_v14, 0.0  ;;  %v212_v14 = vld [vmem:[%s6635_s3 + $0x38] sm:$0xff] }
  0xe9   :  { %v203_v13 = vmax.f32 %v193_v10, 0.0  ;;  %4058 = vmatprep.subr.bf16.mxu1 %v4057_v1  ;;  %1661 = vperm.xlu1 %4436, %v1383_v4   ;;  %v5061_v62 = vpop.permute.xlu1 %872  ;;  %v1393_v10 = vld [vmem:[%s6636_s10 + $0x1f8] sm:$0xff] }
  0xea   :  { %4060 = vmatpush3.bf16.msra.mxu1 %v4057_v1  ;;  %1656 = vperm.xlu0 %4435, %v1382_v7   ;;  %v26_v1 = vstv %s6637_s20  ;;  %v5073_v4 = vpop.permute.xlu0 %877  ;;  %v2308_v7 = vld [vmem:[%s6638_s12 + $0x88] sm:$0xff] }
  0xeb   :  { %v4061_v12 = vpack.c.bf16 %v204_v3, %v203_v13  ;;  %v1392_v3 = vld [vmem:[%s6636_s10 + $0x1f0] sm:$0xff]  ;;  %27 = vst [vmem:[#allocation2] sm:$0x1] %v26_v1  ;;  %v2307_v13 = vld [vmem:[%s6638_s12 + $0x80] sm:$0xff] }
  0xec   :  { %v2295_v1 = vld [vmem:[%s6638_s12 + $0x20] sm:$0xff] }
  0xed   :  { %4062 = vmatprep.subr.bf16.mxu1 %v4061_v12  ;;  %1671 = vperm.xlu1 %4436, %v1385_v9   ;;  %v2292_v9 = vld [vmem:[%s6638_s12 + $0x8] sm:$0xff] }
  0xee   :  { %4064 = vmatpush3.bf16.msra.mxu1 %v4061_v12  ;;  %1666 = vperm.xlu0 %4435, %v1384_v15   ;;  %v5081_v12 = vpop.permute.xlu1 %882  ;;  %v2291_v15 = vld [vmem:[%s6638_s12] sm:$0xff] }
  0xf1   :  { %3860 = vmatmul.mubr.msk.f32.vlgmr.msra.gmra.mrb[4].mxu1 %vm261_vm2, %v206_v20  ;;  %1681 = vperm.xlu1 %4436, %v1387_v32   ;;  %v5089_v20 = vpop.permute.xlu0 %887  ;;  %v2310_v32 = vld [vmem:[%s6638_s12 + $0x98] sm:$0xff] }
  0xf2   :  { %3862 = vmatprep.mubr.msk.f32.mxu1 %vm261_vm2, %v207_v28  ;;  %1676 = vperm.xlu0 %4435, %v1386_v35   ;;  %v5091_v28 = vpop.permute.xlu1 %892  ;;  %v2309_v35 = vld [vmem:[%s6638_s12 + $0x90] sm:$0xff] }
  0xf5   :  { %3863 = vmatmul.mubr.msk.f32.gmra.mrb[6].mxu1 %vm261_vm2, %v208_v39  ;;  %1691 = vperm.xlu1 %4436, %v1389_v47   ;;  %v5099_v39 = vpop.permute.xlu0 %897  ;;  %v2293_v47 = vld [vmem:[%s6638_s12 + $0x10] sm:$0xff] }
  0xf6   :  { %3865 = vmatprep.mubr.msk.f32.mxu1 %vm261_vm2, %v209_v44  ;;  %1686 = vperm.xlu0 %4435, %v1388_v48   ;;  %v2294_v44 = vld [vmem:[%s6638_s12 + $0x18] sm:$0xff]  ;;  %v5107_v48 = vpop.permute.xlu1 %902 }
  0xf9   :  { %3866 = vmatmul.mubr.msk.f32.gmra.mrb[8].mxu1 %vm261_vm2, %v210_v54  ;;  %1701 = vperm.xlu1 %4436, %v1391_v57   ;;  %v2312_v54 = vld [vmem:[%s6638_s12 + $0xa8] sm:$0xff]  ;;  %v5115_v57 = vpop.permute.xlu0 %907 }
  0xfa   :  { %3868 = vmatprep.mubr.msk.f32.mxu1 %vm261_vm2, %v211_v55  ;;  %1696 = vperm.xlu0 %4435, %v1390_v58   ;;  %v2311_v55 = vld [vmem:[%s6638_s12 + $0xa0] sm:$0xff]  ;;  %6668 = vst [vmem:[#allocation3_spill] sm:$0xff] %v5115_v57  ;;  %v5117_v58 = vpop.permute.xlu1 %912 }
  0xfb   :  { %6669 = vst [vmem:[#allocation4_spill] sm:$0xff] %v5117_v58 }
  0xfd   :  { %3869 = vmatmul.mubr.msk.f32.gmra.mrb[10].mxu1 %vm261_vm2, %v212_v14  ;;  %1711 = vperm.xlu1 %4436, %v1393_v10   ;;  %v2296_v14 = vld [vmem:[%s6638_s12 + $0x28] sm:$0xff]  ;;  %v5125_v10 = vpop.permute.xlu0 %917 }
  0xfe   :  { %1706 = vperm.xlu0 %4435, %v1392_v3   ;;  %6670 = vst [vmem:[#allocation5_spill] sm:$0xff] %v5125_v10  ;;  %v2314_v3 = vld [vmem:[%s6638_s12 + $0xb8] sm:$0xff] }
 0x101   :  { %2410 = vperm.xlu1 %4436, %v2308_v7   ;;  %v2313_v7 = vld [vmem:[%s6638_s12 + $0xb0] sm:$0xff] }
 0x102   :  { %2405 = vperm.xlu0 %4435, %v2307_v13   ;;  %v5133_v13 = vpop.permute.xlu1 %922 }
 0x103   :  { %6671 = vst [vmem:[#allocation6_spill] sm:$0xff] %v5133_v13 }
 0x105   :  { %2330 = vperm.xlu1 %4436, %v2292_v9   ;;  %v2298_v9 = vld [vmem:[%s6638_s12 + $0x38] sm:$0xff] }
 0x106   :  { %2325 = vperm.xlu0 %4435, %v2291_v15   ;;  %v2297_v15 = vld [vmem:[%s6638_s12 + $0x30] sm:$0xff] }
 0x109   :  { %2420 = vperm.xlu1 %4436, %v2310_v32   ;;  %v5141_v32 = vpop.permute.xlu0 %927 }
 0x10a   :  { %2415 = vperm.xlu0 %4435, %v2309_v35   ;;  %6672 = vst [vmem:[#allocation7_spill] sm:$0xff] %v5141_v32  ;;  %v5143_v35 = vpop.permute.xlu1 %932 }
 0x10b   :  { %6673 = vst [vmem:[#allocation8_spill] sm:$0xff] %v5143_v35 }
 0x10d   :  { %2340 = vperm.xlu1 %4436, %v2294_v44   ;;  %v2316_v44 = vld [vmem:[%s6638_s12 + $0xc8] sm:$0xff] }
 0x10e   :  { %2335 = vperm.xlu0 %4435, %v2293_v47   ;;  %v2315_v47 = vld [vmem:[%s6638_s12 + $0xc0] sm:$0xff] }
 0x111   :  { %2430 = vperm.xlu1 %4436, %v2312_v54   ;;  %v5151_v54 = vpop.permute.xlu0 %937 }
 0x112   :  { %2425 = vperm.xlu0 %4435, %v2311_v55   ;;  %6674 = vst [vmem:[#allocation9_spill] sm:$0xff] %v5151_v54  ;;  %v2300_v55 = vld [vmem:[%s6638_s12 + $0x48] sm:$0xff] }
 0x115   :  { %2350 = vperm.xlu1 %4436, %v2296_v14   ;;  %v2299_v14 = vld [vmem:[%s6638_s12 + $0x40] sm:$0xff] }
 0x116   :  { %2345 = vperm.xlu0 %4435, %v2295_v1   ;;  %v5159_v1 = vpop.permute.xlu1 %942 }
 0x117   :  { %6675 = vst [vmem:[#allocation10_spill] sm:$0xff] %v5159_v1 }
 0x119   :  { %2440 = vperm.xlu1 %4436, %v2314_v3   ;;  %v2318_v3 = vld [vmem:[%s6638_s12 + $0xd8] sm:$0xff] }
 0x11a   :  { %2435 = vperm.xlu0 %4435, %v2313_v7   ;;  %v2317_v7 = vld [vmem:[%s6638_s12 + $0xd0] sm:$0xff] }
 0x11d   :  { %2360 = vperm.xlu1 %4436, %v2298_v9   ;;  %v5167_v9 = vpop.permute.xlu0 %1396 }
 0x11e   :  { %2355 = vperm.xlu0 %4435, %v2297_v15   ;;  %6676 = vst [vmem:[#allocation11_spill] sm:$0xff] %v5167_v9  ;;  %v5169_v15 = vpop.permute.xlu1 %1401 }
 0x11f   :  { %6677 = vst [vmem:[#allocation12_spill] sm:$0xff] %v5169_v15  ;;  %v2304_v15 = vld [vmem:[%s6638_s12 + $0x68] sm:$0xff] }
 0x121   :  { %2450 = vperm.xlu1 %4436, %v2316_v44   ;;  %v2302_v44 = vld [vmem:[%s6638_s12 + $0x58] sm:$0xff] }
 0x122   :  { %2445 = vperm.xlu0 %4435, %v2315_v47   ;;  %v2301_v47 = vld [vmem:[%s6638_s12 + $0x50] sm:$0xff] }
 0x125   :  { %2370 = vperm.xlu1 %4436, %v2300_v55   ;;  %v5177_v55 = vpop.permute.xlu0 %1406 }
 0x126   :  { %2365 = vperm.xlu0 %4435, %v2299_v14   ;;  %6678 = vst [vmem:[#allocation13_spill] sm:$0xff] %v5177_v55  ;;  %v2320_v14 = vld [vmem:[%s6638_s12 + $0xe8] sm:$0xff] }
 0x129   :  { %2460 = vperm.xlu1 %4436, %v2318_v3   ;;  %v2319_v3 = vld [vmem:[%s6638_s12 + $0xe0] sm:$0xff] }
 0x12a   :  { %2455 = vperm.xlu0 %4435, %v2317_v7   ;;  %v5185_v7 = vpop.permute.xlu1 %1411 }
 0x12b   :  { %6679 = vst [vmem:[#allocation14_spill] sm:$0xff] %v5185_v7  ;;  %v2322_v7 = vld [vmem:[%s6638_s12 + $0xf8] sm:$0xff] }
 0x12d   :  { %2380 = vperm.xlu1 %4436, %v2302_v44   ;;  %v2303_v44 = vld [vmem:[%s6638_s12 + $0x60] sm:$0xff] }
 0x12e   :  { %2375 = vperm.xlu0 %4435, %v2301_v47   ;;  %v5193_v47 = vpop.permute.xlu0 %1416  ;;  %v5195_v55 = vpop.permute.xlu1 %1421 }
 0x12f   :  { %6680 = vst [vmem:[#allocation15_spill] sm:$0xff] %v5193_v47  ;;  %6681 = vst [vmem:[#allocation16_spill] sm:$0xff] %v5195_v55  ;;  %v2306_v47 = vld [vmem:[%s6638_s12 + $0x78] sm:$0xff]  ;;  %v2998_v55 = vld [vmem:[%s6639_s14 + $0x8] sm:$0xff] }
 0x131   :  { %2470 = vperm.xlu1 %4436, %v2320_v14   ;;  %v2321_v14 = vld [vmem:[%s6638_s12 + $0xf0] sm:$0xff] }
 0x132   :  { %2465 = vperm.xlu0 %4435, %v2319_v3   ;;  %v5203_v3 = vpop.permute.xlu0 %1426 }
 0x133   :  { %6682 = vst [vmem:[#allocation17_spill] sm:$0xff] %v5203_v3 }
 0x135   :  { %2390 = vperm.xlu1 %4436, %v2304_v15   ;;  %v2305_v15 = vld [vmem:[%s6638_s12 + $0x70] sm:$0xff] }
 0x136   :  { %2385 = vperm.xlu0 %4435, %v2303_v44   ;;  %v5211_v44 = vpop.permute.xlu1 %1431 }
 0x137   :  { %6683 = vst [vmem:[#allocation18_spill] sm:$0xff] %v5211_v44  ;;  %v3000_v44 = vld [vmem:[%s6639_s14 + $0x18] sm:$0xff] }
 0x139   :  { %2480 = vperm.xlu1 %4436, %v2322_v7   ;;  %v2997_v7 = vld [vmem:[%s6639_s14] sm:$0xff] }
 0x13a   :  { %2475 = vperm.xlu0 %4435, %v2321_v14   ;;  %v5219_v14 = vpop.permute.xlu0 %1436  ;;  %v5221_v3 = vpop.permute.xlu1 %1441 }
 0x13b   :  { %6684 = vst [vmem:[#allocation19_spill] sm:$0xff] %v5219_v14  ;;  %6685 = vst [vmem:[#allocation20_spill] sm:$0xff] %v5221_v3  ;;  %v3002_v14 = vld [vmem:[%s6639_s14 + $0x28] sm:$0xff]  ;;  %v3004_v3 = vld [vmem:[%s6639_s14 + $0x38] sm:$0xff] }
 0x13d   :  { %2400 = vperm.xlu1 %4436, %v2306_v47   ;;  %v2999_v47 = vld [vmem:[%s6639_s14 + $0x10] sm:$0xff] }
 0x13e   :  { %2395 = vperm.xlu0 %4435, %v2305_v15   ;;  %v5229_v15 = vpop.permute.xlu0 %1446 }
 0x13f   :  { %6686 = vst [vmem:[#allocation21_spill] sm:$0xff] %v5229_v15 }
 0x141   :  { %3020 = vperm.xlu1 %4436, %v2998_v55   ;;  %v3001_v55 = vld [vmem:[%s6639_s14 + $0x20] sm:$0xff] }
 0x142   :  { %3015 = vperm.xlu0 %4435, %v2997_v7   ;;  %v5237_v7 = vpop.permute.xlu1 %1451 }
 0x143   :  { %6687 = vst [vmem:[#allocation22_spill] sm:$0xff] %v5237_v7  ;;  %v3006_v7 = vld [vmem:[%s6639_s14 + $0x48] sm:$0xff] }
 0x145   :  { %3030 = vperm.xlu1 %4436, %v3000_v44   ;;  %v3003_v44 = vld [vmem:[%s6639_s14 + $0x30] sm:$0xff] }
 0x146   :  { %3025 = vperm.xlu0 %4435, %v2999_v47   ;;  %v5245_v47 = vpop.permute.xlu0 %1456  ;;  %v5247_v15 = vpop.permute.xlu1 %1461 }
 0x147   :  { %6688 = vst [vmem:[#allocation23_spill] sm:$0xff] %v5245_v47  ;;  %6689 = vst [vmem:[#allocation24_spill] sm:$0xff] %v5247_v15  ;;  %v3008_v47 = vld [vmem:[%s6639_s14 + $0x58] sm:$0xff]  ;;  %v3010_v15 = vld [vmem:[%s6639_s14 + $0x68] sm:$0xff] }
 0x149   :  { %3040 = vperm.xlu1 %4436, %v3002_v14   ;;  %v3005_v14 = vld [vmem:[%s6639_s14 + $0x40] sm:$0xff] }
 0x14a   :  { %3035 = vperm.xlu0 %4435, %v3001_v55   ;;  %v5255_v55 = vpop.permute.xlu0 %1466 }
 0x14b   :  { %6690 = vst [vmem:[#allocation25_spill] sm:$0xff] %v5255_v55  ;;  %v399_v55 = vld [vmem:[%s6640_s5] sm:$0xff] }
 0x14c   :  { %3887 = vmatprep.mubr.msk.f32.mxu0 %vm511_vm3, %v399_v55  ;;  %v3265_v55 = vld [vmem:[%s6641_s16 + $0x18] sm:$0xff] }
 0x14d   :  { %3050 = vperm.xlu1 %4436, %v3004_v3   ;;  %v3007_v3 = vld [vmem:[%s6639_s14 + $0x50] sm:$0xff] }
 0x14e   :  { %3045 = vperm.xlu0 %4435, %v3003_v44   ;;  %v5263_v44 = vpop.permute.xlu1 %1471 }
 0x14f   :  { %6691 = vst [vmem:[#allocation26_spill] sm:$0xff] %v5263_v44  ;;  %v3556_v44 = vld [vmem:[#allocation2] sm:$0x1] }
 0x151   :  { %3060 = vperm.xlu1 %4436, %v3006_v7   ;;  %v3009_v7 = vld [vmem:[%s6639_s14 + $0x60] sm:$0xff] }
 0x152   :  { %3055 = vperm.xlu0 %4435, %v3005_v14   ;;  %v5271_v14 = vpop.permute.xlu0 %1476  ;;  %v5276_v9 = vpop.permute.xlu1 %1481 }
 0x153   :  { %6692 = vst [vmem:[#allocation27_spill] sm:$0xff] %v5271_v14  ;;  %6693 = vst [vmem:[#allocation28_spill] sm:$0xff] %v5276_v9  ;;  %v3263_v9 = vld [vmem:[%s6641_s16 + $0x8] sm:$0xff] }
 0x155   :  { %3070 = vperm.xlu1 %4436, %v3008_v47   ;;  %v3012_v47 = vld [vmem:[%s6639_s14 + $0x78] sm:$0xff] }
 0x156   :  { %3065 = vperm.xlu0 %4435, %v3007_v3   ;;  %v3011_v3 = vld [vmem:[%s6639_s14 + $0x70] sm:$0xff]  ;;  %v5285_v14 = vpop.permute.xlu0 %1486 }
 0x157   :  { %6694 = vst [vmem:[#allocation29_spill] sm:$0xff] %v5285_v14 }
 0x159   :  { %3080 = vperm.xlu1 %4436, %v3010_v15   ;;  %v3262_v15 = vld [vmem:[%s6641_s16] sm:$0xff] }
 0x15a   :  { %3075 = vperm.xlu0 %4435, %v3009_v7   ;;  %v5293_v7 = vpop.permute.xlu1 %1491 }
 0x15b   :  { %6695 = vst [vmem:[#allocation30_spill] sm:$0xff] %v5293_v7  ;;  %v3267_v7 = vld [vmem:[%s6641_s16 + $0x28] sm:$0xff] }
 0x15d   :  { %3090 = vperm.xlu1 %4436, %v3012_v47   ;;  %v3264_v47 = vld [vmem:[%s6641_s16 + $0x10] sm:$0xff] }
 0x15e   :  { %3085 = vperm.xlu0 %4435, %v3011_v3   ;;  %v5301_v3 = vpop.permute.xlu0 %1496  ;;  %v5303_v14 = vpop.permute.xlu1 %1501 }
 0x15f   :  { %6696 = vst [vmem:[#allocation31_spill] sm:$0xff] %v5301_v3  ;;  %6697 = vst [vmem:[#allocation32_spill] sm:$0xff] %v5303_v14  ;;  %v3269_v3 = vld [vmem:[%s6641_s16 + $0x38] sm:$0xff]  ;;  %v3428_v14 = vld [vmem:[%s6642_s18 + $0x8] sm:$0xff] }
 0x161   :  { %3277 = vperm.xlu1 %4436, %v3263_v9   ;;  %v3266_v9 = vld [vmem:[%s6641_s16 + $0x20] sm:$0xff] }
 0x162   :  { %3272 = vperm.xlu0 %4435, %v3262_v15   ;;  %v5311_v15 = vpop.permute.xlu0 %1506 }
 0x163   :  { %6698 = vst [vmem:[#allocation33_spill] sm:$0xff] %v5311_v15 }
 0x165   :  { %3287 = vperm.xlu1 %4436, %v3265_v55   ;;  %v3268_v55 = vld [vmem:[%s6641_s16 + $0x30] sm:$0xff] }
 0x166   :  { %3282 = vperm.xlu0 %4435, %v3264_v47   ;;  %v5319_v47 = vpop.permute.xlu1 %1511 }
 0x167   :  { %6699 = vst [vmem:[#allocation34_spill] sm:$0xff] %v5319_v47  ;;  %v3430_v47 = vld [vmem:[%s6642_s18 + $0x18] sm:$0xff] }
 0x169   :  { %3297 = vperm.xlu1 %4436, %v3267_v7   ;;  %v3427_v7 = vld [vmem:[%s6642_s18] sm:$0xff] }
 0x16a   :  { %3292 = vperm.xlu0 %4435, %v3266_v9   ;;  %v5327_v9 = vpop.permute.xlu0 %1516  ;;  %v5329_v15 = vpop.permute.xlu1 %1521 }
 0x16b   :  { %6700 = vst [vmem:[#allocation35_spill] sm:$0xff] %v5327_v9  ;;  %6701 = vst [vmem:[#allocation36_spill] sm:$0xff] %v5329_v15  ;;  %v3553_v9 = vld [vmem:[%s6643_s19 + $0x8] sm:$0xff]  ;;  %v3555_v15 = vld [vmem:[%s6643_s19 + $0x18] sm:$0xff] }
 0x16d   :  { %3307 = vperm.xlu1 %4436, %v3269_v3   ;;  %v3429_v3 = vld [vmem:[%s6642_s18 + $0x10] sm:$0xff] }
 0x16e   :  { %3302 = vperm.xlu0 %4435, %v3268_v55   ;;  %v5337_v55 = vpop.permute.xlu0 %1526 }
 0x16f   :  { %6702 = vst [vmem:[#allocation37_spill] sm:$0xff] %v5337_v55 }
 0x171   :  { %3438 = vperm.xlu1 %4436, %v3428_v14   ;;  %v3552_v14 = vld [vmem:[%s6643_s19] sm:$0xff] }
 0x172   :  { %3433 = vperm.xlu0 %4435, %v3427_v7   ;;  %v5345_v7 = vpop.permute.xlu1 %1531 }
 0x173   :  { %6703 = vst [vmem:[#allocation38_spill] sm:$0xff] %v5345_v7 }
 0x175   :  { %3448 = vperm.xlu1 %4436, %v3430_v47   ;;  %v3554_v47 = vld [vmem:[%s6643_s19 + $0x10] sm:$0xff] }
 0x176   :  { %3443 = vperm.xlu0 %4435, %v3429_v3   ;;  %v5353_v3 = vpop.permute.xlu0 %1536  ;;  %v5355_v55 = vpop.permute.xlu1 %1541 }
 0x177   :  { %6704 = vst [vmem:[#allocation39_spill] sm:$0xff] %v5353_v3  ;;  %6705 = vst [vmem:[#allocation40_spill] sm:$0xff] %v5355_v55 }
 0x179   :  { %3564 = vperm.xlu1 %4436, %v3553_v9  }
 0x17a   :  { %3559 = vperm.xlu0 %4435, %v3552_v14   ;;  %v5357_v54 = vpop.permute.xlu0 %1546 }
 0x17b   :  { %6706 = vst [vmem:[#allocation41_spill] sm:$0xff] %v5357_v54 }
 0x17d   :  { %3574 = vperm.xlu1 %4436, %v3555_v15  }
 0x17e   :  { %3569 = vperm.xlu0 %4435, %v3554_v47  }
 0x182   :  { %3592 = vperm.xlu0 %4435, %v3556_v44  }
 0x1c4   :  { %v3861_v9 = vpop.f32.mrb[4].mxu1 }
 0x1c5   :  { %v358_v14 = vadd.f32 %v3861_v9, %v4792_v17  ;;  %v352_v7 = vpop.f32.mrb[5].mxu1 }
 0x1c6   :  { %v353_v1 = vadd.f32 %v352_v7, %v4794_v18 }
 0x1c7   :  { %v392_v32 = vmax.f32 %v358_v14, 0.0  ;;  %v408_v14 = vld [vmem:[%s6640_s5 + $0x48] sm:$0xff] }
 0x1c8   :  { %v391_v35 = vmax.f32 %v353_v1, 0.0  ;;  %v3864_v10 = vpop.f32.mrb[6].mxu1 }
 0x1c9   :  { %v368_v13 = vadd.f32 %v3864_v10, %v4802_v21  ;;  %v362_v3 = vpop.f32.mrb[7].mxu1 }
 0x1ca   :  { %v363_v55 = vadd.f32 %v362_v3, %v4804_v22  ;;  %v4065_v15 = vpack.c.bf16 %v392_v32, %v391_v35  ;;  %v407_v3 = vld [vmem:[%s6640_s5 + $0x40] sm:$0xff] }
 0x1cb   :  { %v394_v47 = vmax.f32 %v368_v13, 0.0 }
 0x1cc   :  { %v393_v57 = vmax.f32 %v363_v55, 0.0  ;;  %v3867_v58 = vpop.f32.mrb[8].mxu1  ;;  %4066 = vmatprep.subr.bf16.mxu0 %v4065_v15  ;;  %v406_v55 = vld [vmem:[%s6640_s5 + $0x38] sm:$0xff] }
 0x1cd   :  { %v378_v44 = vadd.f32 %v3867_v58, %v4812_v25  ;;  %v372_v54 = vpop.f32.mrb[9].mxu1  ;;  %4068 = vmatpush3.bf16.msra.mxu0 %v4065_v15  ;;  %v404_v58 = vld [vmem:[%s6640_s5 + $0x28] sm:$0xff]  ;;  %v409_v15 = vld [vmem:[%s6640_s5 + $0x50] sm:$0xff] }
 0x1ce   :  { %v4069_v17 = vpack.c.bf16 %v394_v47, %v393_v57  ;;  %v373_v18 = vadd.f32 %v372_v54, %v4814_v26  ;;  %v400_v26 = vld [vmem:[%s6640_s5 + $0x8] sm:$0xff]  ;;  %v403_v57 = vld [vmem:[%s6640_s5 + $0x20] sm:$0xff]  ;;  %v405_v54 = vld [vmem:[%s6640_s5 + $0x30] sm:$0xff] }
 0x1cf   :  { %v396_v7 = vmax.f32 %v378_v44, 0.0  ;;  %v410_v47 = vld [vmem:[%s6640_s5 + $0x58] sm:$0xff]  ;;  %v411_v44 = vld [vmem:[%s6640_s5 + $0x60] sm:$0xff] }
 0x1d0   :  { %v395_v1 = vmax.f32 %v373_v18, 0.0  ;;  %v3870_v9 = vpop.f32.mrb[10].mxu1  ;;  %4070 = vmatprep.subr.bf16.mxu0 %v4069_v17  ;;  %v413_v18 = vld [vmem:[%s6640_s5 + $0x70] sm:$0xff] }
 0x1d1   :  { %v388_v21 = vadd.f32 %v3870_v9, %v4822_v29  ;;  %v382_v10 = vpop.f32.mrb[11].mxu1  ;;  %4072 = vmatpush3.bf16.msra.mxu0 %v4069_v17  ;;  %v401_v29 = vld [vmem:[%s6640_s5 + $0x10] sm:$0xff]  ;;  %v412_v17 = vld [vmem:[%s6640_s5 + $0x68] sm:$0xff] }
 0x1d2   :  { %v4073_v22 = vpack.c.bf16 %v396_v7, %v395_v1  ;;  %v383_v13 = vadd.f32 %v382_v10, %v4824_v30  ;;  %v402_v30 = vld [vmem:[%s6640_s5 + $0x18] sm:$0xff]  ;;  %v721_v1 = vld [vmem:[%s6644_s7] sm:$0xff] }
 0x1d3   :  { %v398_v32 = vmax.f32 %v388_v21, 0.0  ;;  %v414_v7 = vld [vmem:[%s6640_s5 + $0x78] sm:$0xff]  ;;  %3943 = vmatprep.mubr.f32.mxu1 %v721_v1 }
 0x1d4   :  { %v397_v35 = vmax.f32 %v383_v13, 0.0  ;;  %4074 = vmatprep.subr.bf16.mxu0 %v4073_v22 }
 0x1d5   :  { %4076 = vmatpush3.bf16.msra.mxu0 %v4073_v22 }
 0x1d6   :  { %v4077_v25 = vpack.c.bf16 %v398_v32, %v397_v35 }
 0x1d8   :  { %4078 = vmatprep.subr.bf16.mxu0 %v4077_v25 }
 0x1d9   :  { %4080 = vmatpush3.bf16.msra.mxu0 %v4077_v25 }
 0x1dc   :  { %3888 = vmatmul.mubr.msk.f32.vlgmr.msra.gmra.mrb[0].mxu0 %vm511_vm3, %v400_v26 }
 0x1dd   :  { %3890 = vmatprep.mubr.msk.f32.mxu0 %vm511_vm3, %v401_v29 }
 0x1e0   :  { %3891 = vmatmul.mubr.msk.f32.gmra.mrb[2].mxu0 %vm511_vm3, %v402_v30 }
 0x1e1   :  { %3893 = vmatprep.mubr.msk.f32.mxu0 %vm511_vm3, %v403_v57 }
 0x1e4   :  { %3894 = vmatmul.mubr.msk.f32.gmra.mrb[4].mxu0 %vm511_vm3, %v404_v58 }
 0x1e5   :  { %3896 = vmatprep.mubr.msk.f32.mxu0 %vm511_vm3, %v405_v54 }
 0x1e8   :  { %3897 = vmatmul.mubr.msk.f32.gmra.mrb[6].mxu0 %vm511_vm3, %v406_v55 }
 0x1e9   :  { %3899 = vmatprep.mubr.msk.f32.mxu0 %vm511_vm3, %v407_v3 }
 0x1ec   :  { %3900 = vmatmul.mubr.msk.f32.gmra.mrb[8].mxu0 %vm511_vm3, %v408_v14 }
 0x1ed   :  { %3902 = vmatprep.mubr.msk.f32.mxu0 %vm511_vm3, %v409_v15 }
 0x1f0   :  { %3903 = vmatmul.mubr.msk.f32.gmra.mrb[10].mxu0 %vm511_vm3, %v410_v47 }
 0x1f1   :  { %3905 = vmatprep.mubr.msk.f32.mxu0 %vm511_vm3, %v411_v44 }
 0x1f4   :  { %3906 = vmatmul.mubr.msk.f32.gmra.mrb[12].mxu0 %vm511_vm3, %v412_v17 }
 0x1f5   :  { %3908 = vmatprep.mubr.msk.f32.mxu0 %vm511_vm3, %v413_v18 }
 0x1f8   :  { %3909 = vmatmul.mubr.msk.f32.gmra.mrb[14].mxu0 %vm511_vm3, %v414_v7 }
 0x2af   :  { %v3889_v9 = vpop.f32.mrb[0].mxu0 }
 0x2b0   :  { %v632_v21 = vadd.f32 %v3889_v9, %v4832_v33  ;;  %v626_v10 = vpop.f32.mrb[1].mxu0 }
 0x2b1   :  { %v627_v22 = vadd.f32 %v626_v10, %v4834_v34 }
 0x2b2   :  { %v706_v13 = vmax.f32 %v632_v21, 0.0 }
 0x2b3   :  { %v705_v32 = vmax.f32 %v627_v22, 0.0  ;;  %v3892_v35 = vpop.f32.mrb[2].mxu0 }
 0x2b4   :  { %v642_v25 = vadd.f32 %v3892_v35, %v4842_v37  ;;  %v636_v26 = vpop.f32.mrb[3].mxu0 }
 0x2b5   :  { %v4081_v29 = vpack.c.bf16 %v706_v13, %v705_v32  ;;  %v637_v30 = vadd.f32 %v636_v26, %v4844_v38 }
 0x2b6   :  { %v708_v57 = vmax.f32 %v642_v25, 0.0 }
 0x2b7   :  { %v707_v58 = vmax.f32 %v637_v30, 0.0  ;;  %v3895_v54 = vpop.f32.mrb[4].mxu0  ;;  %4082 = vmatprep.subr.bf16.mxu1 %v4081_v29 }
 0x2b8   :  { %v652_v55 = vadd.f32 %v3895_v54, %v4852_v41  ;;  %v646_v3 = vpop.f32.mrb[5].mxu0  ;;  %4084 = vmatpush3.bf16.msra.mxu1 %v4081_v29 }
 0x2b9   :  { %v4085_v33 = vpack.c.bf16 %v708_v57, %v707_v58  ;;  %v647_v34 = vadd.f32 %v646_v3, %v4854_v42 }
 0x2ba   :  { %v710_v14 = vmax.f32 %v652_v55, 0.0 }
 0x2bb   :  { %v709_v15 = vmax.f32 %v647_v34, 0.0  ;;  %v3898_v47 = vpop.f32.mrb[6].mxu0  ;;  %4086 = vmatprep.subr.bf16.mxu1 %v4085_v33 }
 0x2bc   :  { %v662_v37 = vadd.f32 %v3898_v47, %v4862_v45  ;;  %v656_v44 = vpop.f32.mrb[7].mxu0  ;;  %4088 = vmatpush3.bf16.msra.mxu1 %v4085_v33  ;;  %v726_v47 = vld [vmem:[%s6644_s7 + $0x28] sm:$0xff] }
 0x2bd   :  { %v4089_v38 = vpack.c.bf16 %v710_v14, %v709_v15  ;;  %v657_v17 = vadd.f32 %v656_v44, %v4864_v46  ;;  %v725_v15 = vld [vmem:[%s6644_s7 + $0x20] sm:$0xff]  ;;  %v728_v44 = vld [vmem:[%s6644_s7 + $0x38] sm:$0xff] }
 0x2be   :  { %v712_v18 = vmax.f32 %v662_v37, 0.0  ;;  %v727_v37 = vld [vmem:[%s6644_s7 + $0x30] sm:$0xff] }
 0x2bf   :  { %v711_v7 = vmax.f32 %v657_v17, 0.0  ;;  %v3901_v1 = vpop.f32.mrb[8].mxu0  ;;  %4090 = vmatprep.subr.bf16.mxu1 %v4089_v38  ;;  %v730_v17 = vld [vmem:[%s6644_s7 + $0x48] sm:$0xff] }
 0x2c0   :  { %v672_v41 = vadd.f32 %v3901_v1, %v4874_v50  ;;  %v666_v9 = vpop.f32.mrb[9].mxu0  ;;  %4092 = vmatpush3.bf16.msra.mxu1 %v4089_v38  ;;  %v729_v38 = vld [vmem:[%s6644_s7 + $0x40] sm:$0xff] }
 0x2c1   :  { %v4093_v42 = vpack.c.bf16 %v712_v18, %v711_v7  ;;  %v667_v21 = vadd.f32 %v666_v9, %v4872_v49  ;;  %v731_v18 = vld [vmem:[%s6644_s7 + $0x50] sm:$0xff]  ;;  %v732_v7 = vld [vmem:[%s6644_s7 + $0x58] sm:$0xff]  ;;  %v733_v1 = vld [vmem:[%s6644_s7 + $0x60] sm:$0xff] }
 0x2c2   :  { %v714_v10 = vmax.f32 %v672_v41, 0.0  ;;  %v734_v41 = vld [vmem:[%s6644_s7 + $0x68] sm:$0xff]  ;;  %v735_v9 = vld [vmem:[%s6644_s7 + $0x70] sm:$0xff] }
 0x2c3   :  { %v713_v22 = vmax.f32 %v667_v21, 0.0  ;;  %v3904_v13 = vpop.f32.mrb[10].mxu0  ;;  %4094 = vmatprep.subr.bf16.mxu1 %v4093_v42  ;;  %v737_v21 = vld [vmem:[%s6644_s7 + $0x80] sm:$0xff] }
 0x2c4   :  { %v682_v45 = vadd.f32 %v3904_v13, %v4890_v56  ;;  %v676_v32 = vpop.f32.mrb[11].mxu0  ;;  %4096 = vmatpush3.bf16.msra.mxu1 %v4093_v42  ;;  %v736_v42 = vld [vmem:[%s6644_s7 + $0x78] sm:$0xff] }
 0x2c5   :  { %v4097_v46 = vpack.c.bf16 %v714_v10, %v713_v22  ;;  %v677_v35 = vadd.f32 %v676_v32, %v4882_v53  ;;  %v738_v10 = vld [vmem:[%s6644_s7 + $0x88] sm:$0xff]  ;;  %v739_v22 = vld [vmem:[%s6644_s7 + $0x90] sm:$0xff]  ;;  %v740_v13 = vld [vmem:[%s6644_s7 + $0x98] sm:$0xff] }
 0x2c6   :  { %v716_v25 = vmax.f32 %v682_v45, 0.0  ;;  %v741_v45 = vld [vmem:[%s6644_s7 + $0xa0] sm:$0xff]  ;;  %v742_v32 = vld [vmem:[%s6644_s7 + $0xa8] sm:$0xff] }
 0x2c7   :  { %v715_v26 = vmax.f32 %v677_v35, 0.0  ;;  %v3907_v29 = vpop.f32.mrb[12].mxu0  ;;  %4098 = vmatprep.subr.bf16.mxu1 %v4097_v46  ;;  %v744_v35 = vld [vmem:[%s6644_s7 + $0xb8] sm:$0xff] }
 0x2c8   :  { %v692_v50 = vadd.f32 %v3907_v29, %v4900_v60  ;;  %v686_v30 = vpop.f32.mrb[13].mxu0  ;;  %4100 = vmatpush3.bf16.msra.mxu1 %v4097_v46  ;;  %v743_v46 = vld [vmem:[%s6644_s7 + $0xb0] sm:$0xff] }
 0x2c9   :  { %v4101_v49 = vpack.c.bf16 %v716_v25, %v715_v26  ;;  %v687_v57 = vadd.f32 %v686_v30, %v4898_v59  ;;  %v722_v59 = vld [vmem:[%s6644_s7 + $0x8] sm:$0xff]  ;;  %v745_v25 = vld [vmem:[%s6644_s7 + $0xc0] sm:$0xff]  ;;  %v747_v29 = vld [vmem:[%s6644_s7 + $0xd0] sm:$0xff] }
 0x2ca   :  { %v718_v58 = vmax.f32 %v692_v50, 0.0  ;;  %v746_v26 = vld [vmem:[%s6644_s7 + $0xc8] sm:$0xff]  ;;  %v748_v50 = vld [vmem:[%s6644_s7 + $0xd8] sm:$0xff]  ;;  %v749_v30 = vld [vmem:[%s6644_s7 + $0xe0] sm:$0xff] }
 0x2cb   :  { %v717_v54 = vmax.f32 %v687_v57, 0.0  ;;  %v3910_v55 = vpop.f32.mrb[14].mxu0  ;;  %4102 = vmatprep.subr.bf16.mxu1 %v4101_v49  ;;  %v751_v57 = vld [vmem:[%s6644_s7 + $0xf0] sm:$0xff] }
 0x2cc   :  { %v702_v56 = vadd.f32 %v3910_v55, %v4916_v2  ;;  %v696_v3 = vpop.f32.mrb[15].mxu0  ;;  %4104 = vmatpush3.bf16.msra.mxu1 %v4101_v49  ;;  %v723_v2 = vld [vmem:[%s6644_s7 + $0x10] sm:$0xff]  ;;  %v750_v49 = vld [vmem:[%s6644_s7 + $0xe8] sm:$0xff] }
 0x2cd   :  { %v4105_v53 = vpack.c.bf16 %v718_v58, %v717_v54  ;;  %v697_v33 = vadd.f32 %v696_v3, %v4908_v63  ;;  %v724_v63 = vld [vmem:[%s6644_s7 + $0x18] sm:$0xff]  ;;  %v4438_v54 = vmov 0.0|0.0   ;;  %v1203_v55 = vld [vmem:[%s6645_s9 + $0x8] sm:$0xff] }
 0x2ce   :  { %v720_v34 = vmax.f32 %v702_v56, 0.0  ;;  %v752_v58 = vld [vmem:[%s6644_s7 + $0xf8] sm:$0xff]  ;;  %4113 = vmatprep.subr.bf16.mxu0 %v4438_v54  ;;  %1778 = vmatprep.mubr.f32.mxu0 %v1203_v55 }
 0x2cf   :  { %v719_v14 = vmax.f32 %v697_v33, 0.0  ;;  %4106 = vmatprep.subr.bf16.mxu1 %v4105_v53 }
 0x2d0   :  { %4108 = vmatpush3.bf16.msra.mxu1 %v4105_v53 }
 0x2d1   :  { %v4109_v60 = vpack.c.bf16 %v720_v34, %v719_v14 }
 0x2d3   :  { %4110 = vmatprep.subr.bf16.mxu1 %v4109_v60 }
 0x2d4   :  { %4112 = vmatpush3.bf16.msra.mxu1 %v4109_v60 }
 0x2d5   :  { %4161 = vmatprep.subr.bf16.mxu1 %v4438_v54 }
 0x2d7   :  { %3944 = vmatmul.mubr.f32.vlgmr.msra.gmra.mrb[12].mxu1 %v722_v59 }
 0x2d8   :  { %3946 = vmatprep.mubr.f32.mxu1 %v723_v2 }
 0x2db   :  { %3947 = vmatmul.mubr.f32.gmra.mrb[14].mxu1 %v724_v63 }
 0x2dc   :  { %3949 = vmatprep.mubr.f32.mxu1 %v725_v15 }
 0x2df   :  { %3950 = vmatmul.mubr.f32.gmra.mrb[16].mxu1 %v726_v47 }
 0x2e0   :  { %3952 = vmatprep.mubr.f32.mxu1 %v727_v37 }
 0x2e3   :  { %3953 = vmatmul.mubr.f32.gmra.mrb[18].mxu1 %v728_v44 }
 0x2e4   :  { %3955 = vmatprep.mubr.f32.mxu1 %v729_v38 }
 0x2e7   :  { %3956 = vmatmul.mubr.f32.gmra.mrb[20].mxu1 %v730_v17 }
 0x2e8   :  { %3958 = vmatprep.mubr.f32.mxu1 %v731_v18 }
 0x2eb   :  { %3959 = vmatmul.mubr.f32.gmra.mrb[22].mxu1 %v732_v7 }
 0x2ec   :  { %3961 = vmatprep.mubr.f32.mxu1 %v733_v1 }
 0x2ef   :  { %3962 = vmatmul.mubr.f32.gmra.mrb[24].mxu1 %v734_v41 }
 0x2f0   :  { %3964 = vmatprep.mubr.f32.mxu1 %v735_v9 }
 0x2f3   :  { %3965 = vmatmul.mubr.f32.gmra.mrb[26].mxu1 %v736_v42 }
 0x2f4   :  { %3967 = vmatprep.mubr.f32.mxu1 %v737_v21 }
 0x2f7   :  { %3968 = vmatmul.mubr.f32.gmra.mrb[28].mxu1 %v738_v10 }
 0x2f8   :  { %3970 = vmatprep.mubr.f32.mxu1 %v739_v22 }
 0x2fb   :  { %3971 = vmatmul.mubr.f32.gmra.mrb[30].mxu1 %v740_v13 }
 0x2fc   :  { %3973 = vmatprep.mubr.f32.mxu1 %v741_v45 }
 0x2ff   :  { %3974 = vmatmul.mubr.f32.gmra.mrb[32].mxu1 %v742_v32 }
 0x300   :  { %3976 = vmatprep.mubr.f32.mxu1 %v743_v46 }
 0x303   :  { %3977 = vmatmul.mubr.f32.gmra.mrb[34].mxu1 %v744_v35 }
 0x304   :  { %3979 = vmatprep.mubr.f32.mxu1 %v745_v25 }
 0x307   :  { %3980 = vmatmul.mubr.f32.gmra.mrb[36].mxu1 %v746_v26 }
 0x308   :  { %3982 = vmatprep.mubr.f32.mxu1 %v747_v29 }
 0x30b   :  { %3983 = vmatmul.mubr.f32.gmra.mrb[38].mxu1 %v748_v50 }
 0x30c   :  { %3985 = vmatprep.mubr.f32.mxu1 %v749_v30 }
 0x30f   :  { %3986 = vmatmul.mubr.f32.gmra.mrb[40].mxu1 %v750_v49 }
 0x310   :  { %3988 = vmatprep.mubr.f32.mxu1 %v751_v57 }
 0x313   :  { %3989 = vmatmul.mubr.f32.gmra.mrb[42].mxu1 %v752_v58 }
 0x3aa   :  { %v3945_v56 = vpop.f32.mrb[12].mxu1 }
 0x3ab   :  { %v1017_v3 = vadd.f32 %v3945_v56, %v4926_v6  ;;  %v1011_v53 = vpop.f32.mrb[13].mxu1 }
 0x3ac   :  { %v1012_v33 = vadd.f32 %v1011_v53, %v4924_v5 }
 0x3ad   :  { %v1171_v34 = vmax.f32 %v1017_v3, 0.0 }
 0x3ae   :  { %v1170_v14 = vmax.f32 %v1012_v33, 0.0  ;;  %v3948_v60 = vpop.f32.mrb[14].mxu1 }
 0x3af   :  { %v1027_v59 = vadd.f32 %v3948_v60, %v4942_v16  ;;  %v1021_v2 = vpop.f32.mrb[15].mxu1 }
 0x3b0   :  { %v4114_v63 = vpack.c.bf16 %v1171_v34, %v1170_v14  ;;  %v1022_v15 = vadd.f32 %v1021_v2, %v4934_v11 }
 0x3b1   :  { %v1173_v47 = vmax.f32 %v1027_v59, 0.0 }
 0x3b2   :  { %v1172_v37 = vmax.f32 %v1022_v15, 0.0  ;;  %v3951_v44 = vpop.f32.mrb[16].mxu1  ;;  %4115 = vmatpush1.bf16.msra.mxu0 %v4114_v63 }
 0x3b3   :  { %v1037_v38 = vadd.f32 %v3951_v44, %v4952_v24  ;;  %v1031_v17 = vpop.f32.mrb[17].mxu1  ;;  %4116 = vmatprep.subr.bf16.mxu0 %v4438_v54 }
 0x3b4   :  { %v4117_v6 = vpack.c.bf16 %v1173_v47, %v1172_v37  ;;  %v1032_v5 = vadd.f32 %v1031_v17, %v4950_v23 }
 0x3b5   :  { %v1175_v18 = vmax.f32 %v1037_v38, 0.0 }
 0x3b6   :  { %v1174_v7 = vmax.f32 %v1032_v5, 0.0  ;;  %v3954_v1 = vpop.f32.mrb[18].mxu1  ;;  %4118 = vmatpush1.bf16.msra.mxu0 %v4117_v6 }
 0x3b7   :  { %v1047_v16 = vadd.f32 %v3954_v1, %v4968_v36  ;;  %v1041_v41 = vpop.f32.mrb[19].mxu1  ;;  %4119 = vmatprep.subr.bf16.mxu0 %v4438_v54 }
 0x3b8   :  { %v4120_v11 = vpack.c.bf16 %v1175_v18, %v1174_v7  ;;  %v1042_v9 = vadd.f32 %v1041_v41, %v4960_v31 }
 0x3b9   :  { %v1177_v42 = vmax.f32 %v1047_v16, 0.0 }
 0x3ba   :  { %v1176_v24 = vmax.f32 %v1042_v9, 0.0  ;;  %v3957_v21 = vpop.f32.mrb[20].mxu1  ;;  %4121 = vmatpush1.bf16.msra.mxu0 %v4120_v11  ;;  %v6707_v9 = vld [vmem:[#allocation4_spill] sm:$0xff] }
 0x3bb   :  { %v1057_v10 = vadd.f32 %v3957_v21, %v4979_v51  ;;  %v1051_v22 = vpop.f32.mrb[21].mxu1  ;;  %4122 = vmatprep.subr.bf16.mxu0 %v4438_v54  ;;  %v6708_v21 = vld [vmem:[#allocation3_spill] sm:$0xff] }
 0x3bc   :  { %v4123_v23 = vpack.c.bf16 %v1177_v42, %v1176_v24  ;;  %v1052_v13 = vadd.f32 %v1051_v22, %v4976_v43 }
 0x3bd   :  { %v1179_v45 = vmax.f32 %v1057_v10, 0.0 }
 0x3be   :  { %v1178_v36 = vmax.f32 %v1052_v13, 0.0  ;;  %v3960_v32 = vpop.f32.mrb[22].mxu1  ;;  %4124 = vmatpush1.bf16.msra.mxu0 %v4123_v23  ;;  %v6709_v13 = vld [vmem:[#allocation6_spill] sm:$0xff] }
 0x3bf   :  { %v1067_v46 = vadd.f32 %v3960_v32, %v4998_v8  ;;  %v1061_v35 = vpop.f32.mrb[23].mxu1  ;;  %4125 = vmatprep.subr.bf16.mxu0 %v4438_v54  ;;  %v6710_v32 = vld [vmem:[#allocation5_spill] sm:$0xff] }
 0x3c0   :  { %v4126_v31 = vpack.c.bf16 %v1179_v45, %v1178_v36  ;;  %v1062_v25 = vadd.f32 %v1061_v35, %v4989_v0 }
 0x3c1   :  { %v1181_v26 = vmax.f32 %v1067_v46, 0.0 }
 0x3c2   :  { %v1180_v51 = vmax.f32 %v1062_v25, 0.0  ;;  %v3963_v29 = vpop.f32.mrb[24].mxu1  ;;  %4127 = vmatpush1.bf16.msra.mxu0 %v4126_v31 }
 0x3c3   :  { %v1077_v50 = vadd.f32 %v3963_v29, %v5011_v27  ;;  %v1071_v30 = vpop.f32.mrb[25].mxu1  ;;  %4128 = vmatprep.subr.bf16.mxu0 %v4438_v54 }
 0x3c4   :  { %v4129_v43 = vpack.c.bf16 %v1181_v26, %v1180_v51  ;;  %v1072_v49 = vadd.f32 %v1071_v30, %v5006_v19  ;;  %v6711_v26 = vld [vmem:[#allocation8_spill] sm:$0xff]  ;;  %v6712_v30 = vld [vmem:[#allocation7_spill] sm:$0xff] }
 0x3c5   :  { %v1183_v57 = vmax.f32 %v1077_v50, 0.0 }
 0x3c6   :  { %v1182_v8 = vmax.f32 %v1072_v49, 0.0  ;;  %v3966_v58 = vpop.f32.mrb[26].mxu1  ;;  %4130 = vmatpush1.bf16.msra.mxu0 %v4129_v43 }
 0x3c7   :  { %v1087_v55 = vadd.f32 %v3966_v58, %v5038_v52  ;;  %v1081_v56 = vpop.f32.mrb[27].mxu1  ;;  %4131 = vmatprep.subr.bf16.mxu0 %v4438_v54  ;;  %v6713_v58 = vld [vmem:[#allocation10_spill] sm:$0xff] }
 0x3c8   :  { %v4132_v0 = vpack.c.bf16 %v1183_v57, %v1182_v8  ;;  %v1082_v3 = vadd.f32 %v1081_v56, %v5027_v40 }
 0x3c9   :  { %v1185_v53 = vmax.f32 %v1087_v55, 0.0 }
 0x3ca   :  { %v1184_v27 = vmax.f32 %v1082_v3, 0.0  ;;  %v3969_v33 = vpop.f32.mrb[28].mxu1  ;;  %4133 = vmatpush1.bf16.msra.mxu0 %v4132_v0  ;;  %v6714_v3 = vld [vmem:[#allocation9_spill] sm:$0xff] }
 0x3cb   :  { %v1097_v34 = vadd.f32 %v3969_v33, %v5061_v62  ;;  %v1091_v14 = vpop.f32.mrb[29].mxu1  ;;  %4134 = vmatprep.subr.bf16.mxu0 %v4438_v54 }
 0x3cc   :  { %v4135_v19 = vpack.c.bf16 %v1185_v53, %v1184_v27  ;;  %v1092_v60 = vadd.f32 %v1091_v14, %v5054_v61  ;;  %v1202_v14 = vld [vmem:[%s6645_s9] sm:$0xff] }
 0x3cd   :  { %v1187_v59 = vmax.f32 %v1097_v34, 0.0 }
 0x3ce   :  { %v1186_v52 = vmax.f32 %v1092_v60, 0.0  ;;  %v3972_v2 = vpop.f32.mrb[30].mxu1  ;;  %4136 = vmatpush1.bf16.msra.mxu0 %v4135_v19  ;;  %v1205_v19 = vld [vmem:[%s6645_s9 + $0x18] sm:$0xff]  ;;  %v1204_v60 = vld [vmem:[%s6645_s9 + $0x10] sm:$0xff] }
 0x3cf   :  { %v1107_v63 = vadd.f32 %v3972_v2, %v5081_v12  ;;  %v1101_v15 = vpop.f32.mrb[31].mxu1  ;;  %4137 = vmatprep.subr.bf16.mxu0 %v4438_v54  ;;  %v1209_v2 = vld [vmem:[%s6645_s9 + $0x38] sm:$0xff] }
 0x3d0   :  { %v4138_v40 = vpack.c.bf16 %v1187_v59, %v1186_v52  ;;  %v1102_v47 = vadd.f32 %v1101_v15, %v5073_v4  ;;  %v1207_v59 = vld [vmem:[%s6645_s9 + $0x28] sm:$0xff]  ;;  %v1206_v52 = vld [vmem:[%s6645_s9 + $0x20] sm:$0xff] }
 0x3d1   :  { %v1189_v37 = vmax.f32 %v1107_v63, 0.0  ;;  %v1208_v63 = vld [vmem:[%s6645_s9 + $0x30] sm:$0xff]  ;;  %v1211_v15 = vld [vmem:[%s6645_s9 + $0x48] sm:$0xff] }
 0x3d2   :  { %v1188_v62 = vmax.f32 %v1102_v47, 0.0  ;;  %v3975_v44 = vpop.f32.mrb[32].mxu1  ;;  %4139 = vmatpush1.bf16.msra.mxu0 %v4138_v40  ;;  %v1210_v40 = vld [vmem:[%s6645_s9 + $0x40] sm:$0xff]  ;;  %v1213_v47 = vld [vmem:[%s6645_s9 + $0x58] sm:$0xff] }
 0x3d3   :  { %v1117_v38 = vadd.f32 %v3975_v44, %v5091_v28  ;;  %v1111_v17 = vpop.f32.mrb[33].mxu1  ;;  %4140 = vmatprep.subr.bf16.mxu0 %v4438_v54  ;;  %v1214_v44 = vld [vmem:[%s6645_s9 + $0x60] sm:$0xff] }
 0x3d4   :  { %v4141_v61 = vpack.c.bf16 %v1189_v37, %v1188_v62  ;;  %v1112_v6 = vadd.f32 %v1111_v17, %v5089_v20  ;;  %v1212_v37 = vld [vmem:[%s6645_s9 + $0x50] sm:$0xff]  ;;  %v1215_v62 = vld [vmem:[%s6645_s9 + $0x68] sm:$0xff] }
 0x3d5   :  { %v1191_v5 = vmax.f32 %v1117_v38, 0.0  ;;  %v1217_v38 = vld [vmem:[%s6645_s9 + $0x78] sm:$0xff]  ;;  %v1216_v17 = vld [vmem:[%s6645_s9 + $0x70] sm:$0xff] }
 0x3d6   :  { %v1190_v12 = vmax.f32 %v1112_v6, 0.0  ;;  %v3978_v18 = vpop.f32.mrb[34].mxu1  ;;  %4142 = vmatpush1.bf16.msra.mxu0 %v4141_v61  ;;  %v1219_v61 = vld [vmem:[%s6645_s9 + $0x88] sm:$0xff]  ;;  %v1218_v6 = vld [vmem:[%s6645_s9 + $0x80] sm:$0xff] }
 0x3d7   :  { %v1127_v7 = vadd.f32 %v3978_v18, %v5107_v48  ;;  %v1121_v1 = vpop.f32.mrb[35].mxu1  ;;  %4143 = vmatprep.subr.bf16.mxu0 %v4438_v54  ;;  %v1223_v18 = vld [vmem:[%s6645_s9 + $0xa8] sm:$0xff] }
 0x3d8   :  { %v4144_v4 = vpack.c.bf16 %v1191_v5, %v1190_v12  ;;  %v1122_v16 = vadd.f32 %v1121_v1, %v5099_v39  ;;  %v1221_v5 = vld [vmem:[%s6645_s9 + $0x98] sm:$0xff]  ;;  %v1220_v12 = vld [vmem:[%s6645_s9 + $0x90] sm:$0xff] }
 0x3d9   :  { %v1193_v41 = vmax.f32 %v1127_v7, 0.0  ;;  %v1222_v7 = vld [vmem:[%s6645_s9 + $0xa0] sm:$0xff]  ;;  %v1225_v1 = vld [vmem:[%s6645_s9 + $0xb8] sm:$0xff] }
 0x3da   :  { %v1192_v28 = vmax.f32 %v1122_v16, 0.0  ;;  %v3981_v11 = vpop.f32.mrb[36].mxu1  ;;  %4145 = vmatpush1.bf16.msra.mxu0 %v4144_v4  ;;  %v1224_v4 = vld [vmem:[%s6645_s9 + $0xb0] sm:$0xff]  ;;  %v1227_v16 = vld [vmem:[%s6645_s9 + $0xc8] sm:$0xff] }
 0x3db   :  { %v1137_v42 = vadd.f32 %v3981_v11, %v6707_v9  ;;  %v1131_v24 = vpop.f32.mrb[37].mxu1  ;;  %4146 = vmatprep.subr.bf16.mxu0 %v4438_v54  ;;  %v1228_v11 = vld [vmem:[%s6645_s9 + $0xd0] sm:$0xff]  ;;  %v1231_v9 = vld [vmem:[%s6645_s9 + $0xe8] sm:$0xff] }
 0x3dc   :  { %v4147_v20 = vpack.c.bf16 %v1193_v41, %v1192_v28  ;;  %v1132_v10 = vadd.f32 %v1131_v24, %v6708_v21  ;;  %v1226_v41 = vld [vmem:[%s6645_s9 + $0xc0] sm:$0xff]  ;;  %v1229_v28 = vld [vmem:[%s6645_s9 + $0xd8] sm:$0xff]  ;;  %v1235_v21 = vld [vmem:[%s6645_s9 + $0x108] sm:$0xff] }
 0x3dd   :  { %v1195_v22 = vmax.f32 %v1137_v42, 0.0  ;;  %v1230_v42 = vld [vmem:[%s6645_s9 + $0xe0] sm:$0xff]  ;;  %v1233_v24 = vld [vmem:[%s6645_s9 + $0xf8] sm:$0xff] }
 0x3de   :  { %v1194_v48 = vmax.f32 %v1132_v10, 0.0  ;;  %v3984_v23 = vpop.f32.mrb[38].mxu1  ;;  %4148 = vmatpush1.bf16.msra.mxu0 %v4147_v20  ;;  %v1232_v20 = vld [vmem:[%s6645_s9 + $0xf0] sm:$0xff]  ;;  %v1234_v10 = vld [vmem:[%s6645_s9 + $0x100] sm:$0xff] }
 0x3df   :  { %v1147_v45 = vadd.f32 %v3984_v23, %v6709_v13  ;;  %v1141_v36 = vpop.f32.mrb[39].mxu1  ;;  %4149 = vmatprep.subr.bf16.mxu0 %v4438_v54  ;;  %v1239_v23 = vld [vmem:[%s6645_s9 + $0x128] sm:$0xff]  ;;  %v1238_v13 = vld [vmem:[%s6645_s9 + $0x120] sm:$0xff] }
 0x3e0   :  { %v4150_v39 = vpack.c.bf16 %v1195_v22, %v1194_v48  ;;  %v1142_v46 = vadd.f32 %v1141_v36, %v6710_v32  ;;  %v1237_v22 = vld [vmem:[%s6645_s9 + $0x118] sm:$0xff]  ;;  %v1236_v48 = vld [vmem:[%s6645_s9 + $0x110] sm:$0xff]  ;;  %v1242_v32 = vld [vmem:[%s6645_s9 + $0x140] sm:$0xff] }
 0x3e1   :  { %v1197_v35 = vmax.f32 %v1147_v45, 0.0  ;;  %v1241_v45 = vld [vmem:[%s6645_s9 + $0x138] sm:$0xff]  ;;  %v1240_v36 = vld [vmem:[%s6645_s9 + $0x130] sm:$0xff] }
 0x3e2   :  { %v1196_v31 = vmax.f32 %v1142_v46, 0.0  ;;  %v3987_v25 = vpop.f32.mrb[40].mxu1  ;;  %4151 = vmatpush1.bf16.msra.mxu0 %v4150_v39  ;;  %v1243_v39 = vld [vmem:[%s6645_s9 + $0x148] sm:$0xff]  ;;  %v1245_v46 = vld [vmem:[%s6645_s9 + $0x158] sm:$0xff] }
 0x3e3   :  { %v1157_v51 = vadd.f32 %v3987_v25, %v6711_v26  ;;  %v1151_v29 = vpop.f32.mrb[41].mxu1  ;;  %4152 = vmatprep.subr.bf16.mxu0 %v4438_v54  ;;  %v1246_v25 = vld [vmem:[%s6645_s9 + $0x160] sm:$0xff]  ;;  %v1249_v26 = vld [vmem:[%s6645_s9 + $0x178] sm:$0xff] }
 0x3e4   :  { %v4153_v50 = vpack.c.bf16 %v1197_v35, %v1196_v31  ;;  %v1152_v43 = vadd.f32 %v1151_v29, %v6712_v30  ;;  %v1244_v35 = vld [vmem:[%s6645_s9 + $0x150] sm:$0xff]  ;;  %v1247_v31 = vld [vmem:[%s6645_s9 + $0x168] sm:$0xff]  ;;  %v1253_v30 = vld [vmem:[%s6645_s9 + $0x198] sm:$0xff] }
 0x3e5   :  { %v1199_v49 = vmax.f32 %v1157_v51, 0.0  ;;  %v1248_v51 = vld [vmem:[%s6645_s9 + $0x170] sm:$0xff]  ;;  %v1251_v29 = vld [vmem:[%s6645_s9 + $0x188] sm:$0xff] }
 0x3e6   :  { %v1198_v57 = vmax.f32 %v1152_v43, 0.0  ;;  %v3990_v8 = vpop.f32.mrb[42].mxu1  ;;  %4154 = vmatpush1.bf16.msra.mxu0 %v4153_v50  ;;  %v1250_v50 = vld [vmem:[%s6645_s9 + $0x180] sm:$0xff]  ;;  %v1252_v43 = vld [vmem:[%s6645_s9 + $0x190] sm:$0xff] }
 0x3e7   :  { %v1167_v55 = vadd.f32 %v3990_v8, %v6713_v58  ;;  %v1161_v56 = vpop.f32.mrb[43].mxu1  ;;  %4155 = vmatprep.subr.bf16.mxu0 %v4438_v54  ;;  %v1257_v8 = vld [vmem:[%s6645_s9 + $0x1b8] sm:$0xff]  ;;  %v1256_v58 = vld [vmem:[%s6645_s9 + $0x1b0] sm:$0xff] }
 0x3e8   :  { %v4156_v0 = vpack.c.bf16 %v1199_v49, %v1198_v57  ;;  %v1162_v53 = vadd.f32 %v1161_v56, %v6714_v3  ;;  %v1255_v49 = vld [vmem:[%s6645_s9 + $0x1a8] sm:$0xff]  ;;  %v1254_v57 = vld [vmem:[%s6645_s9 + $0x1a0] sm:$0xff]  ;;  %v1260_v3 = vld [vmem:[%s6645_s9 + $0x1d0] sm:$0xff] }
 0x3e9   :  { %v1201_v27 = vmax.f32 %v1167_v55, 0.0  ;;  %v1259_v55 = vld [vmem:[%s6645_s9 + $0x1c8] sm:$0xff]  ;;  %v1258_v56 = vld [vmem:[%s6645_s9 + $0x1c0] sm:$0xff] }
 0x3ea   :  { %v1200_v33 = vmax.f32 %v1162_v53, 0.0  ;;  %4157 = vmatpush1.bf16.msra.mxu0 %v4156_v0  ;;  %v1261_v0 = vld [vmem:[%s6645_s9 + $0x1d8] sm:$0xff]  ;;  %v1263_v53 = vld [vmem:[%s6645_s9 + $0x1e8] sm:$0xff] }
 0x3eb   :  { %4158 = vmatprep.subr.bf16.mxu0 %v4438_v54 }
 0x3ec   :  { %v4159_v34 = vpack.c.bf16 %v1201_v27, %v1200_v33  ;;  %v1262_v27 = vld [vmem:[%s6645_s9 + $0x1e0] sm:$0xff]  ;;  %v1265_v33 = vld [vmem:[%s6645_s9 + $0x1f8] sm:$0xff] }
 0x3ee   :  { %4160 = vmatpush1.bf16.msra.mxu0 %v4159_v34  ;;  %v1264_v34 = vld [vmem:[%s6645_s9 + $0x1f0] sm:$0xff] }
 0x3f1   :  { %1779 = vmatmul.mubr.f32.vlgmr.msra.gmra.mrb[16].mxu0 %v1202_v14  ;;  %v1267_v14 = vld [vmem:[%s6645_s9 + $0x208] sm:$0xff] }
 0x3f2   :  { %1783 = vmatprep.mubr.f32.mxu0 %v1205_v19  ;;  %v1266_v19 = vld [vmem:[%s6645_s9 + $0x200] sm:$0xff] }
 0x3f5   :  { %1784 = vmatmul.mubr.f32.gmra.mrb[18].mxu0 %v1204_v60  ;;  %v1269_v60 = vld [vmem:[%s6645_s9 + $0x218] sm:$0xff] }
 0x3f6   :  { %1788 = vmatprep.mubr.f32.mxu0 %v1207_v59  ;;  %v1268_v59 = vld [vmem:[%s6645_s9 + $0x210] sm:$0xff] }
 0x3f9   :  { %1789 = vmatmul.mubr.f32.gmra.mrb[20].mxu0 %v1206_v52  ;;  %v1271_v52 = vld [vmem:[%s6645_s9 + $0x228] sm:$0xff] }
 0x3fa   :  { %1793 = vmatprep.mubr.f32.mxu0 %v1209_v2  ;;  %v1270_v2 = vld [vmem:[%s6645_s9 + $0x220] sm:$0xff] }
 0x3fd   :  { %1794 = vmatmul.mubr.f32.gmra.mrb[22].mxu0 %v1208_v63  ;;  %v1273_v63 = vld [vmem:[%s6645_s9 + $0x238] sm:$0xff] }
 0x3fe   :  { %1798 = vmatprep.mubr.f32.mxu0 %v1211_v15  ;;  %v1272_v15 = vld [vmem:[%s6645_s9 + $0x230] sm:$0xff] }
 0x401   :  { %1799 = vmatmul.mubr.f32.gmra.mrb[24].mxu0 %v1210_v40  ;;  %v1275_v40 = vld [vmem:[%s6645_s9 + $0x248] sm:$0xff] }
 0x402   :  { %1803 = vmatprep.mubr.f32.mxu0 %v1213_v47  ;;  %v1274_v47 = vld [vmem:[%s6645_s9 + $0x240] sm:$0xff] }
 0x405   :  { %1804 = vmatmul.mubr.f32.gmra.mrb[26].mxu0 %v1212_v37  ;;  %v1277_v37 = vld [vmem:[%s6645_s9 + $0x258] sm:$0xff] }
 0x406   :  { %1808 = vmatprep.mubr.f32.mxu0 %v1215_v62  ;;  %v1276_v62 = vld [vmem:[%s6645_s9 + $0x250] sm:$0xff] }
 0x409   :  { %1809 = vmatmul.mubr.f32.gmra.mrb[28].mxu0 %v1214_v44  ;;  %v1279_v44 = vld [vmem:[%s6645_s9 + $0x268] sm:$0xff] }
 0x40a   :  { %1813 = vmatprep.mubr.f32.mxu0 %v1217_v38  ;;  %v1278_v38 = vld [vmem:[%s6645_s9 + $0x260] sm:$0xff] }
 0x40d   :  { %1814 = vmatmul.mubr.f32.gmra.mrb[30].mxu0 %v1216_v17  ;;  %v1281_v17 = vld [vmem:[%s6645_s9 + $0x278] sm:$0xff] }
 0x40e   :  { %1818 = vmatprep.mubr.f32.mxu0 %v1219_v61  ;;  %v1280_v61 = vld [vmem:[%s6645_s9 + $0x270] sm:$0xff] }
 0x411   :  { %1819 = vmatmul.mubr.f32.gmra.mrb[32].mxu0 %v1218_v6  ;;  %v1283_v6 = vld [vmem:[%s6645_s9 + $0x288] sm:$0xff] }
 0x412   :  { %1823 = vmatprep.mubr.f32.mxu0 %v1221_v5  ;;  %v1282_v5 = vld [vmem:[%s6645_s9 + $0x280] sm:$0xff] }
 0x415   :  { %1824 = vmatmul.mubr.f32.gmra.mrb[34].mxu0 %v1220_v12  ;;  %v1285_v12 = vld [vmem:[%s6645_s9 + $0x298] sm:$0xff] }
 0x416   :  { %1828 = vmatprep.mubr.f32.mxu0 %v1223_v18  ;;  %v1284_v18 = vld [vmem:[%s6645_s9 + $0x290] sm:$0xff] }
 0x419   :  { %1829 = vmatmul.mubr.f32.gmra.mrb[36].mxu0 %v1222_v7  ;;  %v1287_v7 = vld [vmem:[%s6645_s9 + $0x2a8] sm:$0xff] }
 0x41a   :  { %1833 = vmatprep.mubr.f32.mxu0 %v1225_v1  ;;  %v1286_v1 = vld [vmem:[%s6645_s9 + $0x2a0] sm:$0xff] }
 0x41d   :  { %1834 = vmatmul.mubr.f32.gmra.mrb[38].mxu0 %v1224_v4  ;;  %v1289_v4 = vld [vmem:[%s6645_s9 + $0x2b8] sm:$0xff] }
 0x41e   :  { %1838 = vmatprep.mubr.f32.mxu0 %v1227_v16  ;;  %v1288_v16 = vld [vmem:[%s6645_s9 + $0x2b0] sm:$0xff] }
 0x421   :  { %1839 = vmatmul.mubr.f32.gmra.mrb[40].mxu0 %v1226_v41  ;;  %v1291_v41 = vld [vmem:[%s6645_s9 + $0x2c8] sm:$0xff] }
 0x422   :  { %1843 = vmatprep.mubr.f32.mxu0 %v1229_v28  ;;  %v1290_v28 = vld [vmem:[%s6645_s9 + $0x2c0] sm:$0xff] }
 0x425   :  { %1844 = vmatmul.mubr.f32.gmra.mrb[42].mxu0 %v1228_v11  ;;  %v1293_v11 = vld [vmem:[%s6645_s9 + $0x2d8] sm:$0xff] }
 0x426   :  { %1848 = vmatprep.mubr.f32.mxu0 %v1231_v9  ;;  %v1292_v9 = vld [vmem:[%s6645_s9 + $0x2d0] sm:$0xff] }
 0x429   :  { %1849 = vmatmul.mubr.f32.gmra.mrb[44].mxu0 %v1230_v42  ;;  %v1295_v42 = vld [vmem:[%s6645_s9 + $0x2e8] sm:$0xff] }
 0x42a   :  { %1853 = vmatprep.mubr.f32.mxu0 %v1233_v24  ;;  %v1294_v24 = vld [vmem:[%s6645_s9 + $0x2e0] sm:$0xff] }
 0x42d   :  { %1854 = vmatmul.mubr.f32.gmra.mrb[46].mxu0 %v1232_v20  ;;  %v1297_v20 = vld [vmem:[%s6645_s9 + $0x2f8] sm:$0xff] }
 0x42e   :  { %1858 = vmatprep.mubr.f32.mxu0 %v1235_v21  ;;  %v1296_v21 = vld [vmem:[%s6645_s9 + $0x2f0] sm:$0xff] }
 0x431   :  { %1859 = vmatmul.mubr.f32.gmra.mrb[48].mxu0 %v1234_v10  ;;  %v1299_v10 = vld [vmem:[%s6645_s9 + $0x308] sm:$0xff] }
 0x432   :  { %1863 = vmatprep.mubr.f32.mxu0 %v1237_v22  ;;  %v1298_v22 = vld [vmem:[%s6645_s9 + $0x300] sm:$0xff] }
 0x435   :  { %1864 = vmatmul.mubr.f32.gmra.mrb[50].mxu0 %v1236_v48  ;;  %v1301_v48 = vld [vmem:[%s6645_s9 + $0x318] sm:$0xff] }
 0x436   :  { %1868 = vmatprep.mubr.f32.mxu0 %v1239_v23  ;;  %v1300_v23 = vld [vmem:[%s6645_s9 + $0x310] sm:$0xff] }
 0x439   :  { %1869 = vmatmul.mubr.f32.gmra.mrb[52].mxu0 %v1238_v13  ;;  %v1303_v13 = vld [vmem:[%s6645_s9 + $0x328] sm:$0xff] }
 0x43a   :  { %1873 = vmatprep.mubr.f32.mxu0 %v1241_v45  ;;  %v1302_v45 = vld [vmem:[%s6645_s9 + $0x320] sm:$0xff] }
 0x43d   :  { %1874 = vmatmul.mubr.f32.gmra.mrb[54].mxu0 %v1240_v36  ;;  %v1305_v36 = vld [vmem:[%s6645_s9 + $0x338] sm:$0xff] }
 0x43e   :  { %1878 = vmatprep.mubr.f32.mxu0 %v1243_v39  ;;  %v1304_v39 = vld [vmem:[%s6645_s9 + $0x330] sm:$0xff] }
 0x441   :  { %1879 = vmatmul.mubr.f32.gmra.mrb[56].mxu0 %v1242_v32  ;;  %v1307_v32 = vld [vmem:[%s6645_s9 + $0x348] sm:$0xff] }
 0x442   :  { %1883 = vmatprep.mubr.f32.mxu0 %v1245_v46  ;;  %v1306_v46 = vld [vmem:[%s6645_s9 + $0x340] sm:$0xff] }
 0x445   :  { %1884 = vmatmul.mubr.f32.gmra.mrb[58].mxu0 %v1244_v35  ;;  %v1309_v35 = vld [vmem:[%s6645_s9 + $0x358] sm:$0xff] }
 0x446   :  { %1888 = vmatprep.mubr.f32.mxu0 %v1247_v31  ;;  %v1308_v31 = vld [vmem:[%s6645_s9 + $0x350] sm:$0xff] }
 0x449   :  { %1889 = vmatmul.mubr.f32.gmra.mrb[60].mxu0 %v1246_v25  ;;  %v1311_v25 = vld [vmem:[%s6645_s9 + $0x368] sm:$0xff] }
 0x44a   :  { %1893 = vmatprep.mubr.f32.mxu0 %v1249_v26 }
 0x44d   :  { %1894 = vmatmul.mubr.f32.gmra.mrb[62].mxu0 %v1248_v51 }
 0x44e   :  { %1898 = vmatprep.mubr.f32.mxu0 %v1251_v29  ;;  %v1310_v29 = vld [vmem:[%s6645_s9 + $0x360] sm:$0xff] }
 0x451   :  { %1899 = vmatmul.mubr.f32.gmra.mrb[64].mxu0 %v1250_v50  ;;  %v6715_v50 = vld [vmem:[#allocation11_spill] sm:$0xff] }
 0x452   :  { %1903 = vmatprep.mubr.f32.mxu0 %v1253_v30 }
 0x455   :  { %1904 = vmatmul.mubr.f32.gmra.mrb[66].mxu0 %v1252_v43  ;;  %v1313_v43 = vld [vmem:[%s6645_s9 + $0x378] sm:$0xff] }
 0x456   :  { %1908 = vmatprep.mubr.f32.mxu0 %v1255_v49 }
 0x459   :  { %1909 = vmatmul.mubr.f32.gmra.mrb[68].mxu0 %v1254_v57  ;;  %v2164_v57 = vld [vmem:[%s6646_s11 + $0x8] sm:$0xff] }
 0x45a   :  { %1913 = vmatprep.mubr.f32.mxu0 %v1257_v8  ;;  %v6716_v8 = vld [vmem:[#allocation12_spill] sm:$0xff]  ;;  %2547 = vmatprep.mubr.f32.mxu1 %v2164_v57 }
 0x45d   :  { %1914 = vmatmul.mubr.f32.gmra.mrb[70].mxu0 %v1256_v58 }
 0x45e   :  { %1918 = vmatprep.mubr.f32.mxu0 %v1259_v55 }
 0x461   :  { %1919 = vmatmul.mubr.f32.gmra.mrb[72].mxu0 %v1258_v56  ;;  %v1312_v56 = vld [vmem:[%s6645_s9 + $0x370] sm:$0xff] }
 0x462   :  { %1923 = vmatprep.mubr.f32.mxu0 %v1261_v0 }
 0x465   :  { %1924 = vmatmul.mubr.f32.gmra.mrb[74].mxu0 %v1260_v3 }
 0x466   :  { %1928 = vmatprep.mubr.f32.mxu0 %v1263_v53  ;;  %v1315_v53 = vld [vmem:[%s6645_s9 + $0x388] sm:$0xff] }
 0x469   :  { %1929 = vmatmul.mubr.f32.gmra.mrb[76].mxu0 %v1262_v27 }
 0x46a   :  { %1933 = vmatprep.mubr.f32.mxu0 %v1265_v33 }
 0x46d   :  { %1934 = vmatmul.mubr.f32.gmra.mrb[78].mxu0 %v1264_v34 }
 0x46e   :  { %1938 = vmatprep.mubr.f32.mxu0 %v1267_v14  ;;  %v1314_v14 = vld [vmem:[%s6645_s9 + $0x380] sm:$0xff] }
 0x471   :  { %1939 = vmatmul.mubr.f32.gmra.mrb[80].mxu0 %v1266_v19  ;;  %v6717_v19 = vld [vmem:[#allocation13_spill] sm:$0xff] }
 0x472   :  { %1943 = vmatprep.mubr.f32.mxu0 %v1269_v60 }
 0x475   :  { %1944 = vmatmul.mubr.f32.gmra.mrb[82].mxu0 %v1268_v59  ;;  %v1317_v59 = vld [vmem:[%s6645_s9 + $0x398] sm:$0xff] }
 0x476   :  { %1948 = vmatprep.mubr.f32.mxu0 %v1271_v52 }
 0x479   :  { %1949 = vmatmul.mubr.f32.gmra.mrb[84].mxu0 %v1270_v2  ;;  %v6718_v2 = vld [vmem:[#allocation14_spill] sm:$0xff] }
 0x47a   :  { %1953 = vmatprep.mubr.f32.mxu0 %v1273_v63 }
 0x47d   :  { %1954 = vmatmul.mubr.f32.gmra.mrb[86].mxu0 %v1272_v15 }
 0x47e   :  { %1958 = vmatprep.mubr.f32.mxu0 %v1275_v40  ;;  %v1316_v40 = vld [vmem:[%s6645_s9 + $0x390] sm:$0xff] }
 0x481   :  { %1959 = vmatmul.mubr.f32.gmra.mrb[88].mxu0 %v1274_v47 }
 0x482   :  { %1963 = vmatprep.mubr.f32.mxu0 %v1277_v37 }
 0x485   :  { %1964 = vmatmul.mubr.f32.gmra.mrb[90].mxu0 %v1276_v62  ;;  %v1319_v62 = vld [vmem:[%s6645_s9 + $0x3a8] sm:$0xff] }
 0x486   :  { %1968 = vmatprep.mubr.f32.mxu0 %v1279_v44 }
 0x489   :  { %1969 = vmatmul.mubr.f32.gmra.mrb[92].mxu0 %v1278_v38 }
 0x48a   :  { %1973 = vmatprep.mubr.f32.mxu0 %v1281_v17 }
 0x48d   :  { %1974 = vmatmul.mubr.f32.gmra.mrb[94].mxu0 %v1280_v61  ;;  %v1318_v61 = vld [vmem:[%s6645_s9 + $0x3a0] sm:$0xff] }
 0x48e   :  { %1978 = vmatprep.mubr.f32.mxu0 %v1283_v6  ;;  %v6719_v6 = vld [vmem:[#allocation15_spill] sm:$0xff] }
 0x491   :  { %1979 = vmatmul.mubr.f32.gmra.mrb[96].mxu0 %v1282_v5 }
 0x492   :  { %1983 = vmatprep.mubr.f32.mxu0 %v1285_v12  ;;  %v1321_v12 = vld [vmem:[%s6645_s9 + $0x3b8] sm:$0xff] }
 0x495   :  { %1984 = vmatmul.mubr.f32.gmra.mrb[98].mxu0 %v1284_v18 }
 0x496   :  { %1988 = vmatprep.mubr.f32.mxu0 %v1287_v7  ;;  %v6720_v7 = vld [vmem:[#allocation16_spill] sm:$0xff] }
 0x499   :  { %1989 = vmatmul.mubr.f32.gmra.mrb[100].mxu0 %v1286_v1 }
 0x49a   :  { %1993 = vmatprep.mubr.f32.mxu0 %v1289_v4 }
 0x49d   :  { %1994 = vmatmul.mubr.f32.gmra.mrb[102].mxu0 %v1288_v16  ;;  %v1320_v16 = vld [vmem:[%s6645_s9 + $0x3b0] sm:$0xff] }
 0x49e   :  { %1998 = vmatprep.mubr.f32.mxu0 %v1291_v41 }
 0x4a1   :  { %1999 = vmatmul.mubr.f32.gmra.mrb[104].mxu0 %v1290_v28 }
 0x4a2   :  { %2003 = vmatprep.mubr.f32.mxu0 %v1293_v11  ;;  %v1323_v11 = vld [vmem:[%s6645_s9 + $0x3c8] sm:$0xff] }
 0x4a5   :  { %2004 = vmatmul.mubr.f32.gmra.mrb[106].mxu0 %v1292_v9 }
 0x4a6   :  { %2008 = vmatprep.mubr.f32.mxu0 %v1295_v42 }
 0x4a9   :  { %2009 = vmatmul.mubr.f32.gmra.mrb[108].mxu0 %v1294_v24 }
 0x4aa   :  { %2013 = vmatprep.mubr.f32.mxu0 %v1297_v20  ;;  %v1322_v20 = vld [vmem:[%s6645_s9 + $0x3c0] sm:$0xff] }
 0x4ad   :  { %2014 = vmatmul.mubr.f32.gmra.mrb[110].mxu0 %v1296_v21  ;;  %v6721_v21 = vld [vmem:[#allocation17_spill] sm:$0xff] }
 0x4ae   :  { %2018 = vmatprep.mubr.f32.mxu0 %v1299_v10 }
 0x4b1   :  { %2019 = vmatmul.mubr.f32.gmra.mrb[112].mxu0 %v1298_v22  ;;  %v1325_v22 = vld [vmem:[%s6645_s9 + $0x3d8] sm:$0xff] }
 0x4b2   :  { %2023 = vmatprep.mubr.f32.mxu0 %v1301_v48 }
 0x4b5   :  { %2024 = vmatmul.mubr.f32.gmra.mrb[114].mxu0 %v1300_v23  ;;  %v6722_v23 = vld [vmem:[#allocation18_spill] sm:$0xff] }
 0x4b6   :  { %2028 = vmatprep.mubr.f32.mxu0 %v1303_v13 }
 0x4b9   :  { %2029 = vmatmul.mubr.f32.gmra.mrb[116].mxu0 %v1302_v45 }
 0x4ba   :  { %2033 = vmatprep.mubr.f32.mxu0 %v1305_v36  ;;  %v1324_v36 = vld [vmem:[%s6645_s9 + $0x3d0] sm:$0xff] }
 0x4bd   :  { %2034 = vmatmul.mubr.f32.gmra.mrb[118].mxu0 %v1304_v39 }
 0x4be   :  { %2038 = vmatprep.mubr.f32.mxu0 %v1307_v32 }
 0x4c1   :  { %2039 = vmatmul.mubr.f32.gmra.mrb[120].mxu0 %v1306_v46  ;;  %v1327_v46 = vld [vmem:[%s6645_s9 + $0x3e8] sm:$0xff] }
 0x4c2   :  { %2043 = vmatprep.mubr.f32.mxu0 %v1309_v35 }
 0x4c4   :  { %v1780_v26 = vpop.f32.mrb[16].mxu0 }
 0x4c5   :  { %v1782_v51 = vpop.f32.mrb[17].mxu0  ;;  %2044 = vmatmul.mubr.f32.gmra.mrb[122].mxu0 %v1308_v31  ;;  %v1781_v30 = vadd.f32 %v1780_v26, %v6715_v50  ;;  %v1326_v26 = vld [vmem:[%s6645_s9 + $0x3e0] sm:$0xff]  ;;  %v1329_v50 = vld [vmem:[%s6645_s9 + $0x3f8] sm:$0xff] }
 0x4c6   :  { %2048 = vmatprep.mubr.f32.mxu0 %v1311_v25  ;;  %v6723_v51 = vld [vmem:[#allocation19_spill] sm:$0xff] }
 0x4c7   :  { %v2099_v0 = vmax.f32 %v1781_v30, 0.0 }
 0x4c8   :  { %v1785_v49 = vpop.f32.mrb[18].mxu0 }
 0x4c9   :  { %v1786_v58 = vadd.f32 %v1785_v49, %v6716_v8  ;;  %v1787_v55 = vpop.f32.mrb[19].mxu0  ;;  %2049 = vmatmul.mubr.f32.gmra.mrb[124].mxu0 %v1310_v29  ;;  %v1328_v8 = vld [vmem:[%s6645_s9 + $0x3f0] sm:$0xff] }
 0x4ca   :  { %2053 = vmatprep.mubr.f32.mxu0 %v1313_v43  ;;  %v6724_v43 = vld [vmem:[#allocation20_spill] sm:$0xff] }
 0x4cb   :  { %v2100_v3 = vmax.f32 %v1786_v58, 0.0 }
 0x4cc   :  { %v1790_v27 = vpop.f32.mrb[20].mxu0 }
 0x4cd   :  { %v4162_v33 = vpack.c.bf16 %v2100_v3, %v2099_v0  ;;  %v1792_v34 = vpop.f32.mrb[21].mxu0  ;;  %2054 = vmatmul.mubr.f32.gmra.mrb[126].mxu0 %v1312_v56  ;;  %v1791_v60 = vadd.f32 %v1790_v27, %v6717_v19 }
 0x4ce   :  { %2058 = vmatprep.mubr.f32.mxu0 %v1315_v53  ;;  %v6725_v53 = vld [vmem:[#allocation21_spill] sm:$0xff]  ;;  %v6726_v34 = vld [vmem:[#allocation22_spill] sm:$0xff] }
 0x4cf   :  { %4163 = vmatpush1.bf16.msra.mxu1 %v4162_v33  ;;  %v2101_v47 = vmax.f32 %v1791_v60, 0.0 }
 0x4d0   :  { %v1795_v52 = vpop.f32.mrb[22].mxu0  ;;  %4164 = vmatprep.subr.bf16.mxu1 %v4438_v54 }
 0x4d1   :  { %v1796_v63 = vadd.f32 %v1795_v52, %v6718_v2  ;;  %v1797_v15 = vpop.f32.mrb[23].mxu0  ;;  %2059 = vmatmul.mubr.f32.gmra.mrb[128].mxu0 %v1314_v14 }
 0x4d2   :  { %2063 = vmatprep.mubr.f32.mxu0 %v1317_v59  ;;  %v6727_v15 = vld [vmem:[#allocation23_spill] sm:$0xff] }
 0x4d3   :  { %v2102_v37 = vmax.f32 %v1796_v63, 0.0 }
 0x4d4   :  { %v1800_v44 = vpop.f32.mrb[24].mxu0 }
 0x4d5   :  { %v4165_v38 = vpack.c.bf16 %v2102_v37, %v2101_v47  ;;  %v1802_v17 = vpop.f32.mrb[25].mxu0  ;;  %2064 = vmatmul.mubr.f32.gmra.mrb[130].mxu0 %v1316_v40  ;;  %v1801_v5 = vadd.f32 %v1800_v44, %v6719_v6  ;;  %v6728_v37 = vld [vmem:[#allocation24_spill] sm:$0xff] }
 0x4d6   :  { %2068 = vmatprep.mubr.f32.mxu0 %v1319_v62 }
 0x4d7   :  { %4166 = vmatpush1.bf16.msra.mxu1 %v4165_v38  ;;  %v2103_v41 = vmax.f32 %v1801_v5, 0.0 }
 0x4d8   :  { %v1805_v18 = vpop.f32.mrb[26].mxu0  ;;  %4167 = vmatprep.subr.bf16.mxu1 %v4438_v54 }
 0x4d9   :  { %v1806_v1 = vadd.f32 %v1805_v18, %v6720_v7  ;;  %v1807_v4 = vpop.f32.mrb[27].mxu0  ;;  %2069 = vmatmul.mubr.f32.gmra.mrb[132].mxu0 %v1318_v61 }
 0x4da   :  { %2073 = vmatprep.mubr.f32.mxu0 %v1321_v12  ;;  %v6729_v12 = vld [vmem:[#allocation25_spill] sm:$0xff] }
 0x4db   :  { %v2104_v28 = vmax.f32 %v1806_v1, 0.0  ;;  %v6730_v1 = vld [vmem:[#allocation26_spill] sm:$0xff] }
 0x4dc   :  { %v1810_v9 = vpop.f32.mrb[28].mxu0 }
 0x4dd   :  { %v4168_v42 = vpack.c.bf16 %v2104_v28, %v2103_v41  ;;  %v1812_v24 = vpop.f32.mrb[29].mxu0  ;;  %2074 = vmatmul.mubr.f32.gmra.mrb[134].mxu0 %v1320_v16  ;;  %v1811_v10 = vadd.f32 %v1810_v9, %v6721_v21 }
 0x4de   :  { %2078 = vmatprep.mubr.f32.mxu0 %v1323_v11  ;;  %v6731_v24 = vld [vmem:[#allocation27_spill] sm:$0xff] }
 0x4df   :  { %4169 = vmatpush1.bf16.msra.mxu1 %v4168_v42  ;;  %v2105_v39 = vmax.f32 %v1811_v10, 0.0  ;;  %v6732_v10 = vld [vmem:[#allocation28_spill] sm:$0xff] }
 0x4e0   :  { %v1815_v48 = vpop.f32.mrb[30].mxu0  ;;  %4170 = vmatprep.subr.bf16.mxu1 %v4438_v54 }
 0x4e1   :  { %v1816_v13 = vadd.f32 %v1815_v48, %v6722_v23  ;;  %v1817_v45 = vpop.f32.mrb[31].mxu0  ;;  %2079 = vmatmul.mubr.f32.gmra.mrb[136].mxu0 %v1322_v20 }
 0x4e2   :  { %2083 = vmatprep.mubr.f32.mxu0 %v1325_v22 }
 0x4e3   :  { %v2106_v32 = vmax.f32 %v1816_v13, 0.0 }
 0x4e4   :  { %v1820_v35 = vpop.f32.mrb[32].mxu0 }
 0x4e5   :  { %v4171_v31 = vpack.c.bf16 %v2106_v32, %v2105_v39  ;;  %v1822_v25 = vpop.f32.mrb[33].mxu0  ;;  %2084 = vmatmul.mubr.f32.gmra.mrb[138].mxu0 %v1324_v36  ;;  %v1821_v29 = vadd.f32 %v1820_v35, %v6723_v51  ;;  %v6733_v32 = vld [vmem:[#allocation29_spill] sm:$0xff] }
 0x4e6   :  { %2088 = vmatprep.mubr.f32.mxu0 %v1327_v46 }
 0x4e7   :  { %4172 = vmatpush1.bf16.msra.mxu1 %v4171_v31  ;;  %v2107_v58 = vmax.f32 %v1821_v29, 0.0  ;;  %v6734_v31 = vld [vmem:[#allocation30_spill] sm:$0xff] }
 0x4e8   :  { %v1825_v30 = vpop.f32.mrb[34].mxu0  ;;  %4173 = vmatprep.subr.bf16.mxu1 %v4438_v54 }
 0x4e9   :  { %v1826_v49 = vadd.f32 %v1825_v30, %v6724_v43  ;;  %v1827_v57 = vpop.f32.mrb[35].mxu0  ;;  %2089 = vmatmul.mubr.f32.gmra.mrb[140].mxu0 %v1326_v26 }
 0x4ea   :  { %2093 = vmatprep.mubr.f32.mxu0 %v1329_v50 }
 0x4eb   :  { %v2108_v55 = vmax.f32 %v1826_v49, 0.0  ;;  %v6735_v49 = vld [vmem:[#allocation31_spill] sm:$0xff] }
 0x4ec   :  { %v1830_v56 = vpop.f32.mrb[36].mxu0 }
 0x4ed   :  { %v4174_v0 = vpack.c.bf16 %v2108_v55, %v2107_v58  ;;  %v1832_v3 = vpop.f32.mrb[37].mxu0  ;;  %2094 = vmatmul.mubr.f32.gmra.mrb[142].mxu0 %v1328_v8  ;;  %v1831_v27 = vadd.f32 %v1830_v56, %v6725_v53  ;;  %v6736_v58 = vld [vmem:[#allocation32_spill] sm:$0xff] }
 0x4ef   :  { %4175 = vmatpush1.bf16.msra.mxu1 %v4174_v0  ;;  %v2109_v60 = vmax.f32 %v1831_v27, 0.0 }
 0x4f0   :  { %v1835_v33 = vpop.f32.mrb[38].mxu0  ;;  %4176 = vmatprep.subr.bf16.mxu1 %v4438_v54 }
 0x4f1   :  { %v1836_v14 = vadd.f32 %v1835_v33, %v6726_v34  ;;  %v1837_v19 = vpop.f32.mrb[39].mxu0  ;;  %v6737_v34 = vld [vmem:[#allocation33_spill] sm:$0xff] }
 0x4f3   :  { %v2110_v59 = vmax.f32 %v1836_v14, 0.0 }
 0x4f4   :  { %v1840_v52 = vpop.f32.mrb[40].mxu0 }
 0x4f5   :  { %v4177_v2 = vpack.c.bf16 %v2110_v59, %v2109_v60  ;;  %v1842_v63 = vpop.f32.mrb[41].mxu0  ;;  %v1841_v40 = vadd.f32 %v1840_v52, %v6727_v15  ;;  %v6738_v60 = vld [vmem:[#allocation34_spill] sm:$0xff] }
 0x4f7   :  { %4178 = vmatpush1.bf16.msra.mxu1 %v4177_v2  ;;  %v2111_v38 = vmax.f32 %v1841_v40, 0.0 }
 0x4f8   :  { %v1845_v47 = vpop.f32.mrb[42].mxu0  ;;  %4179 = vmatprep.subr.bf16.mxu1 %v4438_v54 }
 0x4f9   :  { %v1846_v62 = vadd.f32 %v1845_v47, %v6728_v37  ;;  %v1847_v44 = vpop.f32.mrb[43].mxu0  ;;  %v6739_v37 = vld [vmem:[#allocation35_spill] sm:$0xff] }
 0x4fb   :  { %v2112_v17 = vmax.f32 %v1846_v62, 0.0 }
 0x4fc   :  { %v1850_v61 = vpop.f32.mrb[44].mxu0 }
 0x4fd   :  { %v4180_v6 = vpack.c.bf16 %v2112_v17, %v2111_v38  ;;  %v1852_v5 = vpop.f32.mrb[45].mxu0  ;;  %v1851_v18 = vadd.f32 %v1850_v61, %v6729_v12  ;;  %v6740_v38 = vld [vmem:[#allocation36_spill] sm:$0xff] }
 0x4ff   :  { %4181 = vmatpush1.bf16.msra.mxu1 %v4180_v6  ;;  %v2113_v41 = vmax.f32 %v1851_v18, 0.0 }
 0x500   :  { %v1855_v7 = vpop.f32.mrb[46].mxu0  ;;  %4182 = vmatprep.subr.bf16.mxu1 %v4438_v54 }
 0x501   :  { %v1856_v4 = vadd.f32 %v1855_v7, %v6730_v1  ;;  %v1857_v16 = vpop.f32.mrb[47].mxu0  ;;  %v6741_v1 = vld [vmem:[#allocation37_spill] sm:$0xff] }
 0x503   :  { %v2114_v28 = vmax.f32 %v1856_v4, 0.0 }
 0x504   :  { %v1860_v11 = vpop.f32.mrb[48].mxu0 }
 0x505   :  { %v4183_v9 = vpack.c.bf16 %v2114_v28, %v2113_v41  ;;  %v1862_v42 = vpop.f32.mrb[49].mxu0  ;;  %v1861_v20 = vadd.f32 %v1860_v11, %v6731_v24  ;;  %v6742_v41 = vld [vmem:[#allocation38_spill] sm:$0xff] }
 0x507   :  { %4184 = vmatpush1.bf16.msra.mxu1 %v4183_v9  ;;  %v2115_v23 = vmax.f32 %v1861_v20, 0.0 }
 0x508   :  { %v1865_v21 = vpop.f32.mrb[50].mxu0  ;;  %4185 = vmatprep.subr.bf16.mxu1 %v4438_v54 }
 0x509   :  { %v1866_v22 = vadd.f32 %v1865_v21, %v6732_v10  ;;  %v1867_v48 = vpop.f32.mrb[51].mxu0  ;;  %v6743_v10 = vld [vmem:[#allocation39_spill] sm:$0xff] }
 0x50b   :  { %v2116_v13 = vmax.f32 %v1866_v22, 0.0 }
 0x50c   :  { %v1870_v45 = vpop.f32.mrb[52].mxu0 }
 0x50d   :  { %v4186_v36 = vpack.c.bf16 %v2116_v13, %v2115_v23  ;;  %v1872_v39 = vpop.f32.mrb[53].mxu0  ;;  %v1871_v46 = vadd.f32 %v1870_v45, %v6733_v32  ;;  %v6744_v23 = vld [vmem:[#allocation40_spill] sm:$0xff] }
 0x50f   :  { %4187 = vmatpush1.bf16.msra.mxu1 %v4186_v36  ;;  %v2117_v51 = vmax.f32 %v1871_v46, 0.0 }
 0x510   :  { %v1875_v35 = vpop.f32.mrb[54].mxu0  ;;  %4188 = vmatprep.subr.bf16.mxu1 %v4438_v54 }
 0x511   :  { %v1876_v25 = vadd.f32 %v1875_v35, %v6734_v31  ;;  %v1877_v26 = vpop.f32.mrb[55].mxu0  ;;  %v6745_v31 = vld [vmem:[#allocation41_spill] sm:$0xff] }
 0x512   :  { %v1552_v26 = vpop.permute.xlu1 %1551 }
 0x513   :  { %v2118_v29 = vmax.f32 %v1876_v25, 0.0 }
 0x514   :  { %v1880_v50 = vpop.f32.mrb[56].mxu0 }
 0x515   :  { %v4189_v30 = vpack.c.bf16 %v2118_v29, %v2117_v51  ;;  %v1882_v43 = vpop.f32.mrb[57].mxu0  ;;  %v1881_v57 = vadd.f32 %v1880_v50, %v6735_v49 }
 0x517   :  { %4190 = vmatpush1.bf16.msra.mxu1 %v4189_v30  ;;  %v2119_v0 = vmax.f32 %v1881_v57, 0.0 }
 0x518   :  { %v1885_v8 = vpop.f32.mrb[58].mxu0  ;;  %4191 = vmatprep.subr.bf16.mxu1 %v4438_v54 }
 0x519   :  { %v1886_v55 = vadd.f32 %v1885_v8, %v6736_v58  ;;  %v1887_v56 = vpop.f32.mrb[59].mxu0  ;;  %v1557_v58 = vpop.permute.xlu0 %1556 }
 0x51a   :  { %v2163_v56 = vld [vmem:[%s6646_s11] sm:$0xff] }
 0x51b   :  { %v2120_v3 = vmax.f32 %v1886_v55, 0.0 }
 0x51c   :  { %v1890_v53 = vpop.f32.mrb[60].mxu0 }
 0x51d   :  { %v4192_v27 = vpack.c.bf16 %v2120_v3, %v2119_v0  ;;  %v1892_v33 = vpop.f32.mrb[61].mxu0  ;;  %v1891_v14 = vadd.f32 %v1890_v53, %v6737_v34  ;;  %v1562_v0 = vpop.permute.xlu1 %1561  ;;  %v2168_v53 = vld [vmem:[%s6646_s11 + $0x28] sm:$0xff] }
 0x51f   :  { %4193 = vmatpush1.bf16.msra.mxu1 %v4192_v27  ;;  %v2121_v2 = vmax.f32 %v1891_v14, 0.0 }
 0x520   :  { %v1895_v19 = vpop.f32.mrb[62].mxu0  ;;  %4194 = vmatprep.subr.bf16.mxu1 %v4438_v54 }
 0x521   :  { %v1896_v59 = vadd.f32 %v1895_v19, %v6738_v60  ;;  %v1897_v52 = vpop.f32.mrb[63].mxu0  ;;  %v2167_v19 = vld [vmem:[%s6646_s11 + $0x20] sm:$0xff] }
 0x523   :  { %v2122_v63 = vmax.f32 %v1896_v59, 0.0  ;;  %v2172_v59 = vld [vmem:[%s6646_s11 + $0x48] sm:$0xff] }
 0x524   :  { %v1900_v15 = vpop.f32.mrb[64].mxu0 }
 0x525   :  { %v4195_v40 = vpack.c.bf16 %v2122_v63, %v2121_v2  ;;  %v1902_v47 = vpop.f32.mrb[65].mxu0  ;;  %v1901_v62 = vadd.f32 %v1900_v15, %v6739_v37  ;;  %v1567_v63 = vpop.permute.xlu0 %1566 }
 0x526   :  { %v1572_v47 = vpop.permute.xlu1 %1571 }
 0x527   :  { %4196 = vmatpush1.bf16.msra.mxu1 %v4195_v40  ;;  %v2123_v6 = vmax.f32 %v1901_v62, 0.0  ;;  %v2171_v40 = vld [vmem:[%s6646_s11 + $0x40] sm:$0xff]  ;;  %v2176_v62 = vld [vmem:[%s6646_s11 + $0x68] sm:$0xff] }
 0x528   :  { %v1905_v44 = vpop.f32.mrb[66].mxu0  ;;  %4197 = vmatprep.subr.bf16.mxu1 %v4438_v54 }
 0x529   :  { %v1906_v17 = vadd.f32 %v1905_v44, %v6740_v38  ;;  %v1907_v61 = vpop.f32.mrb[67].mxu0 }
 0x52b   :  { %v2124_v5 = vmax.f32 %v1906_v17, 0.0 }
 0x52c   :  { %v1910_v12 = vpop.f32.mrb[68].mxu0 }
 0x52d   :  { %v4198_v18 = vpack.c.bf16 %v2124_v5, %v2123_v6  ;;  %v1912_v7 = vpop.f32.mrb[69].mxu0  ;;  %v1911_v4 = vadd.f32 %v1910_v12, %v6741_v1  ;;  %v2175_v6 = vld [vmem:[%s6646_s11 + $0x60] sm:$0xff]  ;;  %v2180_v12 = vld [vmem:[%s6646_s11 + $0x88] sm:$0xff]  ;;  %v1577_v1 = vpop.permute.xlu0 %1576 }
 0x52f   :  { %4199 = vmatpush1.bf16.msra.mxu1 %v4198_v18  ;;  %v2125_v9 = vmax.f32 %v1911_v4, 0.0 }
 0x530   :  { %v1915_v16 = vpop.f32.mrb[70].mxu0  ;;  %4200 = vmatprep.subr.bf16.mxu1 %v4438_v54 }
 0x531   :  { %v1916_v28 = vadd.f32 %v1915_v16, %v6742_v41  ;;  %v1917_v11 = vpop.f32.mrb[71].mxu0  ;;  %v2179_v16 = vld [vmem:[%s6646_s11 + $0x80] sm:$0xff]  ;;  %v1582_v41 = vpop.permute.xlu1 %1581 }
 0x532   :  { %v2184_v11 = vld [vmem:[%s6646_s11 + $0xa8] sm:$0xff] }
 0x533   :  { %v2126_v42 = vmax.f32 %v1916_v28, 0.0 }
 0x534   :  { %v1920_v24 = vpop.f32.mrb[72].mxu0 }
 0x535   :  { %v4201_v20 = vpack.c.bf16 %v2126_v42, %v2125_v9  ;;  %v1922_v21 = vpop.f32.mrb[73].mxu0  ;;  %v1921_v22 = vadd.f32 %v1920_v24, %v6743_v10 }
 0x536   :  { %v2183_v21 = vld [vmem:[%s6646_s11 + $0xa0] sm:$0xff] }
 0x537   :  { %4202 = vmatpush1.bf16.msra.mxu1 %v4201_v20  ;;  %v2127_v36 = vmax.f32 %v1921_v22, 0.0  ;;  %v2188_v22 = vld [vmem:[%s6646_s11 + $0xc8] sm:$0xff] }
 0x538   :  { %v1925_v48 = vpop.f32.mrb[74].mxu0  ;;  %4203 = vmatprep.subr.bf16.mxu1 %v4438_v54 }
 0x539   :  { %v1926_v13 = vadd.f32 %v1925_v48, %v6744_v23  ;;  %v1927_v45 = vpop.f32.mrb[75].mxu0 }
 0x53b   :  { %v2128_v39 = vmax.f32 %v1926_v13, 0.0  ;;  %v1587_v13 = vpop.permute.xlu0 %1586 }
 0x53c   :  { %v1930_v32 = vpop.f32.mrb[76].mxu0 }
 0x53d   :  { %v4204_v46 = vpack.c.bf16 %v2128_v39, %v2127_v36  ;;  %v1932_v35 = vpop.f32.mrb[77].mxu0  ;;  %v1931_v25 = vadd.f32 %v1930_v32, %v6745_v31  ;;  %v2187_v36 = vld [vmem:[%s6646_s11 + $0xc0] sm:$0xff]  ;;  %v1592_v39 = vpop.permute.xlu1 %1591 }
 0x53f   :  { %4205 = vmatpush1.bf16.msra.mxu1 %v4204_v46  ;;  %v2129_v30 = vmax.f32 %v1931_v25, 0.0  ;;  %v2192_v46 = vld [vmem:[%s6646_s11 + $0xe8] sm:$0xff] }
 0x540   :  { %v1935_v51 = vpop.f32.mrb[78].mxu0  ;;  %4206 = vmatprep.subr.bf16.mxu1 %v4438_v54 }
 0x541   :  { %v1936_v29 = vadd.f32 %v1935_v51, %v1552_v26  ;;  %v1937_v50 = vpop.f32.mrb[79].mxu0  ;;  %v2191_v51 = vld [vmem:[%s6646_s11 + $0xe0] sm:$0xff] }
 0x542   :  { %v2196_v50 = vld [vmem:[%s6646_s11 + $0x108] sm:$0xff] }
 0x543   :  { %v2130_v43 = vmax.f32 %v1936_v29, 0.0 }
 0x544   :  { %v1940_v49 = vpop.f32.mrb[80].mxu0 }
 0x545   :  { %v4207_v57 = vpack.c.bf16 %v2130_v43, %v2129_v30  ;;  %v1942_v8 = vpop.f32.mrb[81].mxu0  ;;  %v1941_v55 = vadd.f32 %v1940_v49, %v1557_v58  ;;  %v1597_v49 = vpop.permute.xlu0 %1596 }
 0x546   :  { %v2195_v8 = vld [vmem:[%s6646_s11 + $0x100] sm:$0xff]  ;;  %v1602_v58 = vpop.permute.xlu1 %1601 }
 0x547   :  { %4208 = vmatpush1.bf16.msra.mxu1 %v4207_v57  ;;  %v2131_v34 = vmax.f32 %v1941_v55, 0.0 }
 0x548   :  { %v1945_v3 = vpop.f32.mrb[82].mxu0  ;;  %4209 = vmatprep.subr.bf16.mxu1 %v4438_v54 }
 0x549   :  { %v1946_v27 = vadd.f32 %v1945_v3, %v1562_v0  ;;  %v1947_v33 = vpop.f32.mrb[83].mxu0 }
 0x54a   :  { %2548 = vmatmul.mubr.f32.vlgmr.msra.gmra.mrb[44].mxu1 %v2163_v56  ;;  %v2200_v56 = vld [vmem:[%s6646_s11 + $0x128] sm:$0xff]  ;;  %v2199_v33 = vld [vmem:[%s6646_s11 + $0x120] sm:$0xff] }
 0x54b   :  { %v2132_v14 = vmax.f32 %v1946_v27, 0.0  ;;  %2552 = vmatprep.mubr.f32.mxu1 %v2168_v53 }
 0x54c   :  { %v1950_v60 = vpop.f32.mrb[84].mxu0 }
 0x54d   :  { %v4210_v52 = vpack.c.bf16 %v2132_v14, %v2131_v34  ;;  %v1952_v2 = vpop.f32.mrb[85].mxu0  ;;  %v1951_v15 = vadd.f32 %v1950_v60, %v1567_v63  ;;  %v2204_v14 = vld [vmem:[%s6646_s11 + $0x148] sm:$0xff]  ;;  %v1612_v63 = vpop.permute.xlu1 %1611 }
 0x54e   :  { %2553 = vmatmul.mubr.f32.gmra.mrb[46].mxu1 %v2167_v19  ;;  %v2203_v2 = vld [vmem:[%s6646_s11 + $0x140] sm:$0xff] }
 0x54f   :  { %4211 = vmatpush1.bf16.msra.mxu1 %v4210_v52  ;;  %2557 = vmatprep.mubr.f32.mxu1 %v2172_v59  ;;  %v2133_v17 = vmax.f32 %v1951_v15, 0.0  ;;  %v1607_v59 = vpop.permute.xlu0 %1606 }
 0x550   :  { %v1955_v37 = vpop.f32.mrb[86].mxu0  ;;  %4212 = vmatprep.subr.bf16.mxu1 %v4438_v54 }
 0x551   :  { %v1956_v44 = vadd.f32 %v1955_v37, %v1572_v47  ;;  %v1957_v38 = vpop.f32.mrb[87].mxu0 }
 0x552   :  { %2558 = vmatmul.mubr.f32.gmra.mrb[48].mxu1 %v2171_v40  ;;  %v2208_v40 = vld [vmem:[%s6646_s11 + $0x168] sm:$0xff]  ;;  %v2207_v38 = vld [vmem:[%s6646_s11 + $0x160] sm:$0xff] }
 0x553   :  { %v2134_v61 = vmax.f32 %v1956_v44, 0.0  ;;  %2562 = vmatprep.mubr.f32.mxu1 %v2176_v62 }
 0x554   :  { %v1960_v5 = vpop.f32.mrb[88].mxu0 }
 0x555   :  { %v4213_v18 = vpack.c.bf16 %v2134_v61, %v2133_v17  ;;  %v1962_v7 = vpop.f32.mrb[89].mxu0  ;;  %v1961_v4 = vadd.f32 %v1960_v5, %v1577_v1  ;;  %v2212_v61 = vld [vmem:[%s6646_s11 + $0x188] sm:$0xff]  ;;  %v1622_v1 = vpop.permute.xlu1 %1621 }
 0x556   :  { %2563 = vmatmul.mubr.f32.gmra.mrb[50].mxu1 %v2175_v6  ;;  %v2211_v7 = vld [vmem:[%s6646_s11 + $0x180] sm:$0xff] }
 0x557   :  { %4214 = vmatpush1.bf16.msra.mxu1 %v4213_v18  ;;  %2567 = vmatprep.mubr.f32.mxu1 %v2180_v12  ;;  %v2135_v24 = vmax.f32 %v1961_v4, 0.0  ;;  %v1617_v12 = vpop.permute.xlu0 %1616 }
 0x558   :  { %v1965_v28 = vpop.f32.mrb[90].mxu0  ;;  %4215 = vmatprep.subr.bf16.mxu1 %v4438_v54 }
 0x559   :  { %v1966_v9 = vadd.f32 %v1965_v28, %v1582_v41  ;;  %v1967_v42 = vpop.f32.mrb[91].mxu0 }
 0x55a   :  { %2568 = vmatmul.mubr.f32.gmra.mrb[52].mxu1 %v2179_v16  ;;  %v2216_v16 = vld [vmem:[%s6646_s11 + $0x1a8] sm:$0xff]  ;;  %v2215_v42 = vld [vmem:[%s6646_s11 + $0x1a0] sm:$0xff] }
 0x55b   :  { %v2136_v20 = vmax.f32 %v1966_v9, 0.0  ;;  %2572 = vmatprep.mubr.f32.mxu1 %v2184_v11 }
 0x55c   :  { %v1970_v10 = vpop.f32.mrb[92].mxu0 }
 0x55d   :  { %v4216_v48 = vpack.c.bf16 %v2136_v20, %v2135_v24  ;;  %v1972_v23 = vpop.f32.mrb[93].mxu0  ;;  %v1971_v45 = vadd.f32 %v1970_v10, %v1587_v13  ;;  %v2220_v20 = vld [vmem:[%s6646_s11 + $0x1c8] sm:$0xff]  ;;  %v1632_v13 = vpop.permute.xlu1 %1631 }
 0x55e   :  { %2573 = vmatmul.mubr.f32.gmra.mrb[54].mxu1 %v2183_v21  ;;  %v2219_v23 = vld [vmem:[%s6646_s11 + $0x1c0] sm:$0xff] }
 0x55f   :  { %4217 = vmatpush1.bf16.msra.mxu1 %v4216_v48  ;;  %2577 = vmatprep.mubr.f32.mxu1 %v2188_v22  ;;  %v2137_v25 = vmax.f32 %v1971_v45, 0.0  ;;  %v1627_v22 = vpop.permute.xlu0 %1626 }
 0x560   :  { %v1975_v32 = vpop.f32.mrb[94].mxu0  ;;  %4218 = vmatprep.subr.bf16.mxu1 %v4438_v54 }
 0x561   :  { %v1976_v35 = vadd.f32 %v1975_v32, %v1592_v39  ;;  %v1977_v31 = vpop.f32.mrb[95].mxu0 }
 0x562   :  { %2578 = vmatmul.mubr.f32.gmra.mrb[56].mxu1 %v2187_v36  ;;  %v2224_v36 = vld [vmem:[%s6646_s11 + $0x1e8] sm:$0xff]  ;;  %v2223_v31 = vld [vmem:[%s6646_s11 + $0x1e0] sm:$0xff] }
 0x563   :  { %v2138_v26 = vmax.f32 %v1976_v35, 0.0  ;;  %2582 = vmatprep.mubr.f32.mxu1 %v2192_v46 }
 0x564   :  { %v1980_v29 = vpop.f32.mrb[96].mxu0 }
 0x565   :  { %v4219_v30 = vpack.c.bf16 %v2138_v26, %v2137_v25  ;;  %v1982_v43 = vpop.f32.mrb[97].mxu0  ;;  %v1981_v57 = vadd.f32 %v1980_v29, %v1597_v49  ;;  %v2228_v26 = vld [vmem:[%s6646_s11 + $0x208] sm:$0xff]  ;;  %v1642_v49 = vpop.permute.xlu1 %1641 }
 0x566   :  { %2583 = vmatmul.mubr.f32.gmra.mrb[58].mxu1 %v2191_v51  ;;  %v2227_v43 = vld [vmem:[%s6646_s11 + $0x200] sm:$0xff] }
 0x567   :  { %4220 = vmatpush1.bf16.msra.mxu1 %v4219_v30  ;;  %2587 = vmatprep.mubr.f32.mxu1 %v2196_v50  ;;  %v2139_v53 = vmax.f32 %v1981_v57, 0.0  ;;  %v1637_v50 = vpop.permute.xlu0 %1636 }
 0x568   :  { %v1985_v55 = vpop.f32.mrb[98].mxu0  ;;  %4221 = vmatprep.subr.bf16.mxu1 %v4438_v54 }
 0x569   :  { %v1986_v0 = vadd.f32 %v1985_v55, %v1602_v58  ;;  %v1987_v3 = vpop.f32.mrb[99].mxu0 }
 0x56a   :  { %2588 = vmatmul.mubr.f32.gmra.mrb[60].mxu1 %v2195_v8  ;;  %v2232_v8 = vld [vmem:[%s6646_s11 + $0x228] sm:$0xff]  ;;  %v2231_v3 = vld [vmem:[%s6646_s11 + $0x220] sm:$0xff] }
 0x56b   :  { %v2140_v27 = vmax.f32 %v1986_v0, 0.0  ;;  %2592 = vmatprep.mubr.f32.mxu1 %v2200_v56 }
 0x56c   :  { %v1990_v34 = vpop.f32.mrb[100].mxu0 }
 0x56d   :  { %v4222_v19 = vpack.c.bf16 %v2140_v27, %v2139_v53  ;;  %v1992_v60 = vpop.f32.mrb[101].mxu0  ;;  %v1991_v52 = vadd.f32 %v1990_v34, %v1607_v59  ;;  %v2236_v27 = vld [vmem:[%s6646_s11 + $0x248] sm:$0xff]  ;;  %v1652_v59 = vpop.permute.xlu1 %1651 }
 0x56e   :  { %2593 = vmatmul.mubr.f32.gmra.mrb[62].mxu1 %v2199_v33  ;;  %v2235_v60 = vld [vmem:[%s6646_s11 + $0x240] sm:$0xff] }
 0x56f   :  { %4223 = vmatpush1.bf16.msra.mxu1 %v4222_v19  ;;  %2597 = vmatprep.mubr.f32.mxu1 %v2204_v14  ;;  %v2141_v62 = vmax.f32 %v1991_v52, 0.0  ;;  %v1647_v14 = vpop.permute.xlu0 %1646 }
 0x570   :  { %v1995_v15 = vpop.f32.mrb[102].mxu0  ;;  %4224 = vmatprep.subr.bf16.mxu1 %v4438_v54 }
 0x571   :  { %v1996_v47 = vadd.f32 %v1995_v15, %v1612_v63  ;;  %v1997_v37 = vpop.f32.mrb[103].mxu0 }
 0x572   :  { %2598 = vmatmul.mubr.f32.gmra.mrb[64].mxu1 %v2203_v2  ;;  %v2240_v2 = vld [vmem:[%s6646_s11 + $0x268] sm:$0xff]  ;;  %v2239_v37 = vld [vmem:[%s6646_s11 + $0x260] sm:$0xff] }
 0x573   :  { %v2142_v44 = vmax.f32 %v1996_v47, 0.0  ;;  %2602 = vmatprep.mubr.f32.mxu1 %v2208_v40 }
 0x574   :  { %v2000_v17 = vpop.f32.mrb[104].mxu0 }
 0x575   :  { %v4225_v6 = vpack.c.bf16 %v2142_v44, %v2141_v62  ;;  %v2002_v5 = vpop.f32.mrb[105].mxu0  ;;  %v2001_v18 = vadd.f32 %v2000_v17, %v1617_v12  ;;  %v2244_v44 = vld [vmem:[%s6646_s11 + $0x288] sm:$0xff]  ;;  %v1662_v12 = vpop.permute.xlu1 %1661 }
 0x576   :  { %2603 = vmatmul.mubr.f32.gmra.mrb[66].mxu1 %v2207_v38  ;;  %v2243_v5 = vld [vmem:[%s6646_s11 + $0x280] sm:$0xff] }
 0x577   :  { %4226 = vmatpush1.bf16.msra.mxu1 %v4225_v6  ;;  %2607 = vmatprep.mubr.f32.mxu1 %v2212_v61  ;;  %v2143_v11 = vmax.f32 %v2001_v18, 0.0  ;;  %v1657_v61 = vpop.permute.xlu0 %1656 }
 0x578   :  { %v2005_v4 = vpop.f32.mrb[106].mxu0  ;;  %4227 = vmatprep.subr.bf16.mxu1 %v4438_v54 }
 0x579   :  { %v2006_v41 = vadd.f32 %v2005_v4, %v1622_v1  ;;  %v2007_v28 = vpop.f32.mrb[107].mxu0 }
 0x57a   :  { %2608 = vmatmul.mubr.f32.gmra.mrb[68].mxu1 %v2211_v7  ;;  %v2248_v7 = vld [vmem:[%s6646_s11 + $0x2a8] sm:$0xff]  ;;  %v2247_v28 = vld [vmem:[%s6646_s11 + $0x2a0] sm:$0xff] }
 0x57b   :  { %v2144_v9 = vmax.f32 %v2006_v41, 0.0  ;;  %2612 = vmatprep.mubr.f32.mxu1 %v2216_v16 }
 0x57c   :  { %v2010_v24 = vpop.f32.mrb[108].mxu0 }
 0x57d   :  { %v4228_v21 = vpack.c.bf16 %v2144_v9, %v2143_v11  ;;  %v2012_v10 = vpop.f32.mrb[109].mxu0  ;;  %v2011_v48 = vadd.f32 %v2010_v24, %v1627_v22  ;;  %v2252_v9 = vld [vmem:[%s6646_s11 + $0x2c8] sm:$0xff]  ;;  %v1672_v22 = vpop.permute.xlu1 %1671 }
 0x57e   :  { %2613 = vmatmul.mubr.f32.gmra.mrb[70].mxu1 %v2215_v42  ;;  %v2251_v10 = vld [vmem:[%s6646_s11 + $0x2c0] sm:$0xff] }
 0x57f   :  { %4229 = vmatpush1.bf16.msra.mxu1 %v4228_v21  ;;  %2617 = vmatprep.mubr.f32.mxu1 %v2220_v20  ;;  %v2145_v46 = vmax.f32 %v2011_v48, 0.0  ;;  %v1667_v20 = vpop.permute.xlu0 %1666 }
 0x580   :  { %v2015_v45 = vpop.f32.mrb[110].mxu0  ;;  %4230 = vmatprep.subr.bf16.mxu1 %v4438_v54 }
 0x581   :  { %v2016_v39 = vadd.f32 %v2015_v45, %v1632_v13  ;;  %v2017_v32 = vpop.f32.mrb[111].mxu0 }
 0x582   :  { %2618 = vmatmul.mubr.f32.gmra.mrb[72].mxu1 %v2219_v23  ;;  %v2256_v23 = vld [vmem:[%s6646_s11 + $0x2e8] sm:$0xff]  ;;  %v2255_v32 = vld [vmem:[%s6646_s11 + $0x2e0] sm:$0xff] }
 0x583   :  { %v2146_v35 = vmax.f32 %v2016_v39, 0.0  ;;  %2622 = vmatprep.mubr.f32.mxu1 %v2224_v36 }
 0x584   :  { %v2020_v25 = vpop.f32.mrb[112].mxu0 }
 0x585   :  { %v4231_v51 = vpack.c.bf16 %v2146_v35, %v2145_v46  ;;  %v2022_v29 = vpop.f32.mrb[113].mxu0  ;;  %v2021_v30 = vadd.f32 %v2020_v25, %v1637_v50  ;;  %v2260_v35 = vld [vmem:[%s6646_s11 + $0x308] sm:$0xff]  ;;  %v1682_v50 = vpop.permute.xlu1 %1681 }
 0x586   :  { %2623 = vmatmul.mubr.f32.gmra.mrb[74].mxu1 %v2223_v31  ;;  %v2259_v29 = vld [vmem:[%s6646_s11 + $0x300] sm:$0xff] }
 0x587   :  { %4232 = vmatpush1.bf16.msra.mxu1 %v4231_v51  ;;  %2627 = vmatprep.mubr.f32.mxu1 %v2228_v26  ;;  %v2147_v56 = vmax.f32 %v2021_v30, 0.0  ;;  %v1677_v26 = vpop.permute.xlu0 %1676 }
 0x588   :  { %v2025_v57 = vpop.f32.mrb[114].mxu0  ;;  %4233 = vmatprep.subr.bf16.mxu1 %v4438_v54 }
 0x589   :  { %v2026_v58 = vadd.f32 %v2025_v57, %v1642_v49  ;;  %v2027_v55 = vpop.f32.mrb[115].mxu0 }
 0x58a   :  { %2628 = vmatmul.mubr.f32.gmra.mrb[76].mxu1 %v2227_v43  ;;  %v2264_v43 = vld [vmem:[%s6646_s11 + $0x328] sm:$0xff]  ;;  %v2263_v55 = vld [vmem:[%s6646_s11 + $0x320] sm:$0xff] }
 0x58b   :  { %v2148_v0 = vmax.f32 %v2026_v58, 0.0  ;;  %2632 = vmatprep.mubr.f32.mxu1 %v2232_v8 }
 0x58c   :  { %v2030_v53 = vpop.f32.mrb[116].mxu0 }
 0x58d   :  { %v4234_v33 = vpack.c.bf16 %v2148_v0, %v2147_v56  ;;  %v2032_v34 = vpop.f32.mrb[117].mxu0  ;;  %v2031_v19 = vadd.f32 %v2030_v53, %v1647_v14  ;;  %v2268_v0 = vld [vmem:[%s6646_s11 + $0x348] sm:$0xff]  ;;  %v1692_v14 = vpop.permute.xlu1 %1691 }
 0x58e   :  { %2633 = vmatmul.mubr.f32.gmra.mrb[78].mxu1 %v2231_v3  ;;  %v2267_v34 = vld [vmem:[%s6646_s11 + $0x340] sm:$0xff] }
 0x58f   :  { %4235 = vmatpush1.bf16.msra.mxu1 %v4234_v33  ;;  %2637 = vmatprep.mubr.f32.mxu1 %v2236_v27  ;;  %v2149_v40 = vmax.f32 %v2031_v19, 0.0  ;;  %v1687_v27 = vpop.permute.xlu0 %1686 }
 0x590   :  { %v2035_v52 = vpop.f32.mrb[118].mxu0  ;;  %4236 = vmatprep.subr.bf16.mxu1 %v4438_v54 }
 0x591   :  { %v2036_v63 = vadd.f32 %v2035_v52, %v1652_v59  ;;  %v2037_v15 = vpop.f32.mrb[119].mxu0 }
 0x592   :  { %2638 = vmatmul.mubr.f32.gmra.mrb[80].mxu1 %v2235_v60  ;;  %v2272_v60 = vld [vmem:[%s6646_s11 + $0x368] sm:$0xff]  ;;  %v2271_v15 = vld [vmem:[%s6646_s11 + $0x360] sm:$0xff] }
 0x593   :  { %v2150_v47 = vmax.f32 %v2036_v63, 0.0  ;;  %2642 = vmatprep.mubr.f32.mxu1 %v2240_v2 }
 0x594   :  { %v2040_v62 = vpop.f32.mrb[120].mxu0 }
 0x595   :  { %v4237_v38 = vpack.c.bf16 %v2150_v47, %v2149_v40  ;;  %v2042_v17 = vpop.f32.mrb[121].mxu0  ;;  %v2041_v6 = vadd.f32 %v2040_v62, %v1657_v61  ;;  %v2276_v47 = vld [vmem:[%s6646_s11 + $0x388] sm:$0xff]  ;;  %v1702_v61 = vpop.permute.xlu1 %1701 }
 0x596   :  { %2643 = vmatmul.mubr.f32.gmra.mrb[82].mxu1 %v2239_v37  ;;  %v2275_v17 = vld [vmem:[%s6646_s11 + $0x380] sm:$0xff] }
 0x597   :  { %4238 = vmatpush1.bf16.msra.mxu1 %v4237_v38  ;;  %2647 = vmatprep.mubr.f32.mxu1 %v2244_v44  ;;  %v2151_v16 = vmax.f32 %v2041_v6, 0.0  ;;  %v1697_v44 = vpop.permute.xlu0 %1696 }
 0x598   :  { %v2045_v18 = vpop.f32.mrb[122].mxu0  ;;  %4239 = vmatprep.subr.bf16.mxu1 %v4438_v54 }
 0x599   :  { %v2046_v1 = vadd.f32 %v2045_v18, %v1662_v12  ;;  %v2047_v4 = vpop.f32.mrb[123].mxu0 }
 0x59a   :  { %2648 = vmatmul.mubr.f32.gmra.mrb[84].mxu1 %v2243_v5  ;;  %v2280_v5 = vld [vmem:[%s6646_s11 + $0x3a8] sm:$0xff]  ;;  %v2279_v4 = vld [vmem:[%s6646_s11 + $0x3a0] sm:$0xff] }
 0x59b   :  { %v2152_v41 = vmax.f32 %v2046_v1, 0.0  ;;  %2652 = vmatprep.mubr.f32.mxu1 %v2248_v7 }
 0x59c   :  { %v2050_v11 = vpop.f32.mrb[124].mxu0 }
 0x59d   :  { %v4240_v42 = vpack.c.bf16 %v2152_v41, %v2151_v16  ;;  %v2052_v24 = vpop.f32.mrb[125].mxu0  ;;  %v2051_v21 = vadd.f32 %v2050_v11, %v1667_v20  ;;  %v2284_v41 = vld [vmem:[%s6646_s11 + $0x3c8] sm:$0xff]  ;;  %v1712_v20 = vpop.permute.xlu1 %1711 }
 0x59e   :  { %2653 = vmatmul.mubr.f32.gmra.mrb[86].mxu1 %v2247_v28  ;;  %v2283_v24 = vld [vmem:[%s6646_s11 + $0x3c0] sm:$0xff] }
 0x59f   :  { %4241 = vmatpush1.bf16.msra.mxu1 %v4240_v42  ;;  %2657 = vmatprep.mubr.f32.mxu1 %v2252_v9  ;;  %v2153_v36 = vmax.f32 %v2051_v21, 0.0  ;;  %v1707_v9 = vpop.permute.xlu0 %1706 }
 0x5a0   :  { %v2055_v48 = vpop.f32.mrb[126].mxu0  ;;  %4242 = vmatprep.subr.bf16.mxu1 %v4438_v54 }
 0x5a1   :  { %v2056_v13 = vadd.f32 %v2055_v48, %v1672_v22  ;;  %v2057_v45 = vpop.f32.mrb[127].mxu0 }
 0x5a2   :  { %2658 = vmatmul.mubr.f32.gmra.mrb[88].mxu1 %v2251_v10  ;;  %v2288_v10 = vld [vmem:[%s6646_s11 + $0x3e8] sm:$0xff]  ;;  %v2287_v45 = vld [vmem:[%s6646_s11 + $0x3e0] sm:$0xff] }
 0x5a3   :  { %v2154_v39 = vmax.f32 %v2056_v13, 0.0  ;;  %2662 = vmatprep.mubr.f32.mxu1 %v2256_v23 }
 0x5a4   :  { %v2060_v46 = vpop.f32.mrb[128].mxu0 }
 0x5a5   :  { %v4243_v31 = vpack.c.bf16 %v2154_v39, %v2153_v36  ;;  %v2062_v25 = vpop.f32.mrb[129].mxu0  ;;  %v2061_v51 = vadd.f32 %v2060_v46, %v1677_v26  ;;  %v2166_v36 = vld [vmem:[%s6646_s11 + $0x18] sm:$0xff]  ;;  %v2169_v46 = vld [vmem:[%s6646_s11 + $0x30] sm:$0xff] }
 0x5a6   :  { %2663 = vmatmul.mubr.f32.gmra.mrb[90].mxu1 %v2255_v32  ;;  %v2170_v32 = vld [vmem:[%s6646_s11 + $0x38] sm:$0xff]  ;;  %v2177_v26 = vld [vmem:[%s6646_s11 + $0x70] sm:$0xff] }
 0x5a7   :  { %4244 = vmatpush1.bf16.msra.mxu1 %v4243_v31  ;;  %2667 = vmatprep.mubr.f32.mxu1 %v2260_v35  ;;  %v2155_v8 = vmax.f32 %v2061_v51, 0.0  ;;  %v2174_v35 = vld [vmem:[%s6646_s11 + $0x58] sm:$0xff]  ;;  %v2173_v31 = vld [vmem:[%s6646_s11 + $0x50] sm:$0xff] }
 0x5a8   :  { %v2065_v30 = vpop.f32.mrb[130].mxu0  ;;  %4245 = vmatprep.subr.bf16.mxu1 %v4438_v54  ;;  %v2178_v25 = vld [vmem:[%s6646_s11 + $0x78] sm:$0xff] }
 0x5a9   :  { %v2066_v49 = vadd.f32 %v2065_v30, %v1682_v50  ;;  %v2067_v57 = vpop.f32.mrb[131].mxu0  ;;  %v2182_v51 = vld [vmem:[%s6646_s11 + $0x98] sm:$0xff]  ;;  %v2185_v30 = vld [vmem:[%s6646_s11 + $0xb0] sm:$0xff] }
 0x5aa   :  { %2668 = vmatmul.mubr.f32.gmra.mrb[92].mxu1 %v2259_v29  ;;  %v2181_v29 = vld [vmem:[%s6646_s11 + $0x90] sm:$0xff]  ;;  %v2186_v50 = vld [vmem:[%s6646_s11 + $0xb8] sm:$0xff] }
 0x5ab   :  { %v2156_v58 = vmax.f32 %v2066_v49, 0.0  ;;  %2672 = vmatprep.mubr.f32.mxu1 %v2264_v43  ;;  %v2190_v43 = vld [vmem:[%s6646_s11 + $0xd8] sm:$0xff]  ;;  %v2189_v49 = vld [vmem:[%s6646_s11 + $0xd0] sm:$0xff] }
 0x5ac   :  { %v2070_v56 = vpop.f32.mrb[132].mxu0  ;;  %v2194_v57 = vld [vmem:[%s6646_s11 + $0xf8] sm:$0xff] }
 0x5ad   :  { %v4246_v3 = vpack.c.bf16 %v2156_v58, %v2155_v8  ;;  %v2072_v53 = vpop.f32.mrb[133].mxu0  ;;  %v2071_v33 = vadd.f32 %v2070_v56, %v1687_v27  ;;  %v2193_v8 = vld [vmem:[%s6646_s11 + $0xf0] sm:$0xff]  ;;  %v2198_v58 = vld [vmem:[%s6646_s11 + $0x118] sm:$0xff] }
 0x5ae   :  { %2673 = vmatmul.mubr.f32.gmra.mrb[94].mxu1 %v2263_v55  ;;  %v2197_v55 = vld [vmem:[%s6646_s11 + $0x110] sm:$0xff]  ;;  %v2202_v56 = vld [vmem:[%s6646_s11 + $0x138] sm:$0xff] }
 0x5af   :  { %4247 = vmatpush1.bf16.msra.mxu1 %v4246_v3  ;;  %2677 = vmatprep.mubr.f32.mxu1 %v2268_v0  ;;  %v2157_v2 = vmax.f32 %v2071_v33, 0.0  ;;  %v2201_v0 = vld [vmem:[%s6646_s11 + $0x130] sm:$0xff]  ;;  %v2206_v3 = vld [vmem:[%s6646_s11 + $0x158] sm:$0xff] }
 0x5b0   :  { %v2075_v19 = vpop.f32.mrb[134].mxu0  ;;  %4248 = vmatprep.subr.bf16.mxu1 %v4438_v54  ;;  %v2205_v53 = vld [vmem:[%s6646_s11 + $0x150] sm:$0xff]  ;;  %v2210_v27 = vld [vmem:[%s6646_s11 + $0x178] sm:$0xff] }
 0x5b1   :  { %v2076_v59 = vadd.f32 %v2075_v19, %v1692_v14  ;;  %v2077_v52 = vpop.f32.mrb[135].mxu0  ;;  %v2209_v33 = vld [vmem:[%s6646_s11 + $0x170] sm:$0xff]  ;;  %v2218_v19 = vld [vmem:[%s6646_s11 + $0x1b8] sm:$0xff] }
 0x5b2   :  { %2678 = vmatmul.mubr.f32.gmra.mrb[96].mxu1 %v2267_v34  ;;  %v2214_v34 = vld [vmem:[%s6646_s11 + $0x198] sm:$0xff]  ;;  %v2213_v14 = vld [vmem:[%s6646_s11 + $0x190] sm:$0xff] }
 0x5b3   :  { %v2158_v63 = vmax.f32 %v2076_v59, 0.0  ;;  %2682 = vmatprep.mubr.f32.mxu1 %v2272_v60  ;;  %v2217_v60 = vld [vmem:[%s6646_s11 + $0x1b0] sm:$0xff]  ;;  %v2222_v59 = vld [vmem:[%s6646_s11 + $0x1d8] sm:$0xff] }
 0x5b4   :  { %v2080_v40 = vpop.f32.mrb[136].mxu0  ;;  %v2221_v52 = vld [vmem:[%s6646_s11 + $0x1d0] sm:$0xff] }
 0x5b5   :  { %v4249_v37 = vpack.c.bf16 %v2158_v63, %v2157_v2  ;;  %v2082_v62 = vpop.f32.mrb[137].mxu0  ;;  %v2081_v38 = vadd.f32 %v2080_v40, %v1697_v44  ;;  %v2226_v2 = vld [vmem:[%s6646_s11 + $0x1f8] sm:$0xff]  ;;  %v2225_v63 = vld [vmem:[%s6646_s11 + $0x1f0] sm:$0xff] }
 0x5b6   :  { %2683 = vmatmul.mubr.f32.gmra.mrb[98].mxu1 %v2271_v15  ;;  %v2230_v15 = vld [vmem:[%s6646_s11 + $0x218] sm:$0xff]  ;;  %v2229_v40 = vld [vmem:[%s6646_s11 + $0x210] sm:$0xff] }
 0x5b7   :  { %4250 = vmatpush1.bf16.msra.mxu1 %v4249_v37  ;;  %2687 = vmatprep.mubr.f32.mxu1 %v2276_v47  ;;  %v2159_v7 = vmax.f32 %v2081_v38, 0.0  ;;  %v2234_v47 = vld [vmem:[%s6646_s11 + $0x238] sm:$0xff]  ;;  %v2233_v37 = vld [vmem:[%s6646_s11 + $0x230] sm:$0xff] }
 0x5b8   :  { %v2085_v6 = vpop.f32.mrb[138].mxu0  ;;  %4251 = vmatprep.subr.bf16.mxu1 %v4438_v54  ;;  %v2238_v62 = vld [vmem:[%s6646_s11 + $0x258] sm:$0xff]  ;;  %v2237_v44 = vld [vmem:[%s6646_s11 + $0x250] sm:$0xff] }
 0x5b9   :  { %v2086_v12 = vadd.f32 %v2085_v6, %v1702_v61  ;;  %v2087_v18 = vpop.f32.mrb[139].mxu0  ;;  %v2242_v38 = vld [vmem:[%s6646_s11 + $0x278] sm:$0xff]  ;;  %v2245_v6 = vld [vmem:[%s6646_s11 + $0x290] sm:$0xff] }
 0x5ba   :  { %2688 = vmatmul.mubr.f32.gmra.mrb[100].mxu1 %v2275_v17  ;;  %v2241_v17 = vld [vmem:[%s6646_s11 + $0x270] sm:$0xff]  ;;  %v2246_v61 = vld [vmem:[%s6646_s11 + $0x298] sm:$0xff] }
 0x5bb   :  { %v2160_v1 = vmax.f32 %v2086_v12, 0.0  ;;  %2692 = vmatprep.mubr.f32.mxu1 %v2280_v5  ;;  %v2250_v5 = vld [vmem:[%s6646_s11 + $0x2b8] sm:$0xff]  ;;  %v2249_v12 = vld [vmem:[%s6646_s11 + $0x2b0] sm:$0xff] }
 0x5bc   :  { %v2090_v16 = vpop.f32.mrb[140].mxu0  ;;  %v2254_v18 = vld [vmem:[%s6646_s11 + $0x2d8] sm:$0xff] }
 0x5bd   :  { %v4252_v28 = vpack.c.bf16 %v2160_v1, %v2159_v7  ;;  %v2092_v11 = vpop.f32.mrb[141].mxu0  ;;  %v2091_v42 = vadd.f32 %v2090_v16, %v1707_v9  ;;  %v2253_v7 = vld [vmem:[%s6646_s11 + $0x2d0] sm:$0xff]  ;;  %v2258_v1 = vld [vmem:[%s6646_s11 + $0x2f8] sm:$0xff] }
 0x5be   :  { %2693 = vmatmul.mubr.f32.gmra.mrb[102].mxu1 %v2279_v4  ;;  %v2257_v4 = vld [vmem:[%s6646_s11 + $0x2f0] sm:$0xff]  ;;  %v2262_v16 = vld [vmem:[%s6646_s11 + $0x318] sm:$0xff] }
 0x5bf   :  { %4253 = vmatpush1.bf16.msra.mxu1 %v4252_v28  ;;  %2697 = vmatprep.mubr.f32.mxu1 %v2284_v41  ;;  %v2161_v23 = vmax.f32 %v2091_v42, 0.0  ;;  %v2261_v41 = vld [vmem:[%s6646_s11 + $0x310] sm:$0xff]  ;;  %v2266_v28 = vld [vmem:[%s6646_s11 + $0x338] sm:$0xff] }
 0x5c0   :  { %v2095_v21 = vpop.f32.mrb[142].mxu0  ;;  %4254 = vmatprep.subr.bf16.mxu1 %v4438_v54  ;;  %v2165_v54 = vld [vmem:[%s6646_s11 + $0x10] sm:$0xff]  ;;  %v2270_v9 = vld [vmem:[%s6646_s11 + $0x358] sm:$0xff] }
 0x5c1   :  { %v2096_v22 = vadd.f32 %v2095_v21, %v1712_v20  ;;  %v2097_v48 = vpop.f32.mrb[143].mxu0  ;;  %v2265_v11 = vld [vmem:[%s6646_s11 + $0x330] sm:$0xff]  ;;  %v2278_v21 = vld [vmem:[%s6646_s11 + $0x398] sm:$0xff] }
 0x5c2   :  { %2698 = vmatmul.mubr.f32.gmra.mrb[104].mxu1 %v2283_v24  ;;  %v2269_v42 = vld [vmem:[%s6646_s11 + $0x350] sm:$0xff]  ;;  %v2274_v24 = vld [vmem:[%s6646_s11 + $0x378] sm:$0xff] }
 0x5c3   :  { %v2162_v13 = vmax.f32 %v2096_v22, 0.0  ;;  %2702 = vmatprep.mubr.f32.mxu1 %v2288_v10  ;;  %v2273_v20 = vld [vmem:[%s6646_s11 + $0x370] sm:$0xff]  ;;  %v2282_v22 = vld [vmem:[%s6646_s11 + $0x3b8] sm:$0xff] }
 0x5c4   :  { %v2277_v10 = vld [vmem:[%s6646_s11 + $0x390] sm:$0xff] }
 0x5c5   :  { %v4255_v39 = vpack.c.bf16 %v2162_v13, %v2161_v23  ;;  %v2281_v48 = vld [vmem:[%s6646_s11 + $0x3b0] sm:$0xff]  ;;  %v2286_v23 = vld [vmem:[%s6646_s11 + $0x3d8] sm:$0xff] }
 0x5c6   :  { %2703 = vmatmul.mubr.f32.gmra.mrb[106].mxu1 %v2287_v45  ;;  %v2285_v13 = vld [vmem:[%s6646_s11 + $0x3d0] sm:$0xff]  ;;  %v2290_v45 = vld [vmem:[%s6646_s11 + $0x3f8] sm:$0xff] }
 0x5c7   :  { %4256 = vmatpush1.bf16.msra.mxu1 %v4255_v39  ;;  %2772 = vmatprep.mubr.f32.mxu1 %v2166_v36  ;;  %v2289_v36 = vld [vmem:[%s6646_s11 + $0x3f0] sm:$0xff]  ;;  %v6418_v39 = vpop.permute.xlu0 %2405 }
 0x5ca   :  { %2773 = vmatmul.mubr.f32.vlgmr.msra.gmra.mrb[44].mxu1 %v2165_v54  ;;  %v6420_v54 = vpop.permute.xlu1 %2410 }
 0x5cb   :  { %2777 = vmatprep.mubr.f32.mxu1 %v2170_v32  ;;  %v2326_v32 = vpop.permute.xlu0 %2325 }
 0x5ce   :  { %2778 = vmatmul.mubr.f32.gmra.mrb[46].mxu1 %v2169_v46  ;;  %v2331_v46 = vpop.permute.xlu1 %2330 }
 0x5cf   :  { %2782 = vmatprep.mubr.f32.mxu1 %v2174_v35  ;;  %v6422_v35 = vpop.permute.xlu0 %2415 }
 0x5d2   :  { %2783 = vmatmul.mubr.f32.gmra.mrb[48].mxu1 %v2173_v31  ;;  %v6424_v31 = vpop.permute.xlu1 %2420 }
 0x5d3   :  { %2787 = vmatprep.mubr.f32.mxu1 %v2178_v25  ;;  %v2336_v25 = vpop.permute.xlu0 %2335 }
 0x5d6   :  { %2788 = vmatmul.mubr.f32.gmra.mrb[50].mxu1 %v2177_v26  ;;  %v2341_v26 = vpop.permute.xlu1 %2340 }
 0x5d7   :  { %2792 = vmatprep.mubr.f32.mxu1 %v2182_v51  ;;  %v6426_v51 = vpop.permute.xlu0 %2425 }
 0x5da   :  { %2793 = vmatmul.mubr.f32.gmra.mrb[52].mxu1 %v2181_v29  ;;  %v6428_v29 = vpop.permute.xlu1 %2430 }
 0x5db   :  { %2797 = vmatprep.mubr.f32.mxu1 %v2186_v50  ;;  %v2346_v50 = vpop.permute.xlu0 %2345 }
 0x5de   :  { %2798 = vmatmul.mubr.f32.gmra.mrb[54].mxu1 %v2185_v30  ;;  %v2351_v30 = vpop.permute.xlu1 %2350 }
 0x5df   :  { %2802 = vmatprep.mubr.f32.mxu1 %v2190_v43 }
 0x5e2   :  { %2803 = vmatmul.mubr.f32.gmra.mrb[56].mxu1 %v2189_v49 }
 0x5e3   :  { %2807 = vmatprep.mubr.f32.mxu1 %v2194_v57 }
 0x5e6   :  { %2808 = vmatmul.mubr.f32.gmra.mrb[58].mxu1 %v2193_v8  ;;  %v6430_v8 = vpop.permute.xlu0 %2435 }
 0x5e7   :  { %2812 = vmatprep.mubr.f32.mxu1 %v2198_v58 }
 0x5ea   :  { %2813 = vmatmul.mubr.f32.gmra.mrb[60].mxu1 %v2197_v55 }
 0x5eb   :  { %2817 = vmatprep.mubr.f32.mxu1 %v2202_v56 }
 0x5ee   :  { %2818 = vmatmul.mubr.f32.gmra.mrb[62].mxu1 %v2201_v0  ;;  %v2966_v0 = vld [vmem:[%s6647_s13 + $0x8] sm:$0xff] }
 0x5ef   :  { %2822 = vmatprep.mubr.f32.mxu1 %v2206_v3  ;;  %v6435_v3 = vpop.permute.xlu1 %2440  ;;  %3157 = vmatprep.mubr.f32.mxu0 %v2966_v0 }
 0x5f2   :  { %2823 = vmatmul.mubr.f32.gmra.mrb[64].mxu1 %v2205_v53 }
 0x5f3   :  { %2827 = vmatprep.mubr.f32.mxu1 %v2210_v27 }
 0x5f6   :  { %2828 = vmatmul.mubr.f32.gmra.mrb[66].mxu1 %v2209_v33 }
 0x5f7   :  { %2832 = vmatprep.mubr.f32.mxu1 %v2214_v34 }
 0x5fa   :  { %2833 = vmatmul.mubr.f32.gmra.mrb[68].mxu1 %v2213_v14 }
 0x5fb   :  { %2837 = vmatprep.mubr.f32.mxu1 %v2218_v19  ;;  %v2356_v19 = vpop.permute.xlu0 %2355 }
 0x5fe   :  { %2838 = vmatmul.mubr.f32.gmra.mrb[70].mxu1 %v2217_v60 }
 0x5ff   :  { %2842 = vmatprep.mubr.f32.mxu1 %v2222_v59  ;;  %v2361_v59 = vpop.permute.xlu1 %2360 }
 0x602   :  { %2843 = vmatmul.mubr.f32.gmra.mrb[72].mxu1 %v2221_v52 }
 0x603   :  { %2847 = vmatprep.mubr.f32.mxu1 %v2226_v2 }
 0x606   :  { %2848 = vmatmul.mubr.f32.gmra.mrb[74].mxu1 %v2225_v63 }
 0x607   :  { %2852 = vmatprep.mubr.f32.mxu1 %v2230_v15 }
 0x60a   :  { %2853 = vmatmul.mubr.f32.gmra.mrb[76].mxu1 %v2229_v40 }
 0x60b   :  { %2857 = vmatprep.mubr.f32.mxu1 %v2234_v47  ;;  %v6439_v47 = vpop.permute.xlu0 %2445 }
 0x60e   :  { %2858 = vmatmul.mubr.f32.gmra.mrb[78].mxu1 %v2233_v37 }
 0x60f   :  { %2862 = vmatprep.mubr.f32.mxu1 %v2238_v62 }
 0x612   :  { %2863 = vmatmul.mubr.f32.gmra.mrb[80].mxu1 %v2237_v44 }
 0x613   :  { %2867 = vmatprep.mubr.f32.mxu1 %v2242_v38  ;;  %v6443_v38 = vpop.permute.xlu1 %2450 }
 0x616   :  { %2868 = vmatmul.mubr.f32.gmra.mrb[82].mxu1 %v2241_v17 }
 0x617   :  { %2872 = vmatprep.mubr.f32.mxu1 %v2246_v61 }
 0x61a   :  { %2873 = vmatmul.mubr.f32.gmra.mrb[84].mxu1 %v2245_v6 }
 0x61b   :  { %2877 = vmatprep.mubr.f32.mxu1 %v2250_v5 }
 0x61e   :  { %2878 = vmatmul.mubr.f32.gmra.mrb[86].mxu1 %v2249_v12  ;;  %v2366_v12 = vpop.permute.xlu0 %2365 }
 0x61f   :  { %2882 = vmatprep.mubr.f32.mxu1 %v2254_v18 }
 0x622   :  { %2883 = vmatmul.mubr.f32.gmra.mrb[88].mxu1 %v2253_v7 }
 0x623   :  { %2887 = vmatprep.mubr.f32.mxu1 %v2258_v1  ;;  %v2371_v1 = vpop.permute.xlu1 %2370 }
 0x626   :  { %2888 = vmatmul.mubr.f32.gmra.mrb[90].mxu1 %v2257_v4 }
 0x627   :  { %2892 = vmatprep.mubr.f32.mxu1 %v2262_v16 }
 0x62a   :  { %2893 = vmatmul.mubr.f32.gmra.mrb[92].mxu1 %v2261_v41 }
 0x62b   :  { %2897 = vmatprep.mubr.f32.mxu1 %v2266_v28 }
 0x62e   :  { %2898 = vmatmul.mubr.f32.gmra.mrb[94].mxu1 %v2265_v11  ;;  %v6447_v11 = vpop.permute.xlu0 %2455 }
 0x62f   :  { %2902 = vmatprep.mubr.f32.mxu1 %v2270_v9 }
 0x632   :  { %2903 = vmatmul.mubr.f32.gmra.mrb[96].mxu1 %v2269_v42 }
 0x633   :  { %2907 = vmatprep.mubr.f32.mxu1 %v2274_v24 }
 0x636   :  { %2908 = vmatmul.mubr.f32.gmra.mrb[98].mxu1 %v2273_v20  ;;  %v6449_v20 = vpop.permute.xlu1 %2460 }
 0x637   :  { %2912 = vmatprep.mubr.f32.mxu1 %v2278_v21 }
 0x63a   :  { %2913 = vmatmul.mubr.f32.gmra.mrb[100].mxu1 %v2277_v10 }
 0x63b   :  { %2917 = vmatprep.mubr.f32.mxu1 %v2282_v22 }
 0x63e   :  { %2918 = vmatmul.mubr.f32.gmra.mrb[102].mxu1 %v2281_v48 }
 0x63f   :  { %2922 = vmatprep.mubr.f32.mxu1 %v2286_v23 }
 0x642   :  { %2923 = vmatmul.mubr.f32.gmra.mrb[104].mxu1 %v2285_v13  ;;  %v2376_v13 = vpop.permute.xlu0 %2375 }
 0x643   :  { %2927 = vmatprep.mubr.f32.mxu1 %v2290_v45 }
 0x646   :  { %2928 = vmatmul.mubr.f32.gmra.mrb[106].mxu1 %v2289_v36  ;;  %v2381_v36 = vpop.permute.xlu1 %2380 }
 0x69d   :  { %v2774_v43 = vpop.f32.mrb[44].mxu1 }
 0x69e   :  { %v2776_v49 = vpop.f32.mrb[45].mxu1  ;;  %v4337_v57 = vadd.f32 %v2774_v43, %v2326_v32 }
 0x6a0   :  { %v2933_v53 = vmax.f32 %v4337_v57, 0.0 }
 0x6a1   :  { %v2779_v58 = vpop.f32.mrb[46].mxu1 }
 0x6a2   :  { %v4338_v55 = vadd.f32 %v2779_v58, %v2331_v46  ;;  %v2781_v56 = vpop.f32.mrb[47].mxu1  ;;  %v6457_v58 = vpop.permute.xlu1 %2470 }
 0x6a4   :  { %v2934_v27 = vmax.f32 %v4338_v55, 0.0 }
 0x6a5   :  { %v2784_v33 = vpop.f32.mrb[48].mxu1 }
 0x6a6   :  { %v6437_v34 = vpack.c.bf16 %v2934_v27, %v2933_v53  ;;  %v2786_v14 = vpop.f32.mrb[49].mxu1  ;;  %v4339_v60 = vadd.f32 %v2784_v33, %v2336_v25 }
 0x6a8   :  { %v2935_v15 = vmax.f32 %v4339_v60, 0.0 }
 0x6a9   :  { %v2789_v52 = vpop.f32.mrb[50].mxu1 }
 0x6aa   :  { %v4340_v2 = vadd.f32 %v2789_v52, %v2341_v26  ;;  %v2791_v63 = vpop.f32.mrb[51].mxu1 }
 0x6ac   :  { %v2936_v40 = vmax.f32 %v4340_v2, 0.0 }
 0x6ad   :  { %v2794_v37 = vpop.f32.mrb[52].mxu1 }
 0x6ae   :  { %v6441_v62 = vpack.c.bf16 %v2936_v40, %v2935_v15  ;;  %v2796_v44 = vpop.f32.mrb[53].mxu1  ;;  %v4341_v17 = vadd.f32 %v2794_v37, %v2346_v50 }
 0x6b0   :  { %v2937_v18 = vmax.f32 %v4341_v17, 0.0 }
 0x6b1   :  { %v2799_v61 = vpop.f32.mrb[54].mxu1 }
 0x6b2   :  { %v4342_v6 = vadd.f32 %v2799_v61, %v2351_v30  ;;  %v2801_v5 = vpop.f32.mrb[55].mxu1  ;;  %v6453_v30 = vpop.permute.xlu0 %2465 }
 0x6b4   :  { %v2938_v7 = vmax.f32 %v4342_v6, 0.0 }
 0x6b5   :  { %v2804_v4 = vpop.f32.mrb[56].mxu1 }
 0x6b6   :  { %v6445_v16 = vpack.c.bf16 %v2938_v7, %v2937_v18  ;;  %v2806_v41 = vpop.f32.mrb[57].mxu1  ;;  %v4343_v28 = vadd.f32 %v2804_v4, %v2356_v19  ;;  %v2386_v27 = vpop.permute.xlu0 %2385 }
 0x6b7   :  { %v2391_v19 = vpop.permute.xlu1 %2390 }
 0x6b8   :  { %v2939_v21 = vmax.f32 %v4343_v28, 0.0 }
 0x6b9   :  { %v2809_v9 = vpop.f32.mrb[58].mxu1 }
 0x6ba   :  { %v4344_v42 = vadd.f32 %v2809_v9, %v2361_v59  ;;  %v2811_v24 = vpop.f32.mrb[59].mxu1  ;;  %v6461_v63 = vpop.permute.xlu0 %2475 }
 0x6bb   :  { %v6463_v44 = vpop.permute.xlu1 %2480 }
 0x6bc   :  { %v2940_v10 = vmax.f32 %v4344_v42, 0.0 }
 0x6bd   :  { %v2814_v22 = vpop.f32.mrb[60].mxu1 }
 0x6be   :  { %v6451_v48 = vpack.c.bf16 %v2940_v10, %v2939_v21  ;;  %v2816_v23 = vpop.f32.mrb[61].mxu1  ;;  %v4345_v45 = vadd.f32 %v2814_v22, %v2366_v12  ;;  %v2396_v18 = vpop.permute.xlu0 %2395 }
 0x6c0   :  { %v2941_v26 = vmax.f32 %v4345_v45, 0.0 }
 0x6c1   :  { %v2819_v32 = vpop.f32.mrb[62].mxu1 }
 0x6c2   :  { %v4346_v46 = vadd.f32 %v2819_v32, %v2371_v1  ;;  %v2821_v25 = vpop.f32.mrb[63].mxu1  ;;  %v2401_v1 = vpop.permute.xlu1 %2400 }
 0x6c4   :  { %v2942_v50 = vmax.f32 %v4346_v46, 0.0 }
 0x6c5   :  { %v2824_v43 = vpop.f32.mrb[64].mxu1 }
 0x6c6   :  { %v6455_v49 = vpack.c.bf16 %v2942_v50, %v2941_v26  ;;  %v2826_v57 = vpop.f32.mrb[65].mxu1  ;;  %v4347_v55 = vadd.f32 %v2824_v43, %v2376_v13 }
 0x6c8   :  { %v2943_v33 = vmax.f32 %v4347_v55, 0.0 }
 0x6c9   :  { %v2829_v56 = vpop.f32.mrb[66].mxu1 }
 0x6ca   :  { %v4348_v0 = vadd.f32 %v2829_v56, %v2381_v36  ;;  %v2831_v53 = vpop.f32.mrb[67].mxu1 }
 0x6cc   :  { %v2944_v14 = vmax.f32 %v4348_v0, 0.0 }
 0x6cd   :  { %v2834_v60 = vpop.f32.mrb[68].mxu1 }
 0x6ce   :  { %v6459_v59 = vpack.c.bf16 %v2944_v14, %v2943_v33  ;;  %v2836_v52 = vpop.f32.mrb[69].mxu1  ;;  %v4349_v2 = vadd.f32 %v2834_v60, %v2386_v27 }
 0x6d0   :  { %v2945_v17 = vmax.f32 %v4349_v2, 0.0 }
 0x6d1   :  { %v2839_v15 = vpop.f32.mrb[70].mxu1 }
 0x6d2   :  { %v4350_v40 = vadd.f32 %v2839_v15, %v2391_v19  ;;  %v2841_v37 = vpop.f32.mrb[71].mxu1 }
 0x6d4   :  { %v2946_v61 = vmax.f32 %v4350_v40, 0.0 }
 0x6d5   :  { %v2844_v6 = vpop.f32.mrb[72].mxu1 }
 0x6d6   :  { %v6465_v5 = vpack.c.bf16 %v2946_v61, %v2945_v17  ;;  %v2846_v12 = vpop.f32.mrb[73].mxu1  ;;  %v4351_v7 = vadd.f32 %v2844_v6, %v2396_v18 }
 0x6d8   :  { %v2947_v9 = vmax.f32 %v4351_v7, 0.0 }
 0x6d9   :  { %v2849_v4 = vpop.f32.mrb[74].mxu1 }
 0x6da   :  { %v4352_v41 = vadd.f32 %v2849_v4, %v2401_v1  ;;  %v2851_v28 = vpop.f32.mrb[75].mxu1 }
 0x6dc   :  { %v2948_v42 = vmax.f32 %v4352_v41, 0.0 }
 0x6dd   :  { %v2854_v24 = vpop.f32.mrb[76].mxu1 }
 0x6de   :  { %v6467_v21 = vpack.c.bf16 %v2948_v42, %v2947_v9  ;;  %v2856_v10 = vpop.f32.mrb[77].mxu1  ;;  %v4353_v22 = vadd.f32 %v2854_v24, %v6418_v39 }
 0x6e0   :  { %v2949_v36 = vmax.f32 %v4353_v22, 0.0 }
 0x6e1   :  { %v2859_v23 = vpop.f32.mrb[78].mxu1 }
 0x6e2   :  { %v4354_v13 = vadd.f32 %v2859_v23, %v6420_v54  ;;  %v2861_v45 = vpop.f32.mrb[79].mxu1 }
 0x6e4   :  { %v2950_v32 = vmax.f32 %v4354_v13, 0.0 }
 0x6e5   :  { %v2864_v46 = vpop.f32.mrb[80].mxu1 }
 0x6e6   :  { %v4257_v25 = vpack.c.bf16 %v2950_v32, %v2949_v36  ;;  %v2866_v26 = vpop.f32.mrb[81].mxu1  ;;  %v4355_v50 = vadd.f32 %v2864_v46, %v6422_v35 }
 0x6e8   :  { %4258 = vmatprep.subr.bf16.mxu0 %v4257_v25  ;;  %v2951_v56 = vmax.f32 %v4355_v50, 0.0 }
 0x6e9   :  { %v2869_v43 = vpop.f32.mrb[82].mxu1  ;;  %4260 = vmatpush3.bf16.msra.mxu0 %v6437_v34 }
 0x6ea   :  { %v4356_v57 = vadd.f32 %v2869_v43, %v6424_v31  ;;  %v2871_v55 = vpop.f32.mrb[83].mxu1 }
 0x6eb   :  { %v2971_v55 = vld [vmem:[%s6647_s13 + $0x30] sm:$0xff] }
 0x6ec   :  { %v2952_v39 = vmax.f32 %v4356_v57, 0.0  ;;  %v2972_v57 = vld [vmem:[%s6647_s13 + $0x38] sm:$0xff] }
 0x6ed   :  { %v2874_v0 = vpop.f32.mrb[84].mxu1 }
 0x6ee   :  { %v4261_v53 = vpack.c.bf16 %v2952_v39, %v2951_v56  ;;  %v2876_v54 = vpop.f32.mrb[85].mxu1  ;;  %v4357_v27 = vadd.f32 %v2874_v0, %v6426_v51  ;;  %v2974_v56 = vld [vmem:[%s6647_s13 + $0x48] sm:$0xff]  ;;  %v2973_v39 = vld [vmem:[%s6647_s13 + $0x40] sm:$0xff]  ;;  %v2976_v0 = vld [vmem:[%s6647_s13 + $0x58] sm:$0xff] }
 0x6ef   :  { %v2978_v54 = vld [vmem:[%s6647_s13 + $0x68] sm:$0xff] }
 0x6f0   :  { %4262 = vmatprep.subr.bf16.mxu0 %v4261_v53  ;;  %v2953_v19 = vmax.f32 %v4357_v27, 0.0  ;;  %v2975_v53 = vld [vmem:[%s6647_s13 + $0x50] sm:$0xff]  ;;  %v2977_v27 = vld [vmem:[%s6647_s13 + $0x60] sm:$0xff] }
 0x6f1   :  { %v2879_v33 = vpop.f32.mrb[86].mxu1  ;;  %4264 = vmatpush3.bf16.msra.mxu0 %v6441_v62 }
 0x6f2   :  { %v4358_v35 = vadd.f32 %v2879_v33, %v6428_v29  ;;  %v2881_v14 = vpop.f32.mrb[87].mxu1  ;;  %v2980_v33 = vld [vmem:[%s6647_s13 + $0x78] sm:$0xff] }
 0x6f3   :  { %v2982_v14 = vld [vmem:[%s6647_s13 + $0x88] sm:$0xff] }
 0x6f4   :  { %v2954_v60 = vmax.f32 %v4358_v35, 0.0  ;;  %v2979_v35 = vld [vmem:[%s6647_s13 + $0x70] sm:$0xff] }
 0x6f5   :  { %v2884_v34 = vpop.f32.mrb[88].mxu1 }
 0x6f6   :  { %v4265_v52 = vpack.c.bf16 %v2954_v60, %v2953_v19  ;;  %v2886_v31 = vpop.f32.mrb[89].mxu1  ;;  %v4359_v2 = vadd.f32 %v2884_v34, %v6430_v8  ;;  %v2981_v19 = vld [vmem:[%s6647_s13 + $0x80] sm:$0xff]  ;;  %v2984_v60 = vld [vmem:[%s6647_s13 + $0x98] sm:$0xff]  ;;  %v2983_v34 = vld [vmem:[%s6647_s13 + $0x90] sm:$0xff] }
 0x6f7   :  { %v2985_v31 = vld [vmem:[%s6647_s13 + $0xa0] sm:$0xff] }
 0x6f8   :  { %4266 = vmatprep.subr.bf16.mxu0 %v4265_v52  ;;  %v2955_v37 = vmax.f32 %v4359_v2, 0.0  ;;  %v2986_v52 = vld [vmem:[%s6647_s13 + $0xa8] sm:$0xff]  ;;  %v2988_v2 = vld [vmem:[%s6647_s13 + $0xb8] sm:$0xff] }
 0x6f9   :  { %v2889_v15 = vpop.f32.mrb[90].mxu1  ;;  %4268 = vmatpush3.bf16.msra.mxu0 %v6445_v16 }
 0x6fa   :  { %v4360_v51 = vadd.f32 %v2889_v15, %v6435_v3  ;;  %v2891_v40 = vpop.f32.mrb[91].mxu1  ;;  %v2987_v15 = vld [vmem:[%s6647_s13 + $0xb0] sm:$0xff] }
 0x6fb   :  { %v2989_v40 = vld [vmem:[%s6647_s13 + $0xc0] sm:$0xff] }
 0x6fc   :  { %v2956_v17 = vmax.f32 %v4360_v51, 0.0  ;;  %v2990_v51 = vld [vmem:[%s6647_s13 + $0xc8] sm:$0xff] }
 0x6fd   :  { %v2894_v62 = vpop.f32.mrb[92].mxu1 }
 0x6fe   :  { %v4269_v61 = vpack.c.bf16 %v2956_v17, %v2955_v37  ;;  %v2896_v29 = vpop.f32.mrb[93].mxu1  ;;  %v4361_v6 = vadd.f32 %v2894_v62, %v6439_v47  ;;  %v2992_v37 = vld [vmem:[%s6647_s13 + $0xd8] sm:$0xff]  ;;  %v2991_v17 = vld [vmem:[%s6647_s13 + $0xd0] sm:$0xff]  ;;  %v2994_v62 = vld [vmem:[%s6647_s13 + $0xe8] sm:$0xff] }
 0x6ff   :  { %v2996_v29 = vld [vmem:[%s6647_s13 + $0xf8] sm:$0xff] }
 0x700   :  { %4270 = vmatprep.subr.bf16.mxu0 %v4269_v61  ;;  %v2957_v7 = vmax.f32 %v4361_v6, 0.0  ;;  %v2993_v61 = vld [vmem:[%s6647_s13 + $0xe0] sm:$0xff]  ;;  %v2995_v6 = vld [vmem:[%s6647_s13 + $0xf0] sm:$0xff] }
 0x701   :  { %v2899_v12 = vpop.f32.mrb[94].mxu1  ;;  %4272 = vmatpush3.bf16.msra.mxu0 %v6451_v48 }
 0x702   :  { %v4362_v8 = vadd.f32 %v2899_v12, %v6443_v38  ;;  %v2901_v18 = vpop.f32.mrb[95].mxu1  ;;  %v3254_v12 = vld [vmem:[%s6648_s15] sm:$0xff] }
 0x703   :  { %4023 = vmatprep.mubr.f32.mxu1 %v3254_v12 }
 0x704   :  { %v2958_v1 = vmax.f32 %v4362_v8, 0.0 }
 0x705   :  { %v2904_v16 = vpop.f32.mrb[96].mxu1 }
 0x706   :  { %v4273_v4 = vpack.c.bf16 %v2958_v1, %v2957_v7  ;;  %v2906_v3 = vpop.f32.mrb[97].mxu1  ;;  %v4363_v41 = vadd.f32 %v2904_v16, %v6447_v11  ;;  %v3016_v16 = vpop.permute.xlu0 %3015 }
 0x708   :  { %4274 = vmatprep.subr.bf16.mxu0 %v4273_v4  ;;  %v2959_v42 = vmax.f32 %v4363_v41, 0.0 }
 0x709   :  { %v2909_v28 = vpop.f32.mrb[98].mxu1  ;;  %4276 = vmatpush3.bf16.msra.mxu0 %v6455_v49 }
 0x70a   :  { %v4364_v47 = vadd.f32 %v2909_v28, %v6449_v20  ;;  %v2911_v9 = vpop.f32.mrb[99].mxu1  ;;  %v3021_v28 = vpop.permute.xlu1 %3020 }
 0x70c   :  { %v2960_v24 = vmax.f32 %v4364_v47, 0.0 }
 0x70d   :  { %v2914_v48 = vpop.f32.mrb[100].mxu1 }
 0x70e   :  { %v4277_v10 = vpack.c.bf16 %v2960_v24, %v2959_v42  ;;  %v2916_v38 = vpop.f32.mrb[101].mxu1  ;;  %v4365_v22 = vadd.f32 %v2914_v48, %v6453_v30 }
 0x710   :  { %4278 = vmatprep.subr.bf16.mxu0 %v4277_v10  ;;  %v2961_v45 = vmax.f32 %v4365_v22, 0.0 }
 0x711   :  { %v2919_v23 = vpop.f32.mrb[102].mxu1  ;;  %4280 = vmatpush3.bf16.msra.mxu0 %v6459_v59 }
 0x712   :  { %v4366_v11 = vadd.f32 %v2919_v23, %v6457_v58  ;;  %v2921_v13 = vpop.f32.mrb[103].mxu1  ;;  %v2965_v58 = vld [vmem:[%s6647_s13] sm:$0xff]  ;;  %v3026_v23 = vpop.permute.xlu0 %3025 }
 0x714   :  { %v2962_v36 = vmax.f32 %v4366_v11, 0.0 }
 0x715   :  { %v2924_v49 = vpop.f32.mrb[104].mxu1 }
 0x716   :  { %v4281_v32 = vpack.c.bf16 %v2962_v36, %v2961_v45  ;;  %v2926_v20 = vpop.f32.mrb[105].mxu1  ;;  %v4367_v46 = vadd.f32 %v2924_v49, %v6461_v63  ;;  %v2968_v63 = vld [vmem:[%s6647_s13 + $0x18] sm:$0xff]  ;;  %v3031_v36 = vpop.permute.xlu1 %3030 }
 0x718   :  { %4282 = vmatprep.subr.bf16.mxu0 %v4281_v32  ;;  %v2963_v50 = vmax.f32 %v4367_v46, 0.0 }
 0x719   :  { %v2929_v25 = vpop.f32.mrb[106].mxu1  ;;  %4284 = vmatpush3.bf16.msra.mxu0 %v6465_v5  ;;  %v2970_v5 = vld [vmem:[%s6647_s13 + $0x28] sm:$0xff] }
 0x71a   :  { %v4368_v30 = vadd.f32 %v2929_v25, %v6463_v44  ;;  %v2931_v26 = vpop.f32.mrb[107].mxu1  ;;  %v2967_v44 = vld [vmem:[%s6647_s13 + $0x10] sm:$0xff] }
 0x71c   :  { %v2964_v43 = vmax.f32 %v4368_v30, 0.0 }
 0x71e   :  { %v4285_v59 = vpack.c.bf16 %v2964_v43, %v2963_v50  ;;  %v3036_v43 = vpop.permute.xlu0 %3035 }
 0x720   :  { %4286 = vmatprep.subr.bf16.mxu0 %v4285_v59 }
 0x721   :  { %4288 = vmatpush3.bf16.msra.mxu0 %v6467_v21  ;;  %v2969_v21 = vld [vmem:[%s6647_s13 + $0x20] sm:$0xff] }
 0x724   :  { %3158 = vmatmul.mubr.f32.vlgmr.msra.gmra.mrb[144].mxu0 %v2965_v58 }
 0x725   :  { %3162 = vmatprep.mubr.f32.mxu0 %v2968_v63 }
 0x728   :  { %3163 = vmatmul.mubr.f32.gmra.mrb[146].mxu0 %v2967_v44  ;;  %v3041_v44 = vpop.permute.xlu1 %3040 }
 0x729   :  { %3167 = vmatprep.mubr.f32.mxu0 %v2970_v5 }
 0x72c   :  { %3168 = vmatmul.mubr.f32.gmra.mrb[148].mxu0 %v2969_v21 }
 0x72d   :  { %3172 = vmatprep.mubr.f32.mxu0 %v2972_v57 }
 0x730   :  { %3173 = vmatmul.mubr.f32.gmra.mrb[150].mxu0 %v2971_v55 }
 0x731   :  { %3177 = vmatprep.mubr.f32.mxu0 %v2974_v56 }
 0x734   :  { %3178 = vmatmul.mubr.f32.gmra.mrb[152].mxu0 %v2973_v39 }
 0x735   :  { %3182 = vmatprep.mubr.f32.mxu0 %v2976_v0 }
 0x738   :  { %3183 = vmatmul.mubr.f32.gmra.mrb[154].mxu0 %v2975_v53 }
 0x739   :  { %3187 = vmatprep.mubr.f32.mxu0 %v2978_v54  ;;  %v3046_v54 = vpop.permute.xlu0 %3045 }
 0x73c   :  { %3188 = vmatmul.mubr.f32.gmra.mrb[156].mxu0 %v2977_v27 }
 0x73d   :  { %3192 = vmatprep.mubr.f32.mxu0 %v2980_v33 }
 0x740   :  { %3193 = vmatmul.mubr.f32.gmra.mrb[158].mxu0 %v2979_v35 }
 0x741   :  { %3197 = vmatprep.mubr.f32.mxu0 %v2982_v14  ;;  %v3051_v14 = vpop.permute.xlu1 %3050 }
 0x744   :  { %3198 = vmatmul.mubr.f32.gmra.mrb[160].mxu0 %v2981_v19 }
 0x745   :  { %3202 = vmatprep.mubr.f32.mxu0 %v2984_v60 }
 0x748   :  { %3203 = vmatmul.mubr.f32.gmra.mrb[162].mxu0 %v2983_v34 }
 0x749   :  { %3207 = vmatprep.mubr.f32.mxu0 %v2986_v52 }
 0x74c   :  { %3208 = vmatmul.mubr.f32.gmra.mrb[164].mxu0 %v2985_v31 }
 0x74d   :  { %3212 = vmatprep.mubr.f32.mxu0 %v2988_v2 }
 0x750   :  { %3213 = vmatmul.mubr.f32.gmra.mrb[166].mxu0 %v2987_v15 }
 0x751   :  { %3217 = vmatprep.mubr.f32.mxu0 %v2990_v51 }
 0x754   :  { %3218 = vmatmul.mubr.f32.gmra.mrb[168].mxu0 %v2989_v40  ;;  %v3056_v40 = vpop.permute.xlu0 %3055 }
 0x755   :  { %3222 = vmatprep.mubr.f32.mxu0 %v2992_v37 }
 0x758   :  { %3223 = vmatmul.mubr.f32.gmra.mrb[170].mxu0 %v2991_v17 }
 0x759   :  { %3227 = vmatprep.mubr.f32.mxu0 %v2994_v62 }
 0x75c   :  { %3228 = vmatmul.mubr.f32.gmra.mrb[172].mxu0 %v2993_v61  ;;  %v3061_v61 = vpop.permute.xlu1 %3060 }
 0x75d   :  { %3232 = vmatprep.mubr.f32.mxu0 %v2996_v29 }
 0x760   :  { %3233 = vmatmul.mubr.f32.gmra.mrb[174].mxu0 %v2995_v6 }
 0x7f7   :  { %v3759_v8 = vpop.f32.mrb[144].mxu0 }
 0x7f8   :  { %v3760_v18 = vpop.f32.mrb[145].mxu0 }
 0x7f9   :  { %v3761_v7 = vadd.f32 %v3760_v18, %v3759_v8 }
 0x7fb   :  { %v3762_v1 = vpop.f32.mrb[146].mxu0  ;;  %v3160_v3 = vadd.f32 %v3761_v7, %v3016_v16 }
 0x7fc   :  { %v3763_v4 = vpop.f32.mrb[147].mxu0 }
 0x7fd   :  { %v3764_v41 = vadd.f32 %v3763_v4, %v3762_v1  ;;  %v3238_v24 = vmax.f32 %v3160_v3, 0.0  ;;  %v3066_v4 = vpop.permute.xlu0 %3065 }
 0x7ff   :  { %v3165_v47 = vadd.f32 %v3764_v41, %v3021_v28  ;;  %v3765_v9 = vpop.f32.mrb[148].mxu0 }
 0x800   :  { %v3766_v42 = vpop.f32.mrb[149].mxu0 }
 0x801   :  { %v3239_v48 = vmax.f32 %v3165_v47, 0.0  ;;  %v3767_v10 = vadd.f32 %v3766_v42, %v3765_v9  ;;  %v3071_v47 = vpop.permute.xlu1 %3070 }
 0x803   :  { %v3768_v38 = vpop.f32.mrb[150].mxu0  ;;  %v4289_v22 = vpack.c.bf16 %v3239_v48, %v3238_v24  ;;  %v3170_v13 = vadd.f32 %v3767_v10, %v3026_v23 }
 0x804   :  { %v3769_v11 = vpop.f32.mrb[151].mxu0 }
 0x805   :  { %v3770_v45 = vadd.f32 %v3769_v11, %v3768_v38  ;;  %4290 = vmatprep.subr.bf16.mxu1 %v4289_v22  ;;  %v3240_v46 = vmax.f32 %v3170_v13, 0.0  ;;  %v3076_v11 = vpop.permute.xlu0 %3075 }
 0x806   :  { %4292 = vmatpush3.bf16.msra.mxu1 %v4289_v22 }
 0x807   :  { %v3175_v49 = vadd.f32 %v3770_v45, %v3031_v36  ;;  %v3771_v32 = vpop.f32.mrb[152].mxu0 }
 0x808   :  { %v3772_v20 = vpop.f32.mrb[153].mxu0 }
 0x809   :  { %v3241_v25 = vmax.f32 %v3175_v49, 0.0  ;;  %v3773_v30 = vadd.f32 %v3772_v20, %v3771_v32  ;;  %v3081_v49 = vpop.permute.xlu1 %3080 }
 0x80b   :  { %v3774_v26 = vpop.f32.mrb[154].mxu0  ;;  %v4293_v50 = vpack.c.bf16 %v3241_v25, %v3240_v46  ;;  %v3180_v58 = vadd.f32 %v3773_v30, %v3036_v43 }
 0x80c   :  { %v3775_v59 = vpop.f32.mrb[155].mxu0 }
 0x80d   :  { %v3776_v63 = vadd.f32 %v3775_v59, %v3774_v26  ;;  %4294 = vmatprep.subr.bf16.mxu1 %v4293_v50  ;;  %v3242_v55 = vmax.f32 %v3180_v58, 0.0  ;;  %v3086_v59 = vpop.permute.xlu0 %3085 }
 0x80e   :  { %4296 = vmatpush3.bf16.msra.mxu1 %v4293_v50 }
 0x80f   :  { %v3185_v5 = vadd.f32 %v3776_v63, %v3041_v44  ;;  %v3777_v21 = vpop.f32.mrb[156].mxu0 }
 0x810   :  { %v3778_v57 = vpop.f32.mrb[157].mxu0 }
 0x811   :  { %v3243_v56 = vmax.f32 %v3185_v5, 0.0  ;;  %v3779_v39 = vadd.f32 %v3778_v57, %v3777_v21  ;;  %v3091_v5 = vpop.permute.xlu1 %3090 }
 0x813   :  { %v3780_v0 = vpop.f32.mrb[158].mxu0  ;;  %v4297_v53 = vpack.c.bf16 %v3243_v56, %v3242_v55  ;;  %v3190_v33 = vadd.f32 %v3779_v39, %v3046_v54  ;;  %v3255_v39 = vld [vmem:[%s6648_s15 + $0x8] sm:$0xff]  ;;  %v3258_v54 = vld [vmem:[%s6648_s15 + $0x20] sm:$0xff] }
 0x814   :  { %v3781_v27 = vpop.f32.mrb[159].mxu0 }
 0x815   :  { %v3782_v35 = vadd.f32 %v3781_v27, %v3780_v0  ;;  %4298 = vmatprep.subr.bf16.mxu1 %v4297_v53  ;;  %v3244_v52 = vmax.f32 %v3190_v33, 0.0  ;;  %v3256_v0 = vld [vmem:[%s6648_s15 + $0x10] sm:$0xff]  ;;  %v3259_v27 = vld [vmem:[%s6648_s15 + $0x28] sm:$0xff] }
 0x816   :  { %4300 = vmatpush3.bf16.msra.mxu1 %v4297_v53  ;;  %v3257_v53 = vld [vmem:[%s6648_s15 + $0x18] sm:$0xff]  ;;  %v3260_v33 = vld [vmem:[%s6648_s15 + $0x30] sm:$0xff] }
 0x817   :  { %v3195_v19 = vadd.f32 %v3782_v35, %v3051_v14  ;;  %v3783_v60 = vpop.f32.mrb[160].mxu0  ;;  %v3261_v35 = vld [vmem:[%s6648_s15 + $0x38] sm:$0xff]  ;;  %v3423_v14 = vld [vmem:[%s6649_s17] sm:$0xff] }
 0x818   :  { %v3784_v34 = vpop.f32.mrb[161].mxu0 }
 0x819   :  { %v3245_v31 = vmax.f32 %v3195_v19, 0.0  ;;  %v3785_v2 = vadd.f32 %v3784_v34, %v3783_v60  ;;  %v3278_v19 = vpop.permute.xlu1 %3277  ;;  %v3273_v60 = vpop.permute.xlu0 %3272 }
 0x81b   :  { %v3786_v15 = vpop.f32.mrb[162].mxu0  ;;  %v4301_v51 = vpack.c.bf16 %v3245_v31, %v3244_v52  ;;  %v3200_v17 = vadd.f32 %v3785_v2, %v3056_v40 }
 0x81c   :  { %v3787_v37 = vpop.f32.mrb[163].mxu0 }
 0x81d   :  { %v3788_v62 = vadd.f32 %v3787_v37, %v3786_v15  ;;  %4302 = vmatprep.subr.bf16.mxu1 %v4301_v51  ;;  %v3246_v8 = vmax.f32 %v3200_v17, 0.0  ;;  %v3288_v34 = vpop.permute.xlu1 %3287  ;;  %v3283_v31 = vpop.permute.xlu0 %3282 }
 0x81e   :  { %4304 = vmatpush3.bf16.msra.mxu1 %v4301_v51 }
 0x81f   :  { %v3205_v29 = vadd.f32 %v3788_v62, %v3061_v61  ;;  %v3789_v6 = vpop.f32.mrb[164].mxu0 }
 0x820   :  { %v3790_v12 = vpop.f32.mrb[165].mxu0 }
 0x821   :  { %v3247_v18 = vmax.f32 %v3205_v29, 0.0  ;;  %v3791_v7 = vadd.f32 %v3790_v12, %v3789_v6  ;;  %v3298_v29 = vpop.permute.xlu1 %3297 }
 0x823   :  { %v3792_v1 = vpop.f32.mrb[166].mxu0  ;;  %v4305_v16 = vpack.c.bf16 %v3247_v18, %v3246_v8  ;;  %v3210_v41 = vadd.f32 %v3791_v7, %v3066_v4  ;;  %v3293_v8 = vpop.permute.xlu0 %3292 }
 0x824   :  { %v3793_v3 = vpop.f32.mrb[167].mxu0 }
 0x825   :  { %v3794_v28 = vadd.f32 %v3793_v3, %v3792_v1  ;;  %4306 = vmatprep.subr.bf16.mxu1 %v4305_v16  ;;  %v3248_v48 = vmax.f32 %v3210_v41, 0.0 }
 0x826   :  { %4308 = vmatpush3.bf16.msra.mxu1 %v4305_v16 }
 0x827   :  { %v3215_v9 = vadd.f32 %v3794_v28, %v3071_v47  ;;  %v3795_v42 = vpop.f32.mrb[168].mxu0  ;;  %v3308_v47 = vpop.permute.xlu1 %3307 }
 0x828   :  { %v3796_v24 = vpop.f32.mrb[169].mxu0 }
 0x829   :  { %v3249_v10 = vmax.f32 %v3215_v9, 0.0  ;;  %v3797_v38 = vadd.f32 %v3796_v24, %v3795_v42  ;;  %v3303_v24 = vpop.permute.xlu0 %3302 }
 0x82b   :  { %v3798_v22 = vpop.f32.mrb[170].mxu0  ;;  %v4309_v23 = vpack.c.bf16 %v3249_v10, %v3248_v48  ;;  %v3220_v45 = vadd.f32 %v3797_v38, %v3076_v11 }
 0x82c   :  { %v3799_v13 = vpop.f32.mrb[171].mxu0 }
 0x82d   :  { %v3800_v36 = vadd.f32 %v3799_v13, %v3798_v22  ;;  %4310 = vmatprep.subr.bf16.mxu1 %v4309_v23  ;;  %v3250_v25 = vmax.f32 %v3220_v45, 0.0  ;;  %v3424_v45 = vld [vmem:[%s6649_s17 + $0x8] sm:$0xff] }
 0x82e   :  { %4312 = vmatpush3.bf16.msra.mxu1 %v4309_v23 }
 0x82f   :  { %v3225_v32 = vadd.f32 %v3800_v36, %v3081_v49  ;;  %v3801_v20 = vpop.f32.mrb[172].mxu0  ;;  %v3425_v36 = vld [vmem:[%s6649_s17 + $0x10] sm:$0xff]  ;;  %v3426_v49 = vld [vmem:[%s6649_s17 + $0x18] sm:$0xff] }
 0x830   :  { %v3802_v46 = vpop.f32.mrb[173].mxu0 }
 0x831   :  { %v3251_v30 = vmax.f32 %v3225_v32, 0.0  ;;  %v3803_v26 = vadd.f32 %v3802_v46, %v3801_v20  ;;  %v3434_v32 = vpop.permute.xlu0 %3433  ;;  %v3439_v20 = vpop.permute.xlu1 %3438 }
 0x833   :  { %v3804_v50 = vpop.f32.mrb[174].mxu0  ;;  %v4313_v43 = vpack.c.bf16 %v3251_v30, %v3250_v25  ;;  %v3230_v63 = vadd.f32 %v3803_v26, %v3086_v59 }
 0x834   :  { %v3805_v58 = vpop.f32.mrb[175].mxu0 }
 0x835   :  { %v3806_v44 = vadd.f32 %v3805_v58, %v3804_v50  ;;  %4314 = vmatprep.subr.bf16.mxu1 %v4313_v43  ;;  %v3252_v57 = vmax.f32 %v3230_v63, 0.0  ;;  %v3444_v46 = vpop.permute.xlu0 %3443  ;;  %v3449_v25 = vpop.permute.xlu1 %3448 }
 0x836   :  { %4316 = vmatpush3.bf16.msra.mxu1 %v4313_v43 }
 0x837   :  { %v3235_v21 = vadd.f32 %v3806_v44, %v3091_v5 }
 0x839   :  { %v3253_v55 = vmax.f32 %v3235_v21, 0.0  ;;  %v3560_v59 = vpop.permute.xlu0 %3559  ;;  %v3565_v63 = vpop.permute.xlu1 %3564 }
 0x83b   :  { %v4317_v56 = vpack.c.bf16 %v3253_v55, %v3252_v57 }
 0x83d   :  { %4318 = vmatprep.subr.bf16.mxu1 %v4317_v56 }
 0x83e   :  { %4320 = vmatpush3.bf16.msra.mxu1 %v4317_v56 }
 0x841   :  { %4024 = vmatmul.mubr.f32.vlgmr.msra.gmra.mrb[108].mxu1 %v3255_v39 }
 0x842   :  { %4026 = vmatprep.mubr.f32.mxu1 %v3256_v0 }
 0x845   :  { %4027 = vmatmul.mubr.f32.gmra.mrb[110].mxu1 %v3257_v53 }
 0x846   :  { %4029 = vmatprep.mubr.f32.mxu1 %v3258_v54 }
 0x849   :  { %4030 = vmatmul.mubr.f32.gmra.mrb[112].mxu1 %v3259_v27  ;;  %v3570_v27 = vpop.permute.xlu0 %3569 }
 0x84a   :  { %4032 = vmatprep.mubr.f32.mxu1 %v3260_v33 }
 0x84d   :  { %4033 = vmatmul.mubr.f32.gmra.mrb[114].mxu1 %v3261_v35  ;;  %v3575_v35 = vpop.permute.xlu1 %3574 }
 0x84e   :  { %4051 = vmatprep.mubr.msk.f32.mxu1 %vm511_vm3, %v3423_v14 }
 0x914   :  { %v4025_v52 = vpop.f32.mrb[108].mxu1 }
 0x915   :  { %v3382_v2 = vadd.f32 %v4025_v52, %v3278_v19  ;;  %v3376_v15 = vpop.f32.mrb[109].mxu1 }
 0x916   :  { %v3377_v51 = vadd.f32 %v3376_v15, %v3273_v60  ;;  %v3595_v60 = vlaneseq }
 0x917   :  { %v3416_v40 = vmax.f32 %v3382_v2, 0.0 }
 0x918   :  { %v3415_v37 = vmax.f32 %v3377_v51, 0.0  ;;  %v4028_v17 = vpop.f32.mrb[110].mxu1 }
 0x919   :  { %v3392_v62 = vadd.f32 %v4028_v17, %v3288_v34  ;;  %v3386_v61 = vpop.f32.mrb[111].mxu1 }
 0x91a   :  { %v4321_v6 = vpack.c.bf16 %v3416_v40, %v3415_v37  ;;  %v3387_v12 = vadd.f32 %v3386_v61, %v3283_v31  ;;  %v3596_v31 = vshrl.u32 %v3595_v60, 7  ;;  %v3593_v37 = vpop.permute.xlu0 %3592 }
 0x91b   :  { %v3418_v18 = vmax.f32 %v3392_v62, 0.0 }
 0x91c   :  { %v3417_v7 = vmax.f32 %v3387_v12, 0.0  ;;  %v4031_v1 = vpop.f32.mrb[112].mxu1  ;;  %4322 = vmatprep.subr.bf16.mxu1 %v4321_v6  ;;  %v3597_v51 = vsub.s32 0, %v3596_v31 }
 0x91d   :  { %v3402_v16 = vadd.f32 %v4031_v1, %v3298_v29  ;;  %v3396_v4 = vpop.f32.mrb[113].mxu1  ;;  %4324 = vmatpush3.bf16.msra.mxu1 %v4321_v6 }
 0x91e   :  { %v4325_v3 = vpack.c.bf16 %v3418_v18, %v3417_v7  ;;  %v3397_v41 = vadd.f32 %v3396_v4, %v3293_v8  ;;  %v3598_v62 = vrot.slane %v3593_v37, %v3597_v51 }
 0x91f   :  { %v3420_v28 = vmax.f32 %v3402_v16, 0.0 }
 0x920   :  { %v3419_v9 = vmax.f32 %v3397_v41, 0.0  ;;  %v4034_v42 = vpop.f32.mrb[114].mxu1  ;;  %4326 = vmatprep.subr.bf16.mxu1 %v4325_v3 }
 0x921   :  { %v3412_v48 = vadd.f32 %v4034_v42, %v3308_v47  ;;  %v3406_v10 = vpop.f32.mrb[115].mxu1  ;;  %4328 = vmatpush3.bf16.msra.mxu1 %v4325_v3 }
 0x922   :  { %v4329_v38 = vpack.c.bf16 %v3420_v28, %v3419_v9  ;;  %v3407_v22 = vadd.f32 %v3406_v10, %v3303_v24 }
 0x923   :  { %v3422_v23 = vmax.f32 %v3412_v48, 0.0 }
 0x924   :  { %v3421_v11 = vmax.f32 %v3407_v22, 0.0  ;;  %4330 = vmatprep.subr.bf16.mxu1 %v4329_v38 }
 0x925   :  { %4332 = vmatpush3.bf16.msra.mxu1 %v4329_v38 }
 0x926   :  { %v4333_v13 = vpack.c.bf16 %v3422_v23, %v3421_v11 }
 0x928   :  { %4334 = vmatprep.subr.bf16.mxu1 %v4333_v13 }
 0x929   :  { %4336 = vmatpush3.bf16.msra.mxu1 %v4333_v13 }
 0x92c   :  { %4052 = vmatmul.mubr.msk.f32.vlgmr.msra.gmra.mrb[116].mxu1 %vm511_vm3, %v3424_v45 }
 0x92d   :  { %4054 = vmatprep.mubr.msk.f32.mxu1 %vm511_vm3, %v3425_v36 }
 0x930   :  { %4055 = vmatmul.mubr.msk.f32.gmra.mrb[118].mxu1 %vm511_vm3, %v3426_v49 }
 0x9ff   :  { %v4053_v30 = vpop.f32.mrb[116].mxu1 }
 0xa00   :  { %v3535_v26 = vadd.f32 %v4053_v30, %v3439_v20  ;;  %v3529_v50 = vpop.f32.mrb[117].mxu1 }
 0xa01   :  { %v3530_v43 = vadd.f32 %v3529_v50, %v3434_v32 }
 0xa02   :  { %v3549_v58 = vmax.f32 %v3535_v26, 0.0 }
 0xa03   :  { %v3548_v44 = vmax.f32 %v3530_v43, 0.0  ;;  %v4056_v5 = vpop.f32.mrb[118].mxu1 }
 0xa04   :  { %v3578_v21 = vmul.f32 %v3565_v63, %v3549_v58  ;;  %v3545_v57 = vadd.f32 %v4056_v5, %v3449_v25  ;;  %v3539_v55 = vpop.f32.mrb[119].mxu1 }
 0xa05   :  { %v3577_v56 = vmul.f32 %v3560_v59, %v3548_v44  ;;  %v3540_v39 = vadd.f32 %v3539_v55, %v3444_v46 }
 0xa06   :  { %v3551_v53 = vmax.f32 %v3545_v57, 0.0 }
 0xa07   :  { %v3581_v0 = vadd.f32 %v3578_v21, %v3577_v56  ;;  %v3550_v54 = vmax.f32 %v3540_v39, 0.0 }
 0xa08   :  { %v3580_v14 = vmul.f32 %v3575_v35, %v3551_v53 }
 0xa09   :  { %v3579_v33 = vmul.f32 %v3570_v27, %v3550_v54 }
 0xa0b   :  { %v3582_v19 = vadd.f32 %v3581_v0, %v3579_v33 }
 0xa0d   :  { %v3583_v34 = vadd.f32 %v3582_v19, %v3580_v14 }
 0xa0f   :  { %v3584_v52 = vrot.slane %v3583_v34, 4 }
 0xa11   :  { %v3585_v2 = vadd.f32 %v3584_v52, %v3583_v34 }
 0xa13   :  { %v3586_v15 = vrot.slane %v3585_v2, 2 }
 0xa15   :  { %v3587_v40 = vadd.f32 %v3586_v15, %v3585_v2 }
 0xa17   :  { %v3588_v17 = vrot.slane %v3587_v40, 1 }
 0xa19   :  { %v3589_v61 = vadd.f32 %v3588_v17, %v3587_v40 }
 0xa1b   :  { %v3599_v29 = vadd.f32 %v3598_v62, %v3589_v61 }
 0xa1d   :  { %3600 = vst [vmem:[%s6650_s21] sm:$0x1] %v3599_v29 }

</bundles_post_ra>
